<compile_context>
chip_gen: v5e
topology: v5e:2x2
jax: 0.10.0
libtpu: 0.0.40
codegen_flags: <defaults>
</compile_context>

<pallas_src>
import functools

import jax
import jax.numpy as jnp
import numpy as np
from jax.experimental import pallas as pl
from jax.experimental.pallas import tpu as pltpu


def _layernorm(x, gamma, beta, eps=1e-5):
    mu = jnp.mean(x, axis=-1, keepdims=True)
    var = jnp.mean((x - mu) ** 2, axis=-1, keepdims=True)
    return (x - mu) * jax.lax.rsqrt(var + eps) * gamma + beta


def transformer_block_kernel(
    heads, head_dim, matmul_dtype,
    v_ref, k_ref, q_ref, qres_ref, bias_ref,
    wv_ref, wk_ref, wq_ref, wo_ref, bo_ref,
    g1_ref, be1_ref,
    w1_ref, bf1_ref, w2_ref, bf2_ref,
    g2_ref, be2_ref,
    out_ref,
):
    _, bt, s, hd = v_ref.shape            # head-major block: (heads, bt, s, hd)
    e = heads * head_dim
    r = bt * s                            # flattened (batch, seq) rows
    bh = heads * bt                       # attention batch dim
    f32 = jnp.float32

    def proj(x_ref, w_ref_):
        # Shared per-head Linear(hd, hd): one (heads*bt*s, hd) @ (hd, hd) matmul.
        x = x_ref[...].reshape(bh * s, hd).astype(matmul_dtype)
        y = jnp.dot(x, w_ref_[...], preferred_element_type=f32)
        return y.reshape(bh, s, hd)

    vh = proj(v_ref, wv_ref)
    kh = proj(k_ref, wk_ref)
    qh = proj(q_ref, wq_ref)              # 1/sqrt(E) already folded into Wq

    # Batched attention over all heads at once (lane-dense rank-3 einsums).
    energy = jnp.einsum("bqd,bkd->bqk",
                        qh.astype(matmul_dtype), kh.astype(matmul_dtype),
                        preferred_element_type=f32)            # (bh, s, s) f32

    bias = bias_ref[...].astype(f32)                           # (1 | bt, s, s)
    if bias.shape[0] == 1:
        energy = energy + bias                                 # broadcast over bh
    else:
        energy = energy + jnp.broadcast_to(
            bias[None], (heads, bt, s, s)).reshape(bh, s, s)

    # Softmax in f32 (exp on EUP, approx reciprocal for the denominator).
    mmax = jnp.max(energy, axis=-1, keepdims=True)
    p = jnp.exp(energy - mmax)
    denom = jnp.sum(p, axis=-1, keepdims=True)
    attn = p * pl.reciprocal(denom, approx=True)

    ctx = jnp.einsum("bqk,bkd->bqd",
                     attn.astype(matmul_dtype), vh.astype(matmul_dtype),
                     preferred_element_type=f32)               # (bh, s, hd)

    # fc_out: concat(heads) @ Wo^T == sum_h ctx[h] @ Wo^T[h*hd:(h+1)*hd, :].
    # One batched matmul + reduce over heads; no lane-slice stores needed.
    ctx = ctx.reshape(heads, r, hd)
    partial = jnp.einsum("hrd,hdo->hro",
                         ctx.astype(matmul_dtype), wo_ref[...],
                         preferred_element_type=f32)           # (heads, r, e)
    attn_out = jnp.sum(partial, axis=0) + bo_ref[...]          # (r, e) f32

    # Residual + LayerNorm 1 (dropout == identity in eval mode).
    q_rows = qres_ref[...].reshape(r, e)
    x = _layernorm(attn_out + q_rows, g1_ref[...], be1_ref[...])

    # Feed-forward: Linear -> ReLU -> Linear.
    h1 = jnp.dot(x.astype(matmul_dtype), w1_ref[...], preferred_element_type=f32)
    h1 = jnp.maximum(h1 + bf1_ref[...], 0.0)
    ff = jnp.dot(h1.astype(matmul_dtype), w2_ref[...], preferred_element_type=f32)
    ff = ff + bf2_ref[...]

    # Residual + LayerNorm 2 (dropout identity).
    out_ref[...] = _layernorm(ff + x, g2_ref[...], be2_ref[...]).reshape(bt, s, e)


def _size_bytes(shape, dtype):
    return int(np.prod(shape)) * jnp.dtype(dtype).itemsize


def transformer_block(value, key, query, mask, params, heads,
                      block_batch=None, matmul_dtype=jnp.bfloat16):
    n, s, e = query.shape
    head_dim = e // heads
    assert heads * head_dim == e
    hidden = params["w1"].shape[0]
    f32 = jnp.float32

    # block_batch: largest divisor of n that still gives >= 2 grid steps
    # (v7x has 2 TensorCores; a 1-step grid cannot be sharded across them).
    if block_batch is None:
        divisors = [d for d in range(1, n + 1) if n % d == 0]
        cands = [d for d in divisors if n // d >= 2] or divisors
        block_batch = max(cands)
    assert n % block_batch == 0
    grid = (n // block_batch,)

    scale = 1.0 / float(np.sqrt(e))
    row = lambda a: a.reshape(1, -1).astype(f32)
    wcast = lambda a: a.astype(matmul_dtype)

    # Weight prep (cheap one-time XLA ops, outside the kernel):
    #   per-head projection weights stay (hd, hd) (no block-diagonal blow-up),
    #   fc_out / FFN weights pre-transposed so the kernel does plain x @ W,
    #   Wo^T reshaped to (heads, hd, E) for the batched per-head matmul,
    #   matmul weights pre-cast to matmul_dtype, 1-D params as f32 (1, dim) rows.
    weights = [
        wcast(params["wv"].T), wcast(params["wk"].T), wcast(params["wq"].T * scale),
        wcast(params["wo"].T.reshape(heads, head_dim, e)), row(params["bo"]),
        row(params["g1"]), row(params["be1"]),
        wcast(params["w1"].T), row(params["bf1"]),
        wcast(params["w2"].T), row(params["bf2"]),
        row(params["g2"]), row(params["be2"]),
    ]

    # Head-major activation layout (heads, n, s, hd): layout plumbing done once
    # in the wrapper so the kernel never lane-slices per head.
    def to_head_major(x):
        return jnp.transpose(x.reshape(n, s, heads, head_dim), (2, 0, 1, 3))

    v_t, k_t, q_t = (to_head_major(t) for t in (value, key, query))

    # Additive mask bias precomputed once, stored bf16, widened in-kernel.
    bias = jnp.where(mask == 0, jnp.float32(-1e20), jnp.float32(0.0)).astype(jnp.bfloat16)

    head_spec = pl.BlockSpec((heads, block_batch, s, head_dim), lambda b: (0, b, 0, 0))
    row_spec = pl.BlockSpec((block_batch, s, e), lambda b: (b, 0, 0))
    if mask.shape[0] == 1:
        # Shared mask: one (1, S, S) HBM copy, re-used every grid step.
        bias_block = (1, s, s)
        bias_spec = pl.BlockSpec(bias_block, lambda b: (0, 0, 0))
    else:
        assert mask.shape[0] == n
        bias_block = (block_batch, s, s)
        bias_spec = pl.BlockSpec(bias_block, lambda b: (b, 0, 0))

    # VMEM budget (computed from the actual block sizes) and advisory cost.
    bh = heads * block_batch
    r = block_batch * s
    act_blocks = (3 * 2 * _size_bytes((heads, block_batch, s, head_dim), f32)
                  + 2 * _size_bytes((block_batch, s, e), f32)       # residual q
                  + 2 * _size_bytes(bias_block, jnp.bfloat16)
                  + 2 * _size_bytes((block_batch, s, e), f32))       # output
    w_bytes = sum(_size_bytes(w.shape, w.dtype) for w in weights)
    interm = 4 * (3 * bh * s * head_dim + 3 * bh * s * s
                  + heads * r * e + r * hidden + 6 * r * e)
    est = act_blocks + 2 * w_bytes + interm
    vmem_limit = int(min(max(2 * est, 32 * 1024 * 1024), 96 * 1024 * 1024))

    cost = pl.CostEstimate(
        flops=int(6 * n * heads * s * head_dim * head_dim
                  + 4 * n * heads * s * s * head_dim
                  + 2 * n * s * e * e
                  + 4 * n * s * e * hidden),
        transcendentals=int(n * heads * s * s + 3 * n * s),
        bytes_accessed=int(3 * _size_bytes((heads, n, s, head_dim), f32)
                           + _size_bytes((n, s, e), f32)
                           + _size_bytes(bias.shape, jnp.bfloat16)
                           + w_bytes
                           + _size_bytes((n, s, e), f32)),
    )

    kernel = functools.partial(transformer_block_kernel, heads, head_dim, matmul_dtype)

    def build(single_buffer_weights):
        def wspec(a):
            nd = a.ndim
            idx = lambda b, _nd=nd: (0,) * _nd
            if single_buffer_weights:
                # Constant index_map -> fetched once; keep a single VMEM copy.
                return pl.BlockSpec(a.shape, idx, pipeline_mode=pl.Buffered(1))
            return pl.BlockSpec(a.shape, idx)

        return pl.pallas_call(
            kernel,
            out_shape=jax.ShapeDtypeStruct((n, s, e), f32),
            grid=grid,
            in_specs=[head_spec, head_spec, head_spec, row_spec, bias_spec]
                     + [wspec(w) for w in weights],
            out_specs=row_spec,
            compiler_params=pltpu.CompilerParams(
                dimension_semantics=("parallel",),
                vmem_limit_bytes=vmem_limit,
            ),
            cost_estimate=cost,
        )

    args = (v_t, k_t, q_t, query, bias, *weights)
    try:
        return build(single_buffer_weights=True)(*args)
    except Exception:
        # pl.Buffered(1) not supported on this JAX version/backend: fall back
        # to default double-buffered weight blocks (correctness unaffected).
        return build(single_buffer_weights=False)(*args)


def reference(value, key, query, mask, params, heads):
    """Plain-JAX reference reproducing the PyTorch forward (eval mode)."""
    n, s, e = query.shape
    hd = e // heads
    v = value.reshape(n, s, heads, hd)
    k = key.reshape(n, s, heads, hd)
    q = query.reshape(n, s, heads, hd)
    v = jnp.einsum("nkhd,od->nkho", v, params["wv"])
    k = jnp.einsum("nkhd,od->nkho", k, params["wk"])
    q = jnp.einsum("nqhd,od->nqho", q, params["wq"])
    energy = jnp.einsum("nqhd,nkhd->nhqk", q, k)
    energy = jnp.where(mask[:, None, :, :] == 0.0, -1e20, energy)
    attn = jax.nn.softmax(energy / jnp.sqrt(jnp.float32(e)), axis=-1)
    out = jnp.einsum("nhqk,nkhd->nqhd", attn, v).reshape(n, s, e)
    out = out @ params["wo"].T + params["bo"]

    def ln(x, g, b, eps=1e-5):
        mu = jnp.mean(x, -1, keepdims=True)
        var = jnp.mean((x - mu) ** 2, -1, keepdims=True)
        return (x - mu) / jnp.sqrt(var + eps) * g + b

    x = ln(out + query, params["g1"], params["be1"])
    h1 = jnp.maximum(x @ params["w1"].T + params["bf1"], 0.0)
    ff = h1 @ params["w2"].T + params["bf2"]
    return ln(ff + x, params["g2"], params["be2"])


if __name__ == "__main__":
    # Small shapes consistent with the module.
    N, S, E = 4, 8, 32
    heads = 4
    forward_expansion = 2
    hd = E // heads
    H = forward_expansion * E

    root = jax.random.PRNGKey(0)
    ks = jax.random.split(root, 12)

    params = {
        "wv": jax.random.normal(ks[0], (hd, hd), jnp.float32) * 0.1,
        "wk": jax.random.normal(ks[1], (hd, hd), jnp.float32) * 0.1,
        "wq": jax.random.normal(ks[2], (hd, hd), jnp.float32) * 0.1,
        "wo": jax.random.normal(ks[3], (E, E), jnp.float32) * 0.1,
        "bo": jax.random.normal(ks[4], (E,), jnp.float32) * 0.1,
        "g1": jnp.ones((E,), jnp.float32),
        "be1": jnp.zeros((E,), jnp.float32),
        "w1": jax.random.normal(ks[5], (H, E), jnp.float32) * 0.1,
        "bf1": jax.random.normal(ks[6], (H,), jnp.float32) * 0.1,
        "w2": jax.random.normal(ks[7], (E, H), jnp.float32) * 0.1,
        "bf2": jax.random.normal(ks[8], (E,), jnp.float32) * 0.1,
        "g2": jnp.ones((E,), jnp.float32),
        "be2": jnp.zeros((E,), jnp.float32),
    }

    value = jax.random.normal(ks[9], (N, S, E), jnp.float32)
    key = jax.random.normal(ks[10], (N, S, E), jnp.float32)
    query = jax.random.normal(ks[11], (N, S, E), jnp.float32)

    # Causal mask shared across the batch -> (1, S, S), broadcast by BlockSpec.
    mask_shared = jnp.tril(jnp.ones((S, S), jnp.float32))[None]
    ref = reference(value, key, query, mask_shared, params, heads)

    # Exact-parity f32 matmul path (strict check).
    out = transformer_block(value, key, query, mask_shared, params, heads,
                            matmul_dtype=jnp.float32)
    out = jax.block_until_ready(out)
    np.testing.assert_allclose(np.asarray(out), np.asarray(ref), rtol=2e-3, atol=2e-3)

    # Per-batch (N, S, S) mask path.
    mask_full = jnp.broadcast_to(mask_shared, (N, S, S))
    out2 = transformer_block(value, key, query, mask_full, params, heads,
                             matmul_dtype=jnp.float32)
    out2 = jax.block_until_ready(out2)
    np.testing.assert_allclose(np.asarray(out2), np.asarray(ref), rtol=2e-3, atol=2e-3)

    # Default bf16 MXU path (v6e/v7x): reduced-precision, loose sanity check.
    out_bf16 = transformer_block(value, key, query, mask_shared, params, heads)
    out_bf16 = jax.block_until_ready(out_bf16)
    np.testing.assert_allclose(np.asarray(out_bf16), np.asarray(ref), rtol=1e-1, atol=1e-1)

    print("KERNEL_OK")
</pallas_src>

<mosaic_0001>
module attributes {stable_mosaic.version = 11 : i64} {
  func.func @transformer_block_kernel(%arg0: i32, %arg1: memref<4x2x8x8xf32, #tpu.memory_space<vmem>>, %arg2: memref<4x2x8x8xf32, #tpu.memory_space<vmem>>, %arg3: memref<4x2x8x8xf32, #tpu.memory_space<vmem>>, %arg4: memref<2x8x32xf32, #tpu.memory_space<vmem>>, %arg5: memref<1x8x8xbf16, #tpu.memory_space<vmem>>, %arg6: memref<8x8xf32, #tpu.memory_space<vmem>>, %arg7: memref<8x8xf32, #tpu.memory_space<vmem>>, %arg8: memref<8x8xf32, #tpu.memory_space<vmem>>, %arg9: memref<4x8x32xf32, #tpu.memory_space<vmem>>, %arg10: memref<1x32xf32, #tpu.memory_space<vmem>>, %arg11: memref<1x32xf32, #tpu.memory_space<vmem>>, %arg12: memref<1x32xf32, #tpu.memory_space<vmem>>, %arg13: memref<32x64xf32, #tpu.memory_space<vmem>>, %arg14: memref<1x64xf32, #tpu.memory_space<vmem>>, %arg15: memref<64x32xf32, #tpu.memory_space<vmem>>, %arg16: memref<1x32xf32, #tpu.memory_space<vmem>>, %arg17: memref<1x32xf32, #tpu.memory_space<vmem>>, %arg18: memref<1x32xf32, #tpu.memory_space<vmem>>, %arg19: memref<2x8x32xf32, #tpu.memory_space<vmem>>) attributes {dimension_semantics = [#tpu.dimension_semantics<parallel>], iteration_bounds = array<i64: 2>, scalar_prefetch = 0 : i64, scratch_operands = 0 : i64, tpu.core_type = #tpu.core_type<tc>, window_params = [{transform_indices = @transform_0, window_bounds = array<i64: 4, 2, 8, 8>}, {transform_indices = @transform_1, window_bounds = array<i64: 4, 2, 8, 8>}, {transform_indices = @transform_2, window_bounds = array<i64: 4, 2, 8, 8>}, {transform_indices = @transform_3, window_bounds = array<i64: 2, 8, 32>}, {pipeline_mode = #tpu.pipeline_mode<synchronous>, transform_indices = @transform_4, window_bounds = array<i64: 1, 8, 8>}, {pipeline_mode = #tpu.pipeline_mode<synchronous>, transform_indices = @transform_5, window_bounds = array<i64: 8, 8>}, {pipeline_mode = #tpu.pipeline_mode<synchronous>, transform_indices = @transform_6, window_bounds = array<i64: 8, 8>}, {pipeline_mode = #tpu.pipeline_mode<synchronous>, transform_indices = @transform_7, window_bounds = array<i64: 8, 8>}, {pipeline_mode = #tpu.pipeline_mode<synchronous>, transform_indices = @transform_8, window_bounds = array<i64: 4, 8, 32>}, {pipeline_mode = #tpu.pipeline_mode<synchronous>, transform_indices = @transform_9, window_bounds = array<i64: 1, 32>}, {pipeline_mode = #tpu.pipeline_mode<synchronous>, transform_indices = @transform_10, window_bounds = array<i64: 1, 32>}, {pipeline_mode = #tpu.pipeline_mode<synchronous>, transform_indices = @transform_11, window_bounds = array<i64: 1, 32>}, {pipeline_mode = #tpu.pipeline_mode<synchronous>, transform_indices = @transform_12, window_bounds = array<i64: 32, 64>}, {pipeline_mode = #tpu.pipeline_mode<synchronous>, transform_indices = @transform_13, window_bounds = array<i64: 1, 64>}, {pipeline_mode = #tpu.pipeline_mode<synchronous>, transform_indices = @transform_14, window_bounds = array<i64: 64, 32>}, {pipeline_mode = #tpu.pipeline_mode<synchronous>, transform_indices = @transform_15, window_bounds = array<i64: 1, 32>}, {pipeline_mode = #tpu.pipeline_mode<synchronous>, transform_indices = @transform_16, window_bounds = array<i64: 1, 32>}, {pipeline_mode = #tpu.pipeline_mode<synchronous>, transform_indices = @transform_17, window_bounds = array<i64: 1, 32>}, {transform_indices = @transform_18, window_bounds = array<i64: 2, 8, 32>}]} {
    %c0 = arith.constant 0 : index
    %c0_0 = arith.constant 0 : index
    %c0_1 = arith.constant 0 : index
    %c0_2 = arith.constant 0 : index
    %0 = vector.load %arg1[%c0, %c0_0, %c0_1, %c0_2] : memref<4x2x8x8xf32, #tpu.memory_space<vmem>>, vector<4x2x8x8xf32>
    %1 = vector.shape_cast %0 : vector<4x2x8x8xf32> to vector<64x8xf32>
    %c0_3 = arith.constant 0 : index
    %c0_4 = arith.constant 0 : index
    %2 = vector.load %arg6[%c0_3, %c0_4] : memref<8x8xf32, #tpu.memory_space<vmem>>, vector<8x8xf32>
    %cst = arith.constant dense<0.000000e+00> : vector<64x8xf32>
    %3 = tpu.matmul %1, %2, %cst {dimension_numbers = #tpu.dot_dimension_numbers<[1], [0], [0], [1], [0, 0, 1, 1], [], []>} : vector<64x8xf32>, vector<8x8xf32>, vector<64x8xf32> -> vector<64x8xf32>
    %4 = vector.shape_cast %3 : vector<64x8xf32> to vector<8x8x8xf32>
    %c0_5 = arith.constant 0 : index
    %c0_6 = arith.constant 0 : index
    %c0_7 = arith.constant 0 : index
    %c0_8 = arith.constant 0 : index
    %5 = vector.load %arg2[%c0_5, %c0_6, %c0_7, %c0_8] : memref<4x2x8x8xf32, #tpu.memory_space<vmem>>, vector<4x2x8x8xf32>
    %6 = vector.shape_cast %5 : vector<4x2x8x8xf32> to vector<64x8xf32>
    %c0_9 = arith.constant 0 : index
    %c0_10 = arith.constant 0 : index
    %7 = vector.load %arg7[%c0_9, %c0_10] : memref<8x8xf32, #tpu.memory_space<vmem>>, vector<8x8xf32>
    %cst_11 = arith.constant dense<0.000000e+00> : vector<64x8xf32>
    %8 = tpu.matmul %6, %7, %cst_11 {dimension_numbers = #tpu.dot_dimension_numbers<[1], [0], [0], [1], [0, 0, 1, 1], [], []>} : vector<64x8xf32>, vector<8x8xf32>, vector<64x8xf32> -> vector<64x8xf32>
    %9 = vector.shape_cast %8 : vector<64x8xf32> to vector<8x8x8xf32>
    %c0_12 = arith.constant 0 : index
    %c0_13 = arith.constant 0 : index
    %c0_14 = arith.constant 0 : index
    %c0_15 = arith.constant 0 : index
    %10 = vector.load %arg3[%c0_12, %c0_13, %c0_14, %c0_15] : memref<4x2x8x8xf32, #tpu.memory_space<vmem>>, vector<4x2x8x8xf32>
    %11 = vector.shape_cast %10 : vector<4x2x8x8xf32> to vector<64x8xf32>
    %c0_16 = arith.constant 0 : index
    %c0_17 = arith.constant 0 : index
    %12 = vector.load %arg8[%c0_16, %c0_17] : memref<8x8xf32, #tpu.memory_space<vmem>>, vector<8x8xf32>
    %cst_18 = arith.constant dense<0.000000e+00> : vector<64x8xf32>
    %13 = tpu.matmul %11, %12, %cst_18 {dimension_numbers = #tpu.dot_dimension_numbers<[1], [0], [0], [1], [0, 0, 1, 1], [], []>} : vector<64x8xf32>, vector<8x8xf32>, vector<64x8xf32> -> vector<64x8xf32>
    %14 = vector.shape_cast %13 : vector<64x8xf32> to vector<8x8x8xf32>
    "tpu.trace_start"() <{level = 10 : i32, message = "bqd,bkd->bqk"}> : () -> ()
    %cst_19 = arith.constant dense<0.000000e+00> : vector<8x8x8xf32>
    %15 = tpu.matmul %14, %9, %cst_19 {dimension_numbers = #tpu.dot_dimension_numbers<[2], [2], [1], [1], [0, 0, 0, 1, 1, 1], [0], [0]>} : vector<8x8x8xf32>, vector<8x8x8xf32>, vector<8x8x8xf32> -> vector<8x8x8xf32>
    "tpu.trace_stop"() : () -> ()
    %c0_20 = arith.constant 0 : index
    %c0_21 = arith.constant 0 : index
    %c0_22 = arith.constant 0 : index
    %16 = vector.load %arg5[%c0_20, %c0_21, %c0_22] : memref<1x8x8xbf16, #tpu.memory_space<vmem>>, vector<1x8x8xbf16>
    %17 = arith.extf %16 : vector<1x8x8xbf16> to vector<1x8x8xf32>
    %18 = vector.broadcast %17 : vector<1x8x8xf32> to vector<8x8x8xf32>
    %19 = arith.addf %15, %18 : vector<8x8x8xf32>
    %cst_23 = arith.constant dense<0xFF800000> : vector<8x8xf32>
    %20 = vector.multi_reduction <maximumf>, %19, %cst_23 [2] : vector<8x8x8xf32> to vector<8x8xf32>
    %21 = vector.shape_cast %20 : vector<8x8xf32> to vector<8x8x1xf32>
    %22 = vector.broadcast %21 : vector<8x8x1xf32> to vector<8x8x8xf32>
    %23 = arith.subf %19, %22 : vector<8x8x8xf32>
    %24 = math.exp %23 : vector<8x8x8xf32>
    %cst_24 = arith.constant dense<0.000000e+00> : vector<8x8xf32>
    %25 = vector.multi_reduction <add>, %24, %cst_24 [2] : vector<8x8x8xf32> to vector<8x8xf32>
    %26 = vector.shape_cast %25 : vector<8x8xf32> to vector<8x8x1xf32>
    %27 = tpu.reciprocal %26 {approx = true} : vector<8x8x1xf32> -> vector<8x8x1xf32>
    %28 = vector.broadcast %27 : vector<8x8x1xf32> to vector<8x8x8xf32>
    %29 = arith.mulf %24, %28 : vector<8x8x8xf32>
    "tpu.trace_start"() <{level = 10 : i32, message = "bqk,bkd->bqd"}> : () -> ()
    %cst_25 = arith.constant dense<0.000000e+00> : vector<8x8x8xf32>
    %30 = tpu.matmul %29, %4, %cst_25 {dimension_numbers = #tpu.dot_dimension_numbers<[2], [1], [1], [2], [0, 0, 0, 1, 1, 2], [0], [0]>} : vector<8x8x8xf32>, vector<8x8x8xf32>, vector<8x8x8xf32> -> vector<8x8x8xf32>
    "tpu.trace_stop"() : () -> ()
    %31 = vector.shape_cast %30 : vector<8x8x8xf32> to vector<4x16x8xf32>
    %c0_26 = arith.constant 0 : index
    %c0_27 = arith.constant 0 : index
    %c0_28 = arith.constant 0 : index
    %32 = vector.load %arg9[%c0_26, %c0_27, %c0_28] : memref<4x8x32xf32, #tpu.memory_space<vmem>>, vector<4x8x32xf32>
    "tpu.trace_start"() <{level = 10 : i32, message = "hrd,hdo->hro"}> : () -> ()
    %cst_29 = arith.constant dense<0.000000e+00> : vector<4x16x32xf32>
    %33 = tpu.matmul %31, %32, %cst_29 {dimension_numbers = #tpu.dot_dimension_numbers<[2], [1], [1], [2], [0, 0, 0, 1, 1, 2], [0], [0]>} : vector<4x16x8xf32>, vector<4x8x32xf32>, vector<4x16x32xf32> -> vector<4x16x32xf32>
    "tpu.trace_stop"() : () -> ()
    %cst_30 = arith.constant dense<0.000000e+00> : vector<16x32xf32>
    %34 = vector.multi_reduction <add>, %33, %cst_30 [0] : vector<4x16x32xf32> to vector<16x32xf32>
    %c0_31 = arith.constant 0 : index
    %c0_32 = arith.constant 0 : index
    %35 = vector.load %arg10[%c0_31, %c0_32] : memref<1x32xf32, #tpu.memory_space<vmem>>, vector<1x32xf32>
    %36 = vector.broadcast %35 : vector<1x32xf32> to vector<16x32xf32>
    %37 = arith.addf %34, %36 : vector<16x32xf32>
    %c0_33 = arith.constant 0 : index
    %c0_34 = arith.constant 0 : index
    %c0_35 = arith.constant 0 : index
    %38 = vector.load %arg4[%c0_33, %c0_34, %c0_35] : memref<2x8x32xf32, #tpu.memory_space<vmem>>, vector<2x8x32xf32>
    %39 = vector.shape_cast %38 : vector<2x8x32xf32> to vector<16x32xf32>
    %40 = arith.addf %37, %39 : vector<16x32xf32>
    %c0_36 = arith.constant 0 : index
    %c0_37 = arith.constant 0 : index
    %41 = vector.load %arg11[%c0_36, %c0_37] : memref<1x32xf32, #tpu.memory_space<vmem>>, vector<1x32xf32>
    %c0_38 = arith.constant 0 : index
    %c0_39 = arith.constant 0 : index
    %42 = vector.load %arg12[%c0_38, %c0_39] : memref<1x32xf32, #tpu.memory_space<vmem>>, vector<1x32xf32>
    %cst_40 = arith.constant dense<0.000000e+00> : vector<16xf32>
    %43 = vector.multi_reduction <add>, %40, %cst_40 [1] : vector<16x32xf32> to vector<16xf32>
    %44 = vector.shape_cast %43 : vector<16xf32> to vector<16x1xf32>
    %cst_41 = arith.constant 3.200000e+01 : f32
    %45 = vector.broadcast %cst_41 : f32 to vector<16x1xf32>
    %46 = arith.divf %44, %45 : vector<16x1xf32>
    %47 = vector.broadcast %46 : vector<16x1xf32> to vector<16x32xf32>
    %48 = arith.subf %40, %47 : vector<16x32xf32>
    %49 = arith.mulf %48, %48 : vector<16x32xf32>
    %cst_42 = arith.constant dense<0.000000e+00> : vector<16xf32>
    %50 = vector.multi_reduction <add>, %49, %cst_42 [1] : vector<16x32xf32> to vector<16xf32>
    %51 = vector.shape_cast %50 : vector<16xf32> to vector<16x1xf32>
    %cst_43 = arith.constant 3.200000e+01 : f32
    %52 = vector.broadcast %cst_43 : f32 to vector<16x1xf32>
    %53 = arith.divf %51, %52 : vector<16x1xf32>
    %54 = vector.broadcast %46 : vector<16x1xf32> to vector<16x32xf32>
    %55 = arith.subf %40, %54 : vector<16x32xf32>
    %cst_44 = arith.constant 9.99999974E-6 : f32
    %56 = vector.broadcast %cst_44 : f32 to vector<16x1xf32>
    %57 = arith.addf %53, %56 : vector<16x1xf32>
    %58 = math.rsqrt %57 : vector<16x1xf32>
    %59 = vector.broadcast %58 : vector<16x1xf32> to vector<16x32xf32>
    %60 = arith.mulf %55, %59 : vector<16x32xf32>
    %61 = vector.broadcast %41 : vector<1x32xf32> to vector<16x32xf32>
    %62 = arith.mulf %60, %61 : vector<16x32xf32>
    %63 = vector.broadcast %42 : vector<1x32xf32> to vector<16x32xf32>
    %64 = arith.addf %62, %63 : vector<16x32xf32>
    %c0_45 = arith.constant 0 : index
    %c0_46 = arith.constant 0 : index
    %65 = vector.load %arg13[%c0_45, %c0_46] : memref<32x64xf32, #tpu.memory_space<vmem>>, vector<32x64xf32>
    %cst_47 = arith.constant dense<0.000000e+00> : vector<16x64xf32>
    %66 = tpu.matmul %64, %65, %cst_47 {dimension_numbers = #tpu.dot_dimension_numbers<[1], [0], [0], [1], [0, 0, 1, 1], [], []>} : vector<16x32xf32>, vector<32x64xf32>, vector<16x64xf32> -> vector<16x64xf32>
    %c0_48 = arith.constant 0 : index
    %c0_49 = arith.constant 0 : index
    %67 = vector.load %arg14[%c0_48, %c0_49] : memref<1x64xf32, #tpu.memory_space<vmem>>, vector<1x64xf32>
    %68 = vector.broadcast %67 : vector<1x64xf32> to vector<16x64xf32>
    %69 = arith.addf %66, %68 : vector<16x64xf32>
    %cst_50 = arith.constant 0.000000e+00 : f32
    %70 = vector.broadcast %cst_50 : f32 to vector<16x64xf32>
    %71 = arith.maximumf %69, %70 : vector<16x64xf32>
    %c0_51 = arith.constant 0 : index
    %c0_52 = arith.constant 0 : index
    %72 = vector.load %arg15[%c0_51, %c0_52] : memref<64x32xf32, #tpu.memory_space<vmem>>, vector<64x32xf32>
    %cst_53 = arith.constant dense<0.000000e+00> : vector<16x32xf32>
    %73 = tpu.matmul %71, %72, %cst_53 {dimension_numbers = #tpu.dot_dimension_numbers<[1], [0], [0], [1], [0, 0, 1, 1], [], []>} : vector<16x64xf32>, vector<64x32xf32>, vector<16x32xf32> -> vector<16x32xf32>
    %c0_54 = arith.constant 0 : index
    %c0_55 = arith.constant 0 : index
    %74 = vector.load %arg16[%c0_54, %c0_55] : memref<1x32xf32, #tpu.memory_space<vmem>>, vector<1x32xf32>
    %75 = vector.broadcast %74 : vector<1x32xf32> to vector<16x32xf32>
    %76 = arith.addf %73, %75 : vector<16x32xf32>
    %77 = arith.addf %76, %64 : vector<16x32xf32>
    %c0_56 = arith.constant 0 : index
    %c0_57 = arith.constant 0 : index
    %78 = vector.load %arg17[%c0_56, %c0_57] : memref<1x32xf32, #tpu.memory_space<vmem>>, vector<1x32xf32>
    %c0_58 = arith.constant 0 : index
    %c0_59 = arith.constant 0 : index
    %79 = vector.load %arg18[%c0_58, %c0_59] : memref<1x32xf32, #tpu.memory_space<vmem>>, vector<1x32xf32>
    %cst_60 = arith.constant dense<0.000000e+00> : vector<16xf32>
    %80 = vector.multi_reduction <add>, %77, %cst_60 [1] : vector<16x32xf32> to vector<16xf32>
    %81 = vector.shape_cast %80 : vector<16xf32> to vector<16x1xf32>
    %cst_61 = arith.constant 3.200000e+01 : f32
    %82 = vector.broadcast %cst_61 : f32 to vector<16x1xf32>
    %83 = arith.divf %81, %82 : vector<16x1xf32>
    %84 = vector.broadcast %83 : vector<16x1xf32> to vector<16x32xf32>
    %85 = arith.subf %77, %84 : vector<16x32xf32>
    %86 = arith.mulf %85, %85 : vector<16x32xf32>
    %cst_62 = arith.constant dense<0.000000e+00> : vector<16xf32>
    %87 = vector.multi_reduction <add>, %86, %cst_62 [1] : vector<16x32xf32> to vector<16xf32>
    %88 = vector.shape_cast %87 : vector<16xf32> to vector<16x1xf32>
    %cst_63 = arith.constant 3.200000e+01 : f32
    %89 = vector.broadcast %cst_63 : f32 to vector<16x1xf32>
    %90 = arith.divf %88, %89 : vector<16x1xf32>
    %91 = vector.broadcast %83 : vector<16x1xf32> to vector<16x32xf32>
    %92 = arith.subf %77, %91 : vector<16x32xf32>
    %cst_64 = arith.constant 9.99999974E-6 : f32
    %93 = vector.broadcast %cst_64 : f32 to vector<16x1xf32>
    %94 = arith.addf %90, %93 : vector<16x1xf32>
    %95 = math.rsqrt %94 : vector<16x1xf32>
    %96 = vector.broadcast %95 : vector<16x1xf32> to vector<16x32xf32>
    %97 = arith.mulf %92, %96 : vector<16x32xf32>
    %98 = vector.broadcast %78 : vector<1x32xf32> to vector<16x32xf32>
    %99 = arith.mulf %97, %98 : vector<16x32xf32>
    %100 = vector.broadcast %79 : vector<1x32xf32> to vector<16x32xf32>
    %101 = arith.addf %99, %100 : vector<16x32xf32>
    %102 = vector.shape_cast %101 : vector<16x32xf32> to vector<2x8x32xf32>
    %c0_65 = arith.constant 0 : index
    %c0_66 = arith.constant 0 : index
    %c0_67 = arith.constant 0 : index
    %103 = vector.load %arg19[%c0_65, %c0_66, %c0_67] : memref<2x8x32xf32, #tpu.memory_space<vmem>>, vector<2x8x32xf32>
    tpu.vector_store %arg19[%c0_65, %c0_66, %c0_67], %102 {strides = array<i32>} : memref<2x8x32xf32, #tpu.memory_space<vmem>>, vector<2x8x32xf32>,
    return
  }
  func.func @transform_0(%arg0: i32) -> (i32, i32, i32, i32) {
    %c0_i32 = arith.constant 0 : i32
    %c0_i32_0 = arith.constant 0 : i32
    %c0_i32_1 = arith.constant 0 : i32
    %c0_i32_2 = arith.constant 0 : i32
    return %c0_i32, %arg0, %c0_i32_0, %c0_i32_1 : i32, i32, i32, i32
  }
  func.func @transform_1(%arg0: i32) -> (i32, i32, i32, i32) {
    %c0_i32 = arith.constant 0 : i32
    %c0_i32_0 = arith.constant 0 : i32
    %c0_i32_1 = arith.constant 0 : i32
    %c0_i32_2 = arith.constant 0 : i32
    return %c0_i32, %arg0, %c0_i32_0, %c0_i32_1 : i32, i32, i32, i32
  }
  func.func @transform_2(%arg0: i32) -> (i32, i32, i32, i32) {
    %c0_i32 = arith.constant 0 : i32
    %c0_i32_0 = arith.constant 0 : i32
    %c0_i32_1 = arith.constant 0 : i32
    %c0_i32_2 = arith.constant 0 : i32
    return %c0_i32, %arg0, %c0_i32_0, %c0_i32_1 : i32, i32, i32, i32
  }
  func.func @transform_3(%arg0: i32) -> (i32, i32, i32) {
    %c0_i32 = arith.constant 0 : i32
    %c0_i32_0 = arith.constant 0 : i32
    %c0_i32_1 = arith.constant 0 : i32
    return %arg0, %c0_i32, %c0_i32_0 : i32, i32, i32
  }
  func.func @transform_4(%arg0: i32) -> (i32, i32, i32) {
    %c0_i32 = arith.constant 0 : i32
    %c0_i32_0 = arith.constant 0 : i32
    %c0_i32_1 = arith.constant 0 : i32
    %c0_i32_2 = arith.constant 0 : i32
    return %c0_i32, %c0_i32_0, %c0_i32_1 : i32, i32, i32
  }
  func.func @transform_5(%arg0: i32) -> (i32, i32) {
    %c0_i32 = arith.constant 0 : i32
    %c0_i32_0 = arith.constant 0 : i32
    %c0_i32_1 = arith.constant 0 : i32
    return %c0_i32, %c0_i32_0 : i32, i32
  }
  func.func @transform_6(%arg0: i32) -> (i32, i32) {
    %c0_i32 = arith.constant 0 : i32
    %c0_i32_0 = arith.constant 0 : i32
    %c0_i32_1 = arith.constant 0 : i32
    return %c0_i32, %c0_i32_0 : i32, i32
  }
  func.func @transform_7(%arg0: i32) -> (i32, i32) {
    %c0_i32 = arith.constant 0 : i32
    %c0_i32_0 = arith.constant 0 : i32
    %c0_i32_1 = arith.constant 0 : i32
    return %c0_i32, %c0_i32_0 : i32, i32
  }
  func.func @transform_8(%arg0: i32) -> (i32, i32, i32) {
    %c0_i32 = arith.constant 0 : i32
    %c0_i32_0 = arith.constant 0 : i32
    %c0_i32_1 = arith.constant 0 : i32
    %c0_i32_2 = arith.constant 0 : i32
    return %c0_i32, %c0_i32_0, %c0_i32_1 : i32, i32, i32
  }
  func.func @transform_9(%arg0: i32) -> (i32, i32) {
    %c0_i32 = arith.constant 0 : i32
    %c0_i32_0 = arith.constant 0 : i32
    %c0_i32_1 = arith.constant 0 : i32
    return %c0_i32, %c0_i32_0 : i32, i32
  }
  func.func @transform_10(%arg0: i32) -> (i32, i32) {
    %c0_i32 = arith.constant 0 : i32
    %c0_i32_0 = arith.constant 0 : i32
    %c0_i32_1 = arith.constant 0 : i32
    return %c0_i32, %c0_i32_0 : i32, i32
  }
  func.func @transform_11(%arg0: i32) -> (i32, i32) {
    %c0_i32 = arith.constant 0 : i32
    %c0_i32_0 = arith.constant 0 : i32
    %c0_i32_1 = arith.constant 0 : i32
    return %c0_i32, %c0_i32_0 : i32, i32
  }
  func.func @transform_12(%arg0: i32) -> (i32, i32) {
    %c0_i32 = arith.constant 0 : i32
    %c0_i32_0 = arith.constant 0 : i32
    %c0_i32_1 = arith.constant 0 : i32
    return %c0_i32, %c0_i32_0 : i32, i32
  }
  func.func @transform_13(%arg0: i32) -> (i32, i32) {
    %c0_i32 = arith.constant 0 : i32
    %c0_i32_0 = arith.constant 0 : i32
    %c0_i32_1 = arith.constant 0 : i32
    return %c0_i32, %c0_i32_0 : i32, i32
  }
  func.func @transform_14(%arg0: i32) -> (i32, i32) {
    %c0_i32 = arith.constant 0 : i32
    %c0_i32_0 = arith.constant 0 : i32
    %c0_i32_1 = arith.constant 0 : i32
    return %c0_i32, %c0_i32_0 : i32, i32
  }
  func.func @transform_15(%arg0: i32) -> (i32, i32) {
    %c0_i32 = arith.constant 0 : i32
    %c0_i32_0 = arith.constant 0 : i32
    %c0_i32_1 = arith.constant 0 : i32
    return %c0_i32, %c0_i32_0 : i32, i32
  }
  func.func @transform_16(%arg0: i32) -> (i32, i32) {
    %c0_i32 = arith.constant 0 : i32
    %c0_i32_0 = arith.constant 0 : i32
    %c0_i32_1 = arith.constant 0 : i32
    return %c0_i32, %c0_i32_0 : i32, i32
  }
  func.func @transform_17(%arg0: i32) -> (i32, i32) {
    %c0_i32 = arith.constant 0 : i32
    %c0_i32_0 = arith.constant 0 : i32
    %c0_i32_1 = arith.constant 0 : i32
    return %c0_i32, %c0_i32_0 : i32, i32
  }
  func.func @transform_18(%arg0: i32) -> (i32, i32, i32) {
    %c0_i32 = arith.constant 0 : i32
    %c0_i32_0 = arith.constant 0 : i32
    %c0_i32_1 = arith.constant 0 : i32
    return %arg0, %c0_i32, %c0_i32_0 : i32, i32, i32
  }
}

module attributes {stable_mosaic.version = 11 : i64} {
  func.func @transformer_block_kernel(%arg0: i32, %arg1: memref<4x2x8x8xf32, #tpu.memory_space<vmem>>, %arg2: memref<4x2x8x8xf32, #tpu.memory_space<vmem>>, %arg3: memref<4x2x8x8xf32, #tpu.memory_space<vmem>>, %arg4: memref<2x8x32xf32, #tpu.memory_space<vmem>>, %arg5: memref<1x8x8xbf16, #tpu.memory_space<vmem>>, %arg6: memref<8x8xf32, #tpu.memory_space<vmem>>, %arg7: memref<8x8xf32, #tpu.memory_space<vmem>>, %arg8: memref<8x8xf32, #tpu.memory_space<vmem>>, %arg9: memref<4x8x32xf32, #tpu.memory_space<vmem>>, %arg10: memref<1x32xf32, #tpu.memory_space<vmem>>, %arg11: memref<1x32xf32, #tpu.memory_space<vmem>>, %arg12: memref<1x32xf32, #tpu.memory_space<vmem>>, %arg13: memref<32x64xf32, #tpu.memory_space<vmem>>, %arg14: memref<1x64xf32, #tpu.memory_space<vmem>>, %arg15: memref<64x32xf32, #tpu.memory_space<vmem>>, %arg16: memref<1x32xf32, #tpu.memory_space<vmem>>, %arg17: memref<1x32xf32, #tpu.memory_space<vmem>>, %arg18: memref<1x32xf32, #tpu.memory_space<vmem>>, %arg19: memref<2x8x32xf32, #tpu.memory_space<vmem>>) attributes {dimension_semantics = [#tpu.dimension_semantics<parallel>], iteration_bounds = array<i64: 2>, scalar_prefetch = 0 : i64, scratch_operands = 0 : i64, tpu.core_type = #tpu.core_type<tc>, window_params = [{transform_indices = @transform_0, window_bounds = array<i64: 4, 2, 8, 8>}, {transform_indices = @transform_1, window_bounds = array<i64: 4, 2, 8, 8>}, {transform_indices = @transform_2, window_bounds = array<i64: 4, 2, 8, 8>}, {transform_indices = @transform_3, window_bounds = array<i64: 2, 8, 32>}, {pipeline_mode = #tpu.pipeline_mode<synchronous>, transform_indices = @transform_4, window_bounds = array<i64: 1, 8, 8>}, {pipeline_mode = #tpu.pipeline_mode<synchronous>, transform_indices = @transform_5, window_bounds = array<i64: 8, 8>}, {pipeline_mode = #tpu.pipeline_mode<synchronous>, transform_indices = @transform_6, window_bounds = array<i64: 8, 8>}, {pipeline_mode = #tpu.pipeline_mode<synchronous>, transform_indices = @transform_7, window_bounds = array<i64: 8, 8>}, {pipeline_mode = #tpu.pipeline_mode<synchronous>, transform_indices = @transform_8, window_bounds = array<i64: 4, 8, 32>}, {pipeline_mode = #tpu.pipeline_mode<synchronous>, transform_indices = @transform_9, window_bounds = array<i64: 1, 32>}, {pipeline_mode = #tpu.pipeline_mode<synchronous>, transform_indices = @transform_10, window_bounds = array<i64: 1, 32>}, {pipeline_mode = #tpu.pipeline_mode<synchronous>, transform_indices = @transform_11, window_bounds = array<i64: 1, 32>}, {pipeline_mode = #tpu.pipeline_mode<synchronous>, transform_indices = @transform_12, window_bounds = array<i64: 32, 64>}, {pipeline_mode = #tpu.pipeline_mode<synchronous>, transform_indices = @transform_13, window_bounds = array<i64: 1, 64>}, {pipeline_mode = #tpu.pipeline_mode<synchronous>, transform_indices = @transform_14, window_bounds = array<i64: 64, 32>}, {pipeline_mode = #tpu.pipeline_mode<synchronous>, transform_indices = @transform_15, window_bounds = array<i64: 1, 32>}, {pipeline_mode = #tpu.pipeline_mode<synchronous>, transform_indices = @transform_16, window_bounds = array<i64: 1, 32>}, {pipeline_mode = #tpu.pipeline_mode<synchronous>, transform_indices = @transform_17, window_bounds = array<i64: 1, 32>}, {transform_indices = @transform_18, window_bounds = array<i64: 2, 8, 32>}]} {
    %c0 = arith.constant 0 : index
    %c0_0 = arith.constant 0 : index
    %c0_1 = arith.constant 0 : index
    %c0_2 = arith.constant 0 : index
    %0 = vector.load %arg1[%c0, %c0_0, %c0_1, %c0_2] : memref<4x2x8x8xf32, #tpu.memory_space<vmem>>, vector<4x2x8x8xf32>
    %1 = vector.shape_cast %0 : vector<4x2x8x8xf32> to vector<64x8xf32>
    %c0_3 = arith.constant 0 : index
    %c0_4 = arith.constant 0 : index
    %2 = vector.load %arg6[%c0_3, %c0_4] : memref<8x8xf32, #tpu.memory_space<vmem>>, vector<8x8xf32>
    %cst = arith.constant dense<0.000000e+00> : vector<64x8xf32>
    %3 = tpu.matmul %1, %2, %cst {dimension_numbers = #tpu.dot_dimension_numbers<[1], [0], [0], [1], [0, 0, 1, 1], [], []>} : vector<64x8xf32>, vector<8x8xf32>, vector<64x8xf32> -> vector<64x8xf32>
    %4 = vector.shape_cast %3 : vector<64x8xf32> to vector<8x8x8xf32>
    %c0_5 = arith.constant 0 : index
    %c0_6 = arith.constant 0 : index
    %c0_7 = arith.constant 0 : index
    %c0_8 = arith.constant 0 : index
    %5 = vector.load %arg2[%c0_5, %c0_6, %c0_7, %c0_8] : memref<4x2x8x8xf32, #tpu.memory_space<vmem>>, vector<4x2x8x8xf32>
    %6 = vector.shape_cast %5 : vector<4x2x8x8xf32> to vector<64x8xf32>
    %c0_9 = arith.constant 0 : index
    %c0_10 = arith.constant 0 : index
    %7 = vector.load %arg7[%c0_9, %c0_10] : memref<8x8xf32, #tpu.memory_space<vmem>>, vector<8x8xf32>
    %cst_11 = arith.constant dense<0.000000e+00> : vector<64x8xf32>
    %8 = tpu.matmul %6, %7, %cst_11 {dimension_numbers = #tpu.dot_dimension_numbers<[1], [0], [0], [1], [0, 0, 1, 1], [], []>} : vector<64x8xf32>, vector<8x8xf32>, vector<64x8xf32> -> vector<64x8xf32>
    %9 = vector.shape_cast %8 : vector<64x8xf32> to vector<8x8x8xf32>
    %c0_12 = arith.constant 0 : index
    %c0_13 = arith.constant 0 : index
    %c0_14 = arith.constant 0 : index
    %c0_15 = arith.constant 0 : index
    %10 = vector.load %arg3[%c0_12, %c0_13, %c0_14, %c0_15] : memref<4x2x8x8xf32, #tpu.memory_space<vmem>>, vector<4x2x8x8xf32>
    %11 = vector.shape_cast %10 : vector<4x2x8x8xf32> to vector<64x8xf32>
    %c0_16 = arith.constant 0 : index
    %c0_17 = arith.constant 0 : index
    %12 = vector.load %arg8[%c0_16, %c0_17] : memref<8x8xf32, #tpu.memory_space<vmem>>, vector<8x8xf32>
    %cst_18 = arith.constant dense<0.000000e+00> : vector<64x8xf32>
    %13 = tpu.matmul %11, %12, %cst_18 {dimension_numbers = #tpu.dot_dimension_numbers<[1], [0], [0], [1], [0, 0, 1, 1], [], []>} : vector<64x8xf32>, vector<8x8xf32>, vector<64x8xf32> -> vector<64x8xf32>
    %14 = vector.shape_cast %13 : vector<64x8xf32> to vector<8x8x8xf32>
    "tpu.trace_start"() <{level = 10 : i32, message = "bqd,bkd->bqk"}> : () -> ()
    %cst_19 = arith.constant dense<0.000000e+00> : vector<8x8x8xf32>
    %15 = tpu.matmul %14, %9, %cst_19 {dimension_numbers = #tpu.dot_dimension_numbers<[2], [2], [1], [1], [0, 0, 0, 1, 1, 1], [0], [0]>} : vector<8x8x8xf32>, vector<8x8x8xf32>, vector<8x8x8xf32> -> vector<8x8x8xf32>
    "tpu.trace_stop"() : () -> ()
    %c0_20 = arith.constant 0 : index
    %c0_21 = arith.constant 0 : index
    %c0_22 = arith.constant 0 : index
    %16 = vector.load %arg5[%c0_20, %c0_21, %c0_22] : memref<1x8x8xbf16, #tpu.memory_space<vmem>>, vector<1x8x8xbf16>
    %17 = arith.extf %16 : vector<1x8x8xbf16> to vector<1x8x8xf32>
    %18 = vector.broadcast %17 : vector<1x8x8xf32> to vector<8x8x8xf32>
    %19 = arith.addf %15, %18 : vector<8x8x8xf32>
    %cst_23 = arith.constant dense<0xFF800000> : vector<8x8xf32>
    %20 = vector.multi_reduction <maximumf>, %19, %cst_23 [2] : vector<8x8x8xf32> to vector<8x8xf32>
    %21 = vector.shape_cast %20 : vector<8x8xf32> to vector<8x8x1xf32>
    %22 = vector.broadcast %21 : vector<8x8x1xf32> to vector<8x8x8xf32>
    %23 = arith.subf %19, %22 : vector<8x8x8xf32>
    %24 = math.exp %23 : vector<8x8x8xf32>
    %cst_24 = arith.constant dense<0.000000e+00> : vector<8x8xf32>
    %25 = vector.multi_reduction <add>, %24, %cst_24 [2] : vector<8x8x8xf32> to vector<8x8xf32>
    %26 = vector.shape_cast %25 : vector<8x8xf32> to vector<8x8x1xf32>
    %27 = tpu.reciprocal %26 {approx = true} : vector<8x8x1xf32> -> vector<8x8x1xf32>
    %28 = vector.broadcast %27 : vector<8x8x1xf32> to vector<8x8x8xf32>
    %29 = arith.mulf %24, %28 : vector<8x8x8xf32>
    "tpu.trace_start"() <{level = 10 : i32, message = "bqk,bkd->bqd"}> : () -> ()
    %cst_25 = arith.constant dense<0.000000e+00> : vector<8x8x8xf32>
    %30 = tpu.matmul %29, %4, %cst_25 {dimension_numbers = #tpu.dot_dimension_numbers<[2], [1], [1], [2], [0, 0, 0, 1, 1, 2], [0], [0]>} : vector<8x8x8xf32>, vector<8x8x8xf32>, vector<8x8x8xf32> -> vector<8x8x8xf32>
    "tpu.trace_stop"() : () -> ()
    %31 = vector.shape_cast %30 : vector<8x8x8xf32> to vector<4x16x8xf32>
    %c0_26 = arith.constant 0 : index
    %c0_27 = arith.constant 0 : index
    %c0_28 = arith.constant 0 : index
    %32 = vector.load %arg9[%c0_26, %c0_27, %c0_28] : memref<4x8x32xf32, #tpu.memory_space<vmem>>, vector<4x8x32xf32>
    "tpu.trace_start"() <{level = 10 : i32, message = "hrd,hdo->hro"}> : () -> ()
    %cst_29 = arith.constant dense<0.000000e+00> : vector<4x16x32xf32>
    %33 = tpu.matmul %31, %32, %cst_29 {dimension_numbers = #tpu.dot_dimension_numbers<[2], [1], [1], [2], [0, 0, 0, 1, 1, 2], [0], [0]>} : vector<4x16x8xf32>, vector<4x8x32xf32>, vector<4x16x32xf32> -> vector<4x16x32xf32>
    "tpu.trace_stop"() : () -> ()
    %cst_30 = arith.constant dense<0.000000e+00> : vector<16x32xf32>
    %34 = vector.multi_reduction <add>, %33, %cst_30 [0] : vector<4x16x32xf32> to vector<16x32xf32>
    %c0_31 = arith.constant 0 : index
    %c0_32 = arith.constant 0 : index
    %35 = vector.load %arg10[%c0_31, %c0_32] : memref<1x32xf32, #tpu.memory_space<vmem>>, vector<1x32xf32>
    %36 = vector.broadcast %35 : vector<1x32xf32> to vector<16x32xf32>
    %37 = arith.addf %34, %36 : vector<16x32xf32>
    %c0_33 = arith.constant 0 : index
    %c0_34 = arith.constant 0 : index
    %c0_35 = arith.constant 0 : index
    %38 = vector.load %arg4[%c0_33, %c0_34, %c0_35] : memref<2x8x32xf32, #tpu.memory_space<vmem>>, vector<2x8x32xf32>
    %39 = vector.shape_cast %38 : vector<2x8x32xf32> to vector<16x32xf32>
    %40 = arith.addf %37, %39 : vector<16x32xf32>
    %c0_36 = arith.constant 0 : index
    %c0_37 = arith.constant 0 : index
    %41 = vector.load %arg11[%c0_36, %c0_37] : memref<1x32xf32, #tpu.memory_space<vmem>>, vector<1x32xf32>
    %c0_38 = arith.constant 0 : index
    %c0_39 = arith.constant 0 : index
    %42 = vector.load %arg12[%c0_38, %c0_39] : memref<1x32xf32, #tpu.memory_space<vmem>>, vector<1x32xf32>
    %cst_40 = arith.constant dense<0.000000e+00> : vector<16xf32>
    %43 = vector.multi_reduction <add>, %40, %cst_40 [1] : vector<16x32xf32> to vector<16xf32>
    %44 = vector.shape_cast %43 : vector<16xf32> to vector<16x1xf32>
    %cst_41 = arith.constant 3.200000e+01 : f32
    %45 = vector.broadcast %cst_41 : f32 to vector<16x1xf32>
    %46 = arith.divf %44, %45 : vector<16x1xf32>
    %47 = vector.broadcast %46 : vector<16x1xf32> to vector<16x32xf32>
    %48 = arith.subf %40, %47 : vector<16x32xf32>
    %49 = arith.mulf %48, %48 : vector<16x32xf32>
    %cst_42 = arith.constant dense<0.000000e+00> : vector<16xf32>
    %50 = vector.multi_reduction <add>, %49, %cst_42 [1] : vector<16x32xf32> to vector<16xf32>
    %51 = vector.shape_cast %50 : vector<16xf32> to vector<16x1xf32>
    %cst_43 = arith.constant 3.200000e+01 : f32
    %52 = vector.broadcast %cst_43 : f32 to vector<16x1xf32>
    %53 = arith.divf %51, %52 : vector<16x1xf32>
    %54 = vector.broadcast %46 : vector<16x1xf32> to vector<16x32xf32>
    %55 = arith.subf %40, %54 : vector<16x32xf32>
    %cst_44 = arith.constant 9.99999974E-6 : f32
    %56 = vector.broadcast %cst_44 : f32 to vector<16x1xf32>
    %57 = arith.addf %53, %56 : vector<16x1xf32>
    %58 = math.rsqrt %57 : vector<16x1xf32>
    %59 = vector.broadcast %58 : vector<16x1xf32> to vector<16x32xf32>
    %60 = arith.mulf %55, %59 : vector<16x32xf32>
    %61 = vector.broadcast %41 : vector<1x32xf32> to vector<16x32xf32>
    %62 = arith.mulf %60, %61 : vector<16x32xf32>
    %63 = vector.broadcast %42 : vector<1x32xf32> to vector<16x32xf32>
    %64 = arith.addf %62, %63 : vector<16x32xf32>
    %c0_45 = arith.constant 0 : index
    %c0_46 = arith.constant 0 : index
    %65 = vector.load %arg13[%c0_45, %c0_46] : memref<32x64xf32, #tpu.memory_space<vmem>>, vector<32x64xf32>
    %cst_47 = arith.constant dense<0.000000e+00> : vector<16x64xf32>
    %66 = tpu.matmul %64, %65, %cst_47 {dimension_numbers = #tpu.dot_dimension_numbers<[1], [0], [0], [1], [0, 0, 1, 1], [], []>} : vector<16x32xf32>, vector<32x64xf32>, vector<16x64xf32> -> vector<16x64xf32>
    %c0_48 = arith.constant 0 : index
    %c0_49 = arith.constant 0 : index
    %67 = vector.load %arg14[%c0_48, %c0_49] : memref<1x64xf32, #tpu.memory_space<vmem>>, vector<1x64xf32>
    %68 = vector.broadcast %67 : vector<1x64xf32> to vector<16x64xf32>
    %69 = arith.addf %66, %68 : vector<16x64xf32>
    %cst_50 = arith.constant 0.000000e+00 : f32
    %70 = vector.broadcast %cst_50 : f32 to vector<16x64xf32>
    %71 = arith.maximumf %69, %70 : vector<16x64xf32>
    %c0_51 = arith.constant 0 : index
    %c0_52 = arith.constant 0 : index
    %72 = vector.load %arg15[%c0_51, %c0_52] : memref<64x32xf32, #tpu.memory_space<vmem>>, vector<64x32xf32>
    %cst_53 = arith.constant dense<0.000000e+00> : vector<16x32xf32>
    %73 = tpu.matmul %71, %72, %cst_53 {dimension_numbers = #tpu.dot_dimension_numbers<[1], [0], [0], [1], [0, 0, 1, 1], [], []>} : vector<16x64xf32>, vector<64x32xf32>, vector<16x32xf32> -> vector<16x32xf32>
    %c0_54 = arith.constant 0 : index
    %c0_55 = arith.constant 0 : index
    %74 = vector.load %arg16[%c0_54, %c0_55] : memref<1x32xf32, #tpu.memory_space<vmem>>, vector<1x32xf32>
    %75 = vector.broadcast %74 : vector<1x32xf32> to vector<16x32xf32>
    %76 = arith.addf %73, %75 : vector<16x32xf32>
    %77 = arith.addf %76, %64 : vector<16x32xf32>
    %c0_56 = arith.constant 0 : index
    %c0_57 = arith.constant 0 : index
    %78 = vector.load %arg17[%c0_56, %c0_57] : memref<1x32xf32, #tpu.memory_space<vmem>>, vector<1x32xf32>
    %c0_58 = arith.constant 0 : index
    %c0_59 = arith.constant 0 : index
    %79 = vector.load %arg18[%c0_58, %c0_59] : memref<1x32xf32, #tpu.memory_space<vmem>>, vector<1x32xf32>
    %cst_60 = arith.constant dense<0.000000e+00> : vector<16xf32>
    %80 = vector.multi_reduction <add>, %77, %cst_60 [1] : vector<16x32xf32> to vector<16xf32>
    %81 = vector.shape_cast %80 : vector<16xf32> to vector<16x1xf32>
    %cst_61 = arith.constant 3.200000e+01 : f32
    %82 = vector.broadcast %cst_61 : f32 to vector<16x1xf32>
    %83 = arith.divf %81, %82 : vector<16x1xf32>
    %84 = vector.broadcast %83 : vector<16x1xf32> to vector<16x32xf32>
    %85 = arith.subf %77, %84 : vector<16x32xf32>
    %86 = arith.mulf %85, %85 : vector<16x32xf32>
    %cst_62 = arith.constant dense<0.000000e+00> : vector<16xf32>
    %87 = vector.multi_reduction <add>, %86, %cst_62 [1] : vector<16x32xf32> to vector<16xf32>
    %88 = vector.shape_cast %87 : vector<16xf32> to vector<16x1xf32>
    %cst_63 = arith.constant 3.200000e+01 : f32
    %89 = vector.broadcast %cst_63 : f32 to vector<16x1xf32>
    %90 = arith.divf %88, %89 : vector<16x1xf32>
    %91 = vector.broadcast %83 : vector<16x1xf32> to vector<16x32xf32>
    %92 = arith.subf %77, %91 : vector<16x32xf32>
    %cst_64 = arith.constant 9.99999974E-6 : f32
    %93 = vector.broadcast %cst_64 : f32 to vector<16x1xf32>
    %94 = arith.addf %90, %93 : vector<16x1xf32>
    %95 = math.rsqrt %94 : vector<16x1xf32>
    %96 = vector.broadcast %95 : vector<16x1xf32> to vector<16x32xf32>
    %97 = arith.mulf %92, %96 : vector<16x32xf32>
    %98 = vector.broadcast %78 : vector<1x32xf32> to vector<16x32xf32>
    %99 = arith.mulf %97, %98 : vector<16x32xf32>
    %100 = vector.broadcast %79 : vector<1x32xf32> to vector<16x32xf32>
    %101 = arith.addf %99, %100 : vector<16x32xf32>
    %102 = vector.shape_cast %101 : vector<16x32xf32> to vector<2x8x32xf32>
    %c0_65 = arith.constant 0 : index
    %c0_66 = arith.constant 0 : index
    %c0_67 = arith.constant 0 : index
    %103 = vector.load %arg19[%c0_65, %c0_66, %c0_67] : memref<2x8x32xf32, #tpu.memory_space<vmem>>, vector<2x8x32xf32>
    tpu.vector_store %arg19[%c0_65, %c0_66, %c0_67], %102 {strides = array<i32>} : memref<2x8x32xf32, #tpu.memory_space<vmem>>, vector<2x8x32xf32>,
    return
  }
  func.func @transform_0(%arg0: i32) -> (i32, i32, i32, i32) {
    %c0_i32 = arith.constant 0 : i32
    %c0_i32_0 = arith.constant 0 : i32
    %c0_i32_1 = arith.constant 0 : i32
    %c0_i32_2 = arith.constant 0 : i32
    return %c0_i32, %arg0, %c0_i32_0, %c0_i32_1 : i32, i32, i32, i32
  }
  func.func @transform_1(%arg0: i32) -> (i32, i32, i32, i32) {
    %c0_i32 = arith.constant 0 : i32
    %c0_i32_0 = arith.constant 0 : i32
    %c0_i32_1 = arith.constant 0 : i32
    %c0_i32_2 = arith.constant 0 : i32
    return %c0_i32, %arg0, %c0_i32_0, %c0_i32_1 : i32, i32, i32, i32
  }
  func.func @transform_2(%arg0: i32) -> (i32, i32, i32, i32) {
    %c0_i32 = arith.constant 0 : i32
    %c0_i32_0 = arith.constant 0 : i32
    %c0_i32_1 = arith.constant 0 : i32
    %c0_i32_2 = arith.constant 0 : i32
    return %c0_i32, %arg0, %c0_i32_0, %c0_i32_1 : i32, i32, i32, i32
  }
  func.func @transform_3(%arg0: i32) -> (i32, i32, i32) {
    %c0_i32 = arith.constant 0 : i32
    %c0_i32_0 = arith.constant 0 : i32
    %c0_i32_1 = arith.constant 0 : i32
    return %arg0, %c0_i32, %c0_i32_0 : i32, i32, i32
  }
  func.func @transform_4(%arg0: i32) -> (i32, i32, i32) {
    %c0_i32 = arith.constant 0 : i32
    %c0_i32_0 = arith.constant 0 : i32
    %c0_i32_1 = arith.constant 0 : i32
    %c0_i32_2 = arith.constant 0 : i32
    return %c0_i32, %c0_i32_0, %c0_i32_1 : i32, i32, i32
  }
  func.func @transform_5(%arg0: i32) -> (i32, i32) {
    %c0_i32 = arith.constant 0 : i32
    %c0_i32_0 = arith.constant 0 : i32
    %c0_i32_1 = arith.constant 0 : i32
    return %c0_i32, %c0_i32_0 : i32, i32
  }
  func.func @transform_6(%arg0: i32) -> (i32, i32) {
    %c0_i32 = arith.constant 0 : i32
    %c0_i32_0 = arith.constant 0 : i32
    %c0_i32_1 = arith.constant 0 : i32
    return %c0_i32, %c0_i32_0 : i32, i32
  }
  func.func @transform_7(%arg0: i32) -> (i32, i32) {
    %c0_i32 = arith.constant 0 : i32
    %c0_i32_0 = arith.constant 0 : i32
    %c0_i32_1 = arith.constant 0 : i32
    return %c0_i32, %c0_i32_0 : i32, i32
  }
  func.func @transform_8(%arg0: i32) -> (i32, i32, i32) {
    %c0_i32 = arith.constant 0 : i32
    %c0_i32_0 = arith.constant 0 : i32
    %c0_i32_1 = arith.constant 0 : i32
    %c0_i32_2 = arith.constant 0 : i32
    return %c0_i32, %c0_i32_0, %c0_i32_1 : i32, i32, i32
  }
  func.func @transform_9(%arg0: i32) -> (i32, i32) {
    %c0_i32 = arith.constant 0 : i32
    %c0_i32_0 = arith.constant 0 : i32
    %c0_i32_1 = arith.constant 0 : i32
    return %c0_i32, %c0_i32_0 : i32, i32
  }
  func.func @transform_10(%arg0: i32) -> (i32, i32) {
    %c0_i32 = arith.constant 0 : i32
    %c0_i32_0 = arith.constant 0 : i32
    %c0_i32_1 = arith.constant 0 : i32
    return %c0_i32, %c0_i32_0 : i32, i32
  }
  func.func @transform_11(%arg0: i32) -> (i32, i32) {
    %c0_i32 = arith.constant 0 : i32
    %c0_i32_0 = arith.constant 0 : i32
    %c0_i32_1 = arith.constant 0 : i32
    return %c0_i32, %c0_i32_0 : i32, i32
  }
  func.func @transform_12(%arg0: i32) -> (i32, i32) {
    %c0_i32 = arith.constant 0 : i32
    %c0_i32_0 = arith.constant 0 : i32
    %c0_i32_1 = arith.constant 0 : i32
    return %c0_i32, %c0_i32_0 : i32, i32
  }
  func.func @transform_13(%arg0: i32) -> (i32, i32) {
    %c0_i32 = arith.constant 0 : i32
    %c0_i32_0 = arith.constant 0 : i32
    %c0_i32_1 = arith.constant 0 : i32
    return %c0_i32, %c0_i32_0 : i32, i32
  }
  func.func @transform_14(%arg0: i32) -> (i32, i32) {
    %c0_i32 = arith.constant 0 : i32
    %c0_i32_0 = arith.constant 0 : i32
    %c0_i32_1 = arith.constant 0 : i32
    return %c0_i32, %c0_i32_0 : i32, i32
  }
  func.func @transform_15(%arg0: i32) -> (i32, i32) {
    %c0_i32 = arith.constant 0 : i32
    %c0_i32_0 = arith.constant 0 : i32
    %c0_i32_1 = arith.constant 0 : i32
    return %c0_i32, %c0_i32_0 : i32, i32
  }
  func.func @transform_16(%arg0: i32) -> (i32, i32) {
    %c0_i32 = arith.constant 0 : i32
    %c0_i32_0 = arith.constant 0 : i32
    %c0_i32_1 = arith.constant 0 : i32
    return %c0_i32, %c0_i32_0 : i32, i32
  }
  func.func @transform_17(%arg0: i32) -> (i32, i32) {
    %c0_i32 = arith.constant 0 : i32
    %c0_i32_0 = arith.constant 0 : i32
    %c0_i32_1 = arith.constant 0 : i32
    return %c0_i32, %c0_i32_0 : i32, i32
  }
  func.func @transform_18(%arg0: i32) -> (i32, i32, i32) {
    %c0_i32 = arith.constant 0 : i32
    %c0_i32_0 = arith.constant 0 : i32
    %c0_i32_1 = arith.constant 0 : i32
    return %arg0, %c0_i32, %c0_i32_0 : i32, i32, i32
  }
}

</mosaic_0001>

<bundles_post_ra>
// kernel: tpu_custom_call.1
= control target key start
LH: loop header
LB: loop body
LE: loop exit
PB: predicated region body
PF: predicated region fallthrough
CT: control target
= control target key end

     0   :  { %s3101_s0 = inlined_call_operand.hbm [shape: f32[4,4,8,8], index: 0, kind: input, shape index: {}]   ;;  %s3102_s1 = inlined_call_operand.hbm [shape: f32[4,4,8,8], index: 1, kind: input, shape index: {}]   ;;  %s3103_s2 = inlined_call_operand.hbm [shape: f32[4,4,8,8], index: 2, kind: input, shape index: {}]   ;;  %s3104_s3 = inlined_call_operand.vmem [shape: f32[4,8,32], index: 3, kind: input, shape index: {}]   ;;  %s3105_s4 = inlined_call_operand.hbm [shape: bf16[1,8,8], index: 4, kind: input, shape index: {}]   ;;  %s3106_s5 = inlined_call_operand.hbm [shape: f32[8,8], index: 5, kind: input, shape index: {}]   ;;  %s3107_s6 = inlined_call_operand.hbm [shape: f32[8,8], index: 6, kind: input, shape index: {}]   ;;  %s3108_s7 = inlined_call_operand.hbm [shape: f32[8,8], index: 7, kind: input, shape index: {}]   ;;  %s3109_s8 = inlined_call_operand.vmem [shape: f32[4,8,32], index: 8, kind: input, shape index: {}]   ;;  %s3110_s9 = inlined_call_operand.vmem [shape: f32[1,32], index: 9, kind: input, shape index: {}]   ;;  %s3111_s10 = inlined_call_operand.vmem [shape: f32[1,32], index: 10, kind: input, shape index: {}]   ;;  %s3112_s11 = inlined_call_operand.vmem [shape: f32[1,32], index: 11, kind: input, shape index: {}]   ;;  %s3113_s12 = inlined_call_operand.vmem [shape: f32[32,64], index: 12, kind: input, shape index: {}]   ;;  %s3114_s13 = inlined_call_operand.vmem [shape: f32[1,64], index: 13, kind: input, shape index: {}]   ;;  %s3115_s14 = inlined_call_operand.vmem [shape: f32[64,32], index: 14, kind: input, shape index: {}]   ;;  %s3116_s15 = inlined_call_operand.vmem [shape: f32[1,32], index: 15, kind: input, shape index: {}]   ;;  %s3117_s16 = inlined_call_operand.vmem [shape: f32[1,32], index: 16, kind: input, shape index: {}]   ;;  %s3118_s17 = inlined_call_operand.vmem [shape: f32[1,32], index: 17, kind: input, shape index: {}]   ;;  %s3119_s18 = inlined_call_operand.hbm [shape: f32[4,8,32], index: 18, kind: output, shape index: {}]  }
   0x1   :  { %3127 = sst [smem:[#allocation34_spill]] %s3101_s0 }
   0x2   :  { %3128 = sst [smem:[#allocation35_spill]] %s3102_s1 }
   0x3   :  { %3129 = sst [smem:[#allocation36_spill]] %s3103_s2 }
   0x4   :  { %3130 = sst [smem:[#allocation37_spill]] %s3105_s4 }
   0x5   :  { %3131 = sst [smem:[#allocation38_spill]] %s3106_s5 }
   0x6   :  { %3132 = sst [smem:[#allocation39_spill]] %s3107_s6 }
   0x7   :  { %3133 = sst [smem:[#allocation40_spill]] %s3108_s7 }
   0x8   :  { %3134 = sst [smem:[#allocation41_spill]] %s3116_s15 }
   0x9   :  { %3135 = sst [smem:[#allocation42_spill]] %s3117_s16 }
   0xa   :  { %3136 = sst [smem:[#allocation43_spill]] %s3118_s17 }
   0xb   :  { %3137 = sst [smem:[#allocation44_spill]] %s3119_s18 }
   0xc   :  { %23 = vsyncpa [#allocation3], 0 }
   0xd   :  { %25 = vsyncpa [#allocation3 + $0x1], 0 }
   0xe   :  { %26 = vsyncpa [#allocation6], 0 }
   0xf   :  { %28 = vsyncpa [#allocation6 + $0x1], 0 }
  0x10   :  { %29 = vsyncpa [#allocation9], 0 }
  0x11   :  { %30 = vsyncpa [#allocation12], 0 }
  0x12   :  { %31 = vsyncpa [#allocation4], 0 }
  0x13   :  { %33 = vsyncpa [#allocation4 + $0x1], 0  ;;  %s2673_s27 = smov 0   ;;  %s2675_s28 = smov 0  }
  0x14   :  { %s2677_s29 = smov 0   ;;  %s2679_s30 = smov 0  }
  0x15 LB: > { %3138 = sst [smem:[#allocation29_spill]] %s2539_s27  ;;  %s2694_s0 = sadd.s32 4294967295, %s2551_s30   ;;  %s2551_s30 = sphi %s2679_s30, %s3163_s30   ;;  %s2547_s29 = sphi %s2677_s29, %s3167_s29   ;;  %s2543_s28 = sphi %s2675_s28, %s3166_s28   ;;  %s2539_s27 = sphi %s2673_s27, %s3165_s27  }
  0x16   : > { %s2072_s19 = sadd.s32 4294967294, %s2551_s30   ;;  %s2698_s1 = sadd.s32 1, %s2551_s30  }
  0x17   : > { %3139 = sst [smem:[#allocation30_spill]] %s2698_s1  ;;  %s46_s20 = sadd.s32 1, %s2547_s29 }
  0x18   : > { %s43_s21 = ssub.s32 %s2551_s30, %s2698_s1  ;;  %p53_p0 = scmp.ne.s32.totalorder %s2547_s29, %s2543_s28 }
  0x19   : > { %p44_p1 = scmp.eq.s32.totalorder %s43_s21, 0  ;;  %p54_p2 = scmp.eq.s32.totalorder %s2551_s30, 0 }
  0x1a   : > { %p59_p3 = scmp.ne.s32.totalorder %s2543_s28, %s2539_s27  ;;  %p60_p4 = scmp.eq.s32.totalorder %s2694_s0, 0 }
  0x1b   : > { %s2710_s22 = scalar_select %p44_p1, %s2547_s29, %s46_s20  }
  0x1c   : > { %p2712_p5 = por %p54_p2, %p53_p0  ;;  %p2718_p6 = por %p60_p4, %p59_p3 }
  0x1d   : > { %3140 = sst [smem:[#allocation31_spill]] %s2710_s22  ;;  %p455_p7 = scmp.eq.s32.totalorder %s2694_s0, 1 }
  0x1e   : > { %p461_p8 = scmp.eq.s32.totalorder %s2072_s19, 1  ;;  %p2073_p9 = scmp.ge.s32.totalorder %s2551_s30, 1 }
  0x1f   : > { %p468_p10 = scmp.lt.s32.totalorder %s2551_s30, 3  ;;  %p2725_p11 = por %p455_p7, %p53_p0 }
  0x20   : > { %p2729_p12 = por %p461_p8, %p59_p3  ;;  %s3148_s4 = sld [smem:[#allocation37_spill]] }
  0x21   : > { %s3143_s24 = scalar_select %p2725_p11, 1, 0 }
  0x22   : > { %s3145_s25 = scalar_select %p2729_p12, 1, 0 }
  0x23   : > { %3144 = sst [smem:[#allocation32_spill]] %s3143_s24  ;;  %p2733_p13 = pnand %p2073_p9, %p468_p10 }
  0x24   : > { %3146 = sst [smem:[#allocation33_spill]] %s3145_s25  ;;  %s2553_s19 = smov [#allocation8]  }
  0x25   : > { %p2221_p1 = pneg %p2733_p13  ;;  %s482_s1 = sshll.u32 %s2553_s19, 4  ;;  %s483_s1 = int_to_ptr.vmem [resolvable:$true] %s482_s1 }
  0x26   : > { %s480_s22 = sshll.u32 %s3148_s4, 4  ;;  %s3149_s6 = sld [smem:[#allocation39_spill]]  ;;  %s481_s22 = int_to_ptr.hbm [resolvable:$true] %s480_s22 }
  0x27   : > { %p2747_p0 = pnand %p2221_p1, %p60_p4  ;;  %s2554_s20 = smov [#allocation11]  }
  0x28   : > { %s506_s21 = sshll.u32 %s2554_s20, 4  ;;  %s3151_s5 = sld [smem:[#allocation38_spill]]  ;;  %s507_s21 = int_to_ptr.vmem [resolvable:$true] %s506_s21 }
  0x29   : > { %2224 = dma.hbm_to_vmem [thread:$0]  (!%p2747_p0), %s481_s22, 64, %s483_s1, [#allocation9]  }
  0x2a   : > { %s2555_s24 = smov [#allocation10]   ;;  %s3152_s7 = sld [smem:[#allocation40_spill]] }
  0x2b   : > { %s2556_s20 = smov [#allocation13]   ;;  %p2078_p2 = scmp.ge.s32.totalorder %s2551_s30, 2 }
  0x2c   : > { %s504_s18 = sshll.u32 %s3149_s6, 4  ;;  %s494_s6 = sshll.u32 %s2555_s24, 4  ;;  %s505_s18 = int_to_ptr.hbm [resolvable:$true] %s504_s18  ;;  %s495_s6 = int_to_ptr.vmem [resolvable:$true] %s494_s6 }
  0x2d   : > { %2230 = dma.hbm_to_vmem [thread:$0]  (!%p2747_p0), %s505_s18, 128, %s507_s21, [#allocation12]  }
  0x2e   : > { %s492_s27 = sshll.u32 %s3151_s5, 4  ;;  %s518_s1 = sshll.u32 %s2556_s20, 4  ;;  %s493_s27 = int_to_ptr.hbm [resolvable:$true] %s492_s27  ;;  %s519_s1 = int_to_ptr.vmem [resolvable:$true] %s518_s1 }
  0x2f   : > { %2227 = dma.hbm_to_vmem [thread:$0]  (!%p2747_p0), %s493_s27, 128, %s495_s6, [#allocation9]  }
  0x30   : > { %s516_s15 = sshll.u32 %s3152_s7, 4  ;;  %555 = sbr.rel (%p2078_p2) target bundleno = 92 (0x5c), region = 72  ;;  %s517_s15 = int_to_ptr.hbm [resolvable:$true] %s516_s15 }
  0x31   : > { %2233 = dma.hbm_to_vmem [thread:$0]  (!%p2747_p0), %s517_s15, 128, %s519_s1, [#allocation12]  }
  0x35   : > { %s559_s4 = sand.u32 1, %s2547_s29   ;;  %s2770_s16 = sshll.u32 %s2551_s30, 4 }
  0x36   : > { %s2772_s6 = sshll.u32 %s559_s4, 6  ;;  %s3153_s15 = sld [smem:[#allocation34_spill]] }
  0x37   : > { %s2184_s25 = scalar_select %p2712_p5, [#allocation0], [#allocation21] }
  0x38   : > { %s563_s19 = scalar_lea.vmem [#allocation2], %s2772_s6  ;;  %s2557_s20 = smov 512  }
  0x39   : > { %s583_s27 = sshll.u32 %s563_s19, 4  ;;  %s573_s24 = sld [smem:[%s2184_s25]]   ;;  %s584_s27 = int_to_ptr.vmem [resolvable:$true] %s583_s27 }
  0x3a   : > { %2185 = sst [smem:[#allocation16]] (%p2712_p5), %s2557_s20  ;;  %s2558_s1 = smov 256  }
  0x3b   : > { %2186 = sst [smem:[#allocation16 + $0x1]] (%p2712_p5), %s2558_s1  ;;  %s2559_s17 = smov 2  }
  0x3c   : > { %s568_s22 = scalar_lea.hbm %s3153_s15, %s2770_s16  ;;  %2187 = sst [smem:[#allocation16 + $0x2]] (%p2712_p5), %s2559_s17 }
  0x3d   : > { %s581_s21 = sshll.u32 %s568_s22, 4  ;;  %s2560_s18 = smov 128   ;;  %s582_s21 = int_to_ptr.hbm [resolvable:$true] %s581_s21 }
  0x3e   : > { %2188 = sst [smem:[#allocation16 + $0x3]] (%p2712_p5), %s2560_s18  ;;  %s2561_s25 = smov 8  }
  0x3f   : > { %s2082_s15 = sshll.u32 %s573_s24, 26  ;;  %2189 = sst [smem:[#allocation16 + $0x4]] (%p2712_p5), %s2560_s18 }
  0x40   : > { %s2083_s22 = sadd.s32 134217728, %s2082_s15  ;;  %2190 = sst [smem:[#allocation16 + $0x5]] (%p2712_p5), %s2561_s25 }
  0x41   : > { %s560_s19 = scalar_lea.sflag [#allocation3], %s559_s4  ;;  %s2562_s5 = smov [#allocation15]  }
  0x42   : > { %2191 = dma.general (%p2712_p5), %s582_s21, 1024, %s584_s27, %s560_s19, %s2562_s5, [#allocation16], %s2083_s22, 0  }
  0x43   : > { %s606_s20 = sand.u32 1, %s2551_s30   ;;  %s3154_s17 = sld [smem:[#allocation35_spill]] }
  0x44   : > { %s2192_s15 = scalar_select %p2712_p5, [#allocation0], [#allocation22] }
  0x45   : > { %s610_s25 = scalar_lea.vmem [#allocation5], %s2772_s6  ;;  %s2563_s21 = smov 512  }
  0x46   : > { %s630_s7 = sshll.u32 %s610_s25, 4  ;;  %s620_s5 = sld [smem:[%s2192_s15]]   ;;  %s631_s7 = int_to_ptr.vmem [resolvable:$true] %s630_s7 }
  0x47   : > { %2193 = sst [smem:[#allocation18]] (%p2712_p5), %s2563_s21  ;;  %s2564_s27 = smov 256  }
  0x48   : > { %2194 = sst [smem:[#allocation18 + $0x1]] (%p2712_p5), %s2564_s27  ;;  %s2565_s22 = smov 2  }
  0x49   : > { %s615_s18 = scalar_lea.hbm %s3154_s17, %s2770_s16  ;;  %2195 = sst [smem:[#allocation18 + $0x2]] (%p2712_p5), %s2565_s22 }
  0x4a   : > { %s628_s4 = sshll.u32 %s615_s18, 4  ;;  %s2566_s19 = smov 128   ;;  %s629_s4 = int_to_ptr.hbm [resolvable:$true] %s628_s4 }
  0x4b   : > { %2196 = sst [smem:[#allocation18 + $0x3]] (%p2712_p5), %s2566_s19  ;;  %s2567_s17 = smov 8  }
  0x4c   : > { %s2087_s1 = sshll.u32 %s620_s5, 26  ;;  %2197 = sst [smem:[#allocation18 + $0x4]] (%p2712_p5), %s2566_s19 }
  0x4d   : > { %s2088_s24 = sadd.s32 134217728, %s2087_s1  ;;  %2198 = sst [smem:[#allocation18 + $0x5]] (%p2712_p5), %s2567_s17 }
  0x4e   : > { %s607_s18 = scalar_lea.sflag [#allocation6], %s606_s20  ;;  %s2568_s15 = smov [#allocation17]  }
  0x4f   : > { %2199 = dma.general (%p2712_p5), %s629_s4, 1024, %s631_s7, %s607_s18, %s2568_s15, [#allocation18], %s2088_s24, 0  }
  0x50   : > { %s3155_s27 = sld [smem:[#allocation36_spill]]  ;;  %s657_s1 = scalar_lea.vmem [#allocation7], %s2772_s6 }
  0x51   : > { %s2200_s22 = scalar_select %p2712_p5, [#allocation0], [#allocation23] }
  0x52   : > { %s677_s20 = sshll.u32 %s657_s1, 4  ;;  %s2569_s7 = smov 512   ;;  %s678_s20 = int_to_ptr.vmem [resolvable:$true] %s677_s20 }
  0x53   : > { %s667_s17 = sld [smem:[%s2200_s22]]   ;;  %s2570_s4 = smov 256  }
  0x54   : > { %2201 = sst [smem:[#allocation20]] (%p2712_p5), %s2569_s7  ;;  %s2571_s24 = smov 2  }
  0x55   : > { %2202 = sst [smem:[#allocation20 + $0x1]] (%p2712_p5), %s2570_s4  ;;  %s2573_s25 = smov 8  }
  0x56   : > { %s662_s5 = scalar_lea.hbm %s3155_s27, %s2770_s16  ;;  %2203 = sst [smem:[#allocation20 + $0x2]] (%p2712_p5), %s2571_s24 }
  0x57   : > { %s675_s19 = sshll.u32 %s662_s5, 4  ;;  %s2572_s16 = smov 128   ;;  %s676_s19 = int_to_ptr.hbm [resolvable:$true] %s675_s19 }
  0x58   : > { %2204 = sst [smem:[#allocation20 + $0x3]] (%p2712_p5), %s2572_s16  ;;  %s2574_s21 = smov [#allocation19]  }
  0x59   : > { %s2092_s15 = sshll.u32 %s667_s17, 26  ;;  %2205 = sst [smem:[#allocation20 + $0x4]] (%p2712_p5), %s2572_s16 }
  0x5a   : > { %s2093_s6 = sadd.s32 134217728, %s2092_s15  ;;  %2206 = sst [smem:[#allocation20 + $0x5]] (%p2712_p5), %s2573_s25 }
  0x5b   : > { %2207 = dma.general (%p2712_p5), %s676_s19, 1024, %s678_s20, %s607_s18, %s2574_s21, [#allocation20], %s2093_s6, 0  }
  0x5c PF: > { %711 = sbr.rel (%p2733_p13) target bundleno = 1763 (0x6e3), region = 92  ;;  %s2841_s27 = sand.u32 (!%p2733_p13), 1, %s2543_s28  }
  0x5d   : > { %s2095_s5 = sshll.u32 (!%p2733_p13), %s2841_s27, 6  ;;  %s714_s22 = scalar_lea.sflag (!%p2733_p13), [#allocation3], %s2841_s27 }
  0x5e   : > { %s2845_s1 = scalar_lea.vmem (!%p2733_p13), [#allocation2], %s2095_s5 }
  0x61   : > { %2518 = dma.done.wait (%p2718_p6), %s714_s22, 1024  }
  0x62   : > { %2520 = vsyncadd (%p2718_p6), %s714_s22, 4294966272  ;;  %s723_s2 = sand.u32 1, %s2694_s0   ;;  %s2852_s18 = scalar_lea.vmem [#allocation5], %s2095_s5 }
  0x63   : > { %s724_s26 = scalar_lea.sflag [#allocation6], %s723_s2 }
  0x64   : > { %2522 = dma.done.wait (%p2718_p6), %s724_s26, 2048  }
  0x65   : > { %2524 = vsyncadd (%p2718_p6), %s724_s26, 4294965248  ;;  %s2858_s19 = scalar_lea.vmem [#allocation7], %s2095_s5 }
  0x66   : > { %2526 = dma.done.wait (%p60_p4), [#allocation9], 192  }
  0x67   : > { %2528 = vsyncadd (%p60_p4), [#allocation9], 4294967104 }
  0x68   : > { %2530 = dma.done.wait (%p60_p4), [#allocation12], 256  }
  0x69   : > { %2532 = vsyncadd (%p60_p4), [#allocation12], 4294967040  ;;  %vm845_vm0 = vcmask 64512   ;;  %v844_v0 = vld [vmem:[#allocation10] sm:$0xff]  ;;  %v843_v1 = vld [vmem:[%s2845_s1 + $0x38] sm:$0xff]  ;;  %s2103_s6 = sshll.u32 %s2694_s0, 1 }
  0x6a   : > { %v993_v2 = vld [vmem:[#allocation13] sm:$0xff]  ;;  %2174 = vmatpush.msra.mxu2 %v844_v0  ;;  %v919_v3 = vld [vmem:[#allocation11] sm:$0xff]  ;;  %v911_v4 = vld [vmem:[%s2852_s18] sm:$0xff]  ;;  %885 = vmatpush.msra.mxu0 %v844_v0  ;;  %p830_p3 = scmp.lt.s32.totalorder %s2103_s6, 3  ;;  %vm1661_vm1 = vcmask 261120   ;;  %vm1800_vm9 = vcmask 523264  }
  0x6b   : > { %2112 = vmatmul.msk.f32.vlgmr.msra.gmra.mxu2 %vm845_vm0, %v843_v1  ;;  %959 = vmatpush.msra.mxu1 %v919_v3  ;;  %v985_v5 = vld [vmem:[%s2858_s19] sm:$0xff]  ;;  %v912_v6 = vld [vmem:[%s2852_s18 + $0x8] sm:$0xff]  ;;  %v913_v9 = vld [vmem:[%s2852_s18 + $0x10] sm:$0xff]  ;;  %s3156_s5 = sld [smem:[#allocation41_spill]]  ;;  %s2102_s23 = sshll.u32 %s2841_s27, 4 }
  0x6c   : > { %1033 = vmatpush.msrb.mxu2 %v993_v2  ;;  %2113 = vmatmul.msk.f32.vlgmr.msra.gmra.mxu1 %vm845_vm0, %v911_v4  ;;  %v836_v7 = vld [vmem:[%s2845_s1] sm:$0xff]  ;;  %v986_v8 = vld [vmem:[%s2858_s19 + $0x8] sm:$0xff]  ;;  %v918_v11 = vld [vmem:[%s2852_s18 + $0x38] sm:$0xff]  ;;  %s3169_s6 = smov (!%p830_p3, %s2103_s6), 3  ;;  %s2173_s20 = sshll.u32 %s2694_s0, 4 }
  0x6d   : > { %2175 = vmatpush.msra.mxu3 %v919_v3  ;;  %2105 = vmatmul.msk.f32.vlgmr.msra.gmra.mxu0 %vm845_vm0, %v836_v7  ;;  %v837_v10 = vld [vmem:[%s2845_s1 + $0x8] sm:$0xff]  ;;  %v987_v12 = vld [vmem:[%s2858_s19 + $0x10] sm:$0xff]  ;;  %v914_v13 = vld [vmem:[%s2852_s18 + $0x18] sm:$0xff]  ;;  %s2104_s25 = sshll.u32 %s3169_s6, 3  ;;  %s825_s17 = scalar_lea.vmem [#allocation14], %s2102_s23 }
  0x6e   : > { %2120 = vmatmul.msk.f32.vlgmr.msra.gmra.mxu3 %vm845_vm0, %v918_v11  ;;  %v838_v14 = vld [vmem:[%s2845_s1 + $0x10] sm:$0xff]  ;;  %v988_v15 = vld [vmem:[%s2858_s19 + $0x18] sm:$0xff]  ;;  %v915_v16 = vld [vmem:[%s2852_s18 + $0x20] sm:$0xff]  ;;  %s833_s2 = scalar_lea.vmem %s3104_s3, %s2104_s25  ;;  %s3159_s24 = sld [smem:[#allocation44_spill]] }
  0x6f   : > { %v839_v17 = vld [vmem:[%s2845_s1 + $0x18] sm:$0xff]  ;;  %v989_v18 = vld [vmem:[%s2858_s19 + $0x20] sm:$0xff]  ;;  %v916_v19 = vld [vmem:[%s2852_s18 + $0x28] sm:$0xff]  ;;  %s1903_s6 = sshll.u32 %s825_s17, 4  ;;  %s1891_s0 = scalar_lea.sflag [#allocation4], %s2841_s27  ;;  %s1904_s6 = int_to_ptr.vmem [resolvable:$true] %s1903_s6 }
  0x70   : > { %v990_v20 = vld [vmem:[%s2858_s19 + $0x28] sm:$0xff]  ;;  %v917_v21 = vld [vmem:[%s2852_s18 + $0x30] sm:$0xff]  ;;  %v992_v23 = vld [vmem:[%s2858_s19 + $0x38] sm:$0xff] }
  0x71   : > { %v991_v22 = vld [vmem:[%s2858_s19 + $0x30] sm:$0xff]  ;;  %v1059_v46 = vld [vmem:[#allocation8] sm:$0xf]  ;;  %s3158_s19 = sld [smem:[#allocation43_spill]] }
  0x72   : > { %v1060_v47 = vunpack.c.l.bf16 %v1059_v46  ;;  %v840_v7 = vld [vmem:[%s2845_s1 + $0x20] sm:$0xff] }
  0x73   : > { %2121 = vmatmul.msk.f32.vlgmr.msrb.gmra.mxu2 %vm845_vm0, %v985_v5 }
  0x74   : > { %2114 = vmatmul.msk.f32.gmra.mxu1 %vm845_vm0, %v912_v6  ;;  %s1902_s16 = scalar_lea.hbm %s3159_s24, %s2173_s20 }
  0x75   : > { %2106 = vmatmul.msk.f32.gmra.mxu0 %vm845_vm0, %v837_v10  ;;  %s1905_s25 = sshll.u32 %s1902_s16, 4  ;;  %s1906_s25 = int_to_ptr.hbm [resolvable:$true] %s1905_s25 }
  0x76   : > { %s2487_s21 = sshra.s32 %s1906_s25, 4  ;;  %s2488_s21 = int_to_ptr.hbm [resolvable:$true] %s2487_s21 }
  0x77   : > { %p2494_p7 = scmp.lt.s32.totalorder %s2488_s21, %s3159_s24 }
  0x7b   : > { %2122 = vmatmul.msk.f32.gmra.mxu2 %vm845_vm0, %v986_v8  ;;  %v841_v8 = vld [vmem:[%s2845_s1 + $0x28] sm:$0xff] }
  0x7c   : > { %2115 = vmatmul.msk.f32.gmra.mxu1 %vm845_vm0, %v913_v9 }
  0x7d   : > { %2107 = vmatmul.msk.f32.gmra.mxu0 %vm845_vm0, %v838_v14 }
  0x83   : > { %2123 = vmatmul.msk.f32.gmra.mxu2 %vm845_vm0, %v987_v12  ;;  %v842_v12 = vld [vmem:[%s2845_s1 + $0x30] sm:$0xff] }
  0x84   : > { %2116 = vmatmul.msk.f32.gmra.mxu1 %vm845_vm0, %v914_v13 }
  0x85   : > { %2108 = vmatmul.msk.f32.gmra.mxu0 %vm845_vm0, %v839_v17 }
  0x8b   : > { %2124 = vmatmul.msk.f32.gmra.mxu2 %vm845_vm0, %v988_v15 }
  0x8c   : > { %2117 = vmatmul.msk.f32.gmra.mxu1 %vm845_vm0, %v915_v16 }
  0x8d   : > { %2109 = vmatmul.msk.f32.gmra.mxu0 %vm845_vm0, %v840_v7 }
  0x93   : > { %2125 = vmatmul.msk.f32.gmra.mxu2 %vm845_vm0, %v989_v18 }
  0x94   : > { %2118 = vmatmul.msk.f32.gmra.mxu1 %vm845_vm0, %v916_v19 }
  0x95   : > { %2110 = vmatmul.msk.f32.gmra.mxu0 %vm845_vm0, %v841_v8 }
  0x9b   : > { %2126 = vmatmul.msk.f32.gmra.mxu2 %vm845_vm0, %v990_v20 }
  0x9c   : > { %2119 = vmatmul.msk.f32.gmra.mxu1 %vm845_vm0, %v917_v21 }
  0x9d   : > { %2111 = vmatmul.msk.f32.gmra.mxu0 %vm845_vm0, %v842_v12 }
  0xa3   : > { %2127 = vmatmul.msk.f32.gmra.mxu2 %vm845_vm0, %v991_v22 }
  0xab   : > { %2128 = vmatmul.msk.f32.gmra.mxu2 %vm845_vm0, %v992_v23 }
  0xe9   : > { %v961_v24 = vpop.f32.mrf.mxu1 }
  0xea   : > { %2129 = vmatpush.xpose.msk.msrb.mxu3 %vm845_vm0, %v961_v24  ;;  %v887_v27 = vpop.f32.mrf.mxu0 }
  0xeb   : > { %1375 = vmatpush.msrb.mxu0 %v887_v27 }
  0xee   : > { %v908_v25 = vpop.f32.mrf.mxu2 }
  0xf1   : > { %v964_v26 = vpop.f32.mrf.mxu1  ;;  %v982_v40 = vpop.f32.mrf.mxu3 }
  0xf2   : > { %2131 = vmatpush.xpose.msk.msra.mxu3 %vm845_vm0, %v964_v26  ;;  %v890_v30 = vpop.f32.mrf.mxu0 }
  0xf3   : > { %1398 = vmatpush.msrb.mxu1 %v890_v30 }
  0xf6   : > { %v1035_v28 = vpop.f32.mrf.mxu2 }
  0xf7   : > { %2130 = vmatmul.msk.f32.vlgmr.msrb.gmra.mxu3 %vm845_vm0, %v1035_v28 }
  0xf9   : > { %v967_v29 = vpop.f32.mrf.mxu1 }
  0xfa   : > { %2133 = vmatpush.xpose.msk.msrb.mxu3 %vm845_vm0, %v967_v29  ;;  %v893_v33 = vpop.f32.mrf.mxu0 }
  0xfb   : > { %1421 = vmatpush.msra.mxu2 %v893_v33 }
  0xfe   : > { %v1038_v31 = vpop.f32.mrf.mxu2 }
  0xff   : > { %2132 = vmatmul.msk.f32.vlgmr.msra.gmra.mxu3 %vm845_vm0, %v1038_v31 }
 0x101   : > { %v970_v32 = vpop.f32.mrf.mxu1 }
 0x102   : > { %2135 = vmatpush.xpose.msk.msra.mxu3 %vm845_vm0, %v970_v32  ;;  %v896_v42 = vpop.f32.mrf.mxu0 }
 0x106   : > { %v1041_v34 = vpop.f32.mrf.mxu2 }
 0x107   : > { %2134 = vmatmul.msk.f32.vlgmr.msrb.gmra.mxu3 %vm845_vm0, %v1041_v34 }
 0x109   : > { %v973_v35 = vpop.f32.mrf.mxu1 }
 0x10a   : > { %2137 = vmatpush.xpose.msk.msrb.mxu3 %vm845_vm0, %v973_v35 }
 0x10e   : > { %v1044_v36 = vpop.f32.mrf.mxu2 }
 0x10f   : > { %2136 = vmatmul.msk.f32.vlgmr.msra.gmra.mxu3 %vm845_vm0, %v1044_v36 }
 0x111   : > { %v976_v37 = vpop.f32.mrf.mxu1 }
 0x112   : > { %2139 = vmatpush.xpose.msk.msra.mxu3 %vm845_vm0, %v976_v37 }
 0x116   : > { %v1047_v38 = vpop.f32.mrf.mxu2 }
 0x117   : > { %2138 = vmatmul.msk.f32.vlgmr.msrb.gmra.mxu3 %vm845_vm0, %v1047_v38 }
 0x119   : > { %v979_v39 = vpop.f32.mrf.mxu1 }
 0x11a   : > { %2141 = vmatpush.xpose.msk.msrb.mxu3 %vm845_vm0, %v979_v39 }
 0x11e   : > { %v1050_v41 = vpop.f32.mrf.mxu2 }
 0x11f   : > { %2140 = vmatmul.msk.f32.vlgmr.msra.gmra.mxu3 %vm845_vm0, %v1050_v41 }
 0x120   : > { %2143 = vmatpush.xpose.msk.msra.mxu3 %vm845_vm0, %v982_v40 }
 0x126   : > { %v1053_v43 = vpop.f32.mrf.mxu2 }
 0x127   : > { %2142 = vmatmul.msk.f32.vlgmr.msrb.gmra.mxu3 %vm845_vm0, %v1053_v43 }
 0x128   : > { %1444 = vmatpush.msrb.mxu3 %v896_v42 }
 0x12e   : > { %v1056_v44 = vpop.f32.mrf.mxu2 }
 0x12f   : > { %2144 = vmatmul.msk.f32.vlgmr.msra.gmra.mxu3 %vm845_vm0, %v1056_v44 }
 0x130   : > { %1536 = vmatpush.msra.mxu3 %v908_v25 }
 0x17a   : > { %v1084_v45 = vpop.f32.mrf.mxu3 }
 0x17b   : > { %v1085_v54 = vadd.f32 %v1084_v45, %v1060_v47 }
 0x17d   : > { %v1269_v57 = vsel %vm845_vm0, %v1085_v54, -inf }
 0x182   : > { %v1110_v48 = vpop.f32.mrf.mxu3 }
 0x183   : > { %v1111_v49 = vadd.f32 %v1110_v48, %v1060_v47 }
 0x185   : > { %v1272_v50 = vsel %vm845_vm0, %v1111_v49, -inf }
 0x186   : > { %1273 = vmax.xlane.f32.xlu2 %v1272_v50  ;;  %v899_v50 = vpop.f32.mrf.mxu0 }
 0x187   : > { %1467 = vmatpush.msra.mxu0 %v899_v50 }
 0x18a   : > { %v1136_v51 = vpop.f32.mrf.mxu3 }
 0x18b   : > { %v1137_v52 = vadd.f32 %v1136_v51, %v1060_v47 }
 0x18d   : > { %v1275_v53 = vsel %vm845_vm0, %v1137_v52, -inf }
 0x18e   : > { %1276 = vmax.xlane.f32.xlu0 %v1275_v53 }
 0x192   : > { %v1162_v55 = vpop.f32.mrf.mxu3 }
 0x193   : > { %v1163_v56 = vadd.f32 %v1162_v55, %v1060_v47 }
 0x195   : > { %v1278_v58 = vsel %vm845_vm0, %v1163_v56, -inf }
 0x196   : > { %1270 = vmax.xlane.f32.xlu0 %v1269_v57  ;;  %1279 = vmax.xlane.f32.xlu1 %v1278_v58 }
 0x19a   : > { %v1188_v59 = vpop.f32.mrf.mxu3 }
 0x19b   : > { %v1189_v60 = vadd.f32 %v1188_v59, %v1060_v47 }
 0x19d   : > { %v1281_v61 = vsel %vm845_vm0, %v1189_v60, -inf }
 0x19e   : > { %1282 = vmax.xlane.f32.xlu2 %v1281_v61 }
 0x1a2   : > { %v1214_v62 = vpop.f32.mrf.mxu3 }
 0x1a3   : > { %v1215_v2 = vadd.f32 %v1214_v62, %v1060_v47 }
 0x1a5   : > { %v1284_v5 = vsel %vm845_vm0, %v1215_v2, -inf }
 0x1aa   : > { %v1240_v63 = vpop.f32.mrf.mxu3 }
 0x1ab   : > { %v1241_v0 = vadd.f32 %v1240_v63, %v1060_v47 }
 0x1ad   : > { %v1287_v1 = vsel %vm845_vm0, %v1241_v0, -inf }
 0x1ae   : > { %1288 = vmax.xlane.f32.xlu1 %v1287_v1 }
 0x1b2   : > { %v1266_v3 = vpop.f32.mrf.mxu3 }
 0x1b3   : > { %v1267_v4 = vadd.f32 %v1266_v3, %v1060_v47 }
 0x1b5   : > { %v1290_v6 = vsel %vm845_vm0, %v1267_v4, -inf }
 0x1b6   : > { %1285 = vmax.xlane.f32.xlu1 %v1284_v5  ;;  %1291 = vmax.xlane.f32.xlu0 %v1290_v6 }
 0x1f9   : > { %v1274_v13 = vpop.xlane.xlu2 %1273 }
 0x1fa   : > { %v1294_v19 = vsub.f32 %v1111_v49, %v1274_v13  ;;  %v1542_v13 = vld [vmem:[%s3109_s8 + $0x8] sm:$0xff] }
 0x1fc   : > { %v1303_v23 = vmul.f32 1.442695, %v1294_v19 }
 0x201   : > { %v1277_v9 = vpop.xlane.xlu0 %1276 }
 0x202   : > { %v1295_v10 = vsub.f32 %v1137_v52, %v1277_v9  ;;  %v902_v52 = vpop.f32.mrf.mxu0 }
 0x203   : > { %1490 = vmatpush.msra.mxu1 %v902_v52  ;;  %v1683_v52 = vld [vmem:[%s833_s2 + $0x8] sm:$0xff] }
 0x204   : > { %v1305_v11 = vmul.f32 1.442695, %v1295_v10 }
 0x206   : > { %2311 = vpow2.f32 %v1305_v11 }
 0x209   : > { %v1271_v14 = vpop.xlane.xlu0 %1270  ;;  %v1280_v15 = vpop.xlane.xlu1 %1279 }
 0x20a   : > { %v1293_v16 = vsub.f32 %v1085_v54, %v1271_v14  ;;  %v1296_v17 = vsub.f32 %v1163_v56, %v1280_v15  ;;  %v905_v57 = vpop.f32.mrf.mxu0  ;;  %v1541_v14 = vld [vmem:[%s3109_s8] sm:$0xff]  ;;  %v1543_v15 = vld [vmem:[%s3109_s8 + $0x10] sm:$0xff] }
 0x20b   : > { %1513 = vmatpush.msrb.mxu2 %v905_v57 }
 0x20c   : > { %v2312_v18 = vpop.eup %2311  ;;  %v1301_v20 = vmul.f32 1.442695, %v1293_v16  ;;  %v1307_v21 = vmul.f32 1.442695, %v1296_v17  ;;  %v1544_v16 = vld [vmem:[%s3109_s8 + $0x18] sm:$0xff] }
 0x20d   : > { %v1323_v22 = vsel %vm845_vm0, %v2312_v18, 0.0 }
 0x20e   : > { %2313 = vpow2.f32 %v1301_v20  ;;  %1324 = vadd.xlane.f32.xlu2 %v1323_v22 }
 0x20f   : > { %2315 = vpow2.f32 %v1307_v21 }
 0x210   : > { %2317 = vpow2.f32 %v1303_v23 }
 0x211   : > { %v1283_v24 = vpop.xlane.xlu2 %1282 }
 0x212   : > { %v1297_v25 = vsub.f32 %v1189_v60, %v1283_v24 }
 0x214   : > { %v2314_v26 = vpop.eup %2313  ;;  %v1309_v27 = vmul.f32 1.442695, %v1297_v25 }
 0x215   : > { %v2316_v28 = vpop.eup %2315  ;;  %v1317_v29 = vsel %vm845_vm0, %v2314_v26, 0.0 }
 0x216   : > { %2319 = vpow2.f32 %v1309_v27  ;;  %v1326_v30 = vsel %vm845_vm0, %v2316_v28, 0.0  ;;  %1318 = vadd.xlane.f32.xlu0 %v1317_v29  ;;  %v2318_v31 = vpop.eup %2317 }
 0x217   : > { %1327 = vadd.xlane.f32.xlu1 %v1326_v30  ;;  %v1320_v34 = vsel %vm845_vm0, %v2318_v31, 0.0 }
 0x21c   : > { %v2320_v32 = vpop.eup %2319 }
 0x21d   : > { %v1329_v33 = vsel %vm845_vm0, %v2320_v32, 0.0 }
 0x21e   : > { %1321 = vadd.xlane.f32.xlu0 %v1320_v34  ;;  %v2304_v34 = vld [vmem:[%s3110_s9] ss:$0 sm:$0xff] }
 0x21f   : > { %1330 = vadd.xlane.f32.xlu1 %v1329_v33 }
 0x221   : > { %v1289_v35 = vpop.xlane.xlu1 %1288 }
 0x222   : > { %v1299_v36 = vsub.f32 %v1241_v0, %v1289_v35 }
 0x224   : > { %v1313_v37 = vmul.f32 1.442695, %v1299_v36 }
 0x226   : > { %2321 = vpow2.f32 %v1313_v37 }
 0x229   : > { %v1286_v38 = vpop.xlane.xlu1 %1285  ;;  %v1292_v39 = vpop.xlane.xlu0 %1291 }
 0x22a   : > { %v1298_v40 = vsub.f32 %v1215_v2, %v1286_v38  ;;  %v1300_v41 = vsub.f32 %v1267_v4, %v1292_v39 }
 0x22c   : > { %v2322_v42 = vpop.eup %2321  ;;  %v1311_v43 = vmul.f32 1.442695, %v1298_v40  ;;  %v1315_v44 = vmul.f32 1.442695, %v1300_v41  ;;  %v1682_v40 = vld [vmem:[%s833_s2] sm:$0xff]  ;;  %s3157_s2 = sld [smem:[#allocation42_spill]] }
 0x22d   : > { %v1335_v45 = vsel %vm845_vm0, %v2322_v42, 0.0 }
 0x22e   : > { %2323 = vpow2.f32 %v1311_v43  ;;  %1336 = vadd.xlane.f32.xlu2 %v1335_v45 }
 0x22f   : > { %2325 = vpow2.f32 %v1315_v44 }
 0x234   : > { %v2324_v46 = vpop.eup %2323 }
 0x235   : > { %v2326_v47 = vpop.eup %2325  ;;  %v1332_v48 = vsel %vm845_vm0, %v2324_v46, 0.0 }
 0x236   : > { %1333 = vadd.xlane.f32.xlu0 %v1332_v48  ;;  %v1338_v49 = vsel %vm845_vm0, %v2326_v47, 0.0 }
 0x237   : > { %1339 = vadd.xlane.f32.xlu2 %v1338_v49 }
 0x281   : > { %v1325_v51 = vpop.xlane.xlu2 %1324 }
 0x282   : > { %2327 = vrcp.f32 %v1325_v51 }
 0x288   : > { %v2328_v53 = vpop.eup %2327 }
 0x289   : > { %v1351_v54 = vmul.f32 %v2328_v53, %v2312_v18  ;;  %v1319_v55 = vpop.xlane.xlu0 %1318 }
 0x28a   : > { %v1328_v56 = vpop.xlane.xlu1 %1327  ;;  %2329 = vrcp.f32 %v1319_v55 }
 0x28b   : > { %2331 = vrcp.f32 %v1328_v56  ;;  %2147 = vmatmul.msk.f32.vlgmr.msra.gmra.mxu2 %vm845_vm0, %v1351_v54  ;;  %v2575_v56 = vmov 32.0  }
 0x28c   : > { %1624 = vmatpush.msra.mxu2 %v1543_v15 }
 0x290   : > { %v2330_v58 = vpop.eup %2329 }
 0x291   : > { %v2332_v59 = vpop.eup %2331  ;;  %v1322_v60 = vpop.xlane.xlu0 %1321  ;;  %v1349_v61 = vmul.f32 %v2330_v58, %v2314_v26 }
 0x292   : > { %v1352_v62 = vmul.f32 %v2332_v59, %v2316_v28  ;;  %v1331_v63 = vpop.xlane.xlu1 %1330  ;;  %2333 = vrcp.f32 %v1322_v60 }
 0x293   : > { %2335 = vrcp.f32 %v1331_v63  ;;  %2145 = vmatmul.msk.f32.vlgmr.msrb.gmra.mxu0 %vm845_vm0, %v1349_v61 }
 0x294   : > { %2148 = vmatmul.msk.f32.vlgmr.msrb.gmra.mxu3 %vm845_vm0, %v1352_v62  ;;  %1566 = vmatpush.msrb.mxu0 %v1541_v14 }
 0x295   : > { %1653 = vmatpush.msrb.mxu3 %v1544_v16  ;;  %v1795_v16 = vld [vmem:[%s3115_s14 + $0x38] sm:$0xff] }
 0x298   : > { %v2334_v0 = vpop.eup %2333 }
 0x299   : > { %v2336_v1 = vpop.eup %2335  ;;  %v1350_v2 = vmul.f32 %v2334_v0, %v2318_v31 }
 0x29a   : > { %v1353_v3 = vmul.f32 %v2336_v1, %v2320_v32 }
 0x29b   : > { %2146 = vmatmul.msk.f32.vlgmr.msrb.gmra.mxu1 %vm845_vm0, %v1350_v2 }
 0x29c   : > { %2149 = vmatmul.msk.f32.vlgmr.msra.gmra.mxu0 %vm845_vm0, %v1353_v3  ;;  %1595 = vmatpush.msrb.mxu1 %v1542_v13 }
 0x2a1   : > { %v1337_v4 = vpop.xlane.xlu2 %1336 }
 0x2a2   : > { %2337 = vrcp.f32 %v1337_v4 }
 0x2a8   : > { %v2338_v5 = vpop.eup %2337 }
 0x2a9   : > { %v1355_v6 = vmul.f32 %v2338_v5, %v2322_v42  ;;  %v1334_v7 = vpop.xlane.xlu0 %1333 }
 0x2aa   : > { %v1340_v8 = vpop.xlane.xlu2 %1339  ;;  %2339 = vrcp.f32 %v1334_v7 }
 0x2ab   : > { %2341 = vrcp.f32 %v1340_v8  ;;  %2151 = vmatmul.msk.f32.vlgmr.msrb.gmra.mxu2 %vm845_vm0, %v1355_v6 }
 0x2ac   : > { %2343 = vrcp.f32 %v2575_v56  ;;  %v2308_v56 = vld [vmem:[%s3156_s5] ss:$0 sm:$0xff]  ;;  %s2489_s5 = scalar_lea.hbm %s2488_s21, 16 }
 0x2ad   : > { %p2490_p4 = scmp.ne.s32.totalorder %s2488_s21, %s2489_s5 }
 0x2af   : > { %p2491_p5 = pnand %p2490_p4, %p2725_p11 }
 0x2b0   : > { %v2340_v9 = vpop.eup %2339 }
 0x2b1   : > { %v2342_v10 = vpop.eup %2341  ;;  %v1354_v11 = vmul.f32 %v2340_v9, %v2324_v46  ;;  %v1752_v9 = vld [vmem:[%s3113_s12 + $0x18] sm:$0xff]  ;;  %p2492_p6 = pneg %p2491_p5 }
 0x2b2   : > { %v1356_v12 = vmul.f32 %v2342_v10, %v2326_v47  ;;  %v2344_v57 = vpop.eup %2343  ;;  %1775 = vmatpush.msra.mxu0 %v1752_v9  ;;  %v1751_v10 = vld [vmem:[%s3113_s12 + $0x10] sm:$0xff] }
 0x2b3   : > { %2150 = vmatmul.msk.f32.vlgmr.msra.gmra.mxu1 %vm845_vm0, %v1354_v11  ;;  %v1695_v58 = vmul.f32 32.0, %v2344_v57  ;;  %vm1699_vm2 = vweird.f32 %v2344_v57  ;;  %v1750_v11 = vld [vmem:[%s3113_s12 + $0x8] sm:$0xff] }
 0x2b4   : > { %2152 = vmatmul.msk.f32.vlgmr.msra.gmra.mxu3 %vm845_vm0, %v1356_v12  ;;  %1776 = vmatpush.msra.mxu0 %v1751_v10  ;;  %v1749_v12 = vld [vmem:[%s3113_s12] sm:$0xff] }
 0x2b5   : > { %v1696_v59 = vsub.f32 1.0, %v1695_v58  ;;  %1815 = vmatpush.msra.mxu1 %v1795_v16 }
 0x2b6   : > { %1777 = vmatpush.msra.mxu0 %v1750_v11 }
 0x2b7   : > { %v1697_v60 = vmul.f32 %v2344_v57, %v1696_v59 }
 0x2b8   : > { %1778 = vmatpush.msra.mxu0 %v1749_v12 }
 0x2b9   : > { %v1698_v61 = vadd.f32 %v2344_v57, %v1697_v60 }
 0x2bb   : > { %v2993_v62 = vsel %vm1699_vm2, %v2344_v57, %v1698_v61 }
 0x30e   : > { %v1423_v17 = vpop.f32.mrf.mxu2 }
 0x30f   : > { %2155 = vmatmul.msk.f32.vlgmr.msrb.gmra.mxu1 %vm845_vm0, %v1423_v17  ;;  %v1794_v17 = vld [vmem:[%s3115_s14 + $0x30] sm:$0xff] }
 0x310   : > { %v1377_v18 = vpop.f32.mrf.mxu0  ;;  %1816 = vmatpush.msra.mxu1 %v1794_v17 }
 0x311   : > { %2153 = vmatmul.msk.f32.vlgmr.msrb.gmra.mxu0 %vm845_vm0, %v1377_v18  ;;  %v1793_v18 = vld [vmem:[%s3115_s14 + $0x28] sm:$0xff] }
 0x312   : > { %1817 = vmatpush.msra.mxu1 %v1793_v18 }
 0x317   : > { %v1446_v19 = vpop.f32.mrf.mxu3 }
 0x318   : > { %2156 = vmatmul.msk.f32.gmra.mxu1 %vm845_vm0, %v1446_v19  ;;  %v1400_v20 = vpop.f32.mrf.mxu1 }
 0x319   : > { %v1469_v21 = vpop.f32.mrf.mxu0  ;;  %2154 = vmatmul.msk.f32.gmra.mxu0 %vm845_vm0, %v1400_v20 }
 0x31a   : > { %2157 = vmatmul.msk.f32.vlgmr.msra.gmra.mxu2 %vm845_vm0, %v1469_v21  ;;  %v1792_v21 = vld [vmem:[%s3115_s14 + $0x20] sm:$0xff] }
 0x31b   : > { %1818 = vmatpush.msra.mxu1 %v1792_v21 }
 0x32e   : > { %v1515_v22 = vpop.f32.mrf.mxu2 }
 0x32f   : > { %2159 = vmatmul.msk.f32.vlgmr.msrb.gmra.mxu3 %vm845_vm0, %v1515_v22 }
 0x330   : > { %v1492_v23 = vpop.f32.mrf.mxu1 }
 0x331   : > { %2158 = vmatmul.msk.f32.gmra.mxu2 %vm845_vm0, %v1492_v23 }
 0x337   : > { %v1538_v24 = vpop.f32.mrf.mxu3 }
 0x338   : > { %2160 = vmatmul.msk.f32.gmra.mxu3 %vm845_vm0, %v1538_v24 }
 0x38c   : > { %v1597_v26 = vpop.f32.mrf.mxu1 }
 0x38d   : > { %v1663_v29 = vsel %vm1661_vm1, %v1597_v26, 0.0 }
 0x38e   : > { %v1568_v25 = vpop.f32.mrf.mxu0 }
 0x38f   : > { %v1662_v28 = vsel %vm1661_vm1, %v1568_v25, 0.0  ;;  %v1791_v25 = vld [vmem:[%s3115_s14 + $0x18] sm:$0xff] }
 0x390   : > { %v1664_v31 = vadd.f32 %v1663_v29, %v1662_v28  ;;  %1819 = vmatpush.msra.mxu1 %v1791_v25  ;;  %v2309_v25 = vld [vmem:[%s3157_s2] ss:$0 sm:$0xff]  ;;  %s2493_s2 = scalar_lea.hbm %s3159_s24, 32 }
 0x391   : > { %p2495_p8 = scmp.lt.s32.totalorder %s2493_s2, %s2489_s5 }
 0x393   : > { %p2496_p9 = por %p2495_p8, %p2494_p7 }
 0x395   : > { %v1600_v38 = vpop.f32.mrf.mxu1  ;;  %p2497_p10 = pnand %p2496_p9, %p2492_p6 }
 0x396   : > { %v1571_v35 = vpop.f32.mrf.mxu0  ;;  %v1670_v43 = vsel %vm1661_vm1, %v1600_v38, 0.0 }
 0x397   : > { %v1669_v41 = vsel %vm1661_vm1, %v1571_v35, 0.0 }
 0x398   : > { %v1671_v46 = vadd.f32 %v1670_v43, %v1669_v41 }
 0x39d   : > { %v1626_v27 = vpop.f32.mrf.mxu2 }
 0x39e   : > { %v1665_v30 = vsel %vm1661_vm1, %v1626_v27, 0.0  ;;  %v1790_v27 = vld [vmem:[%s3115_s14 + $0x10] sm:$0xff] }
 0x39f   : > { %v1666_v32 = vadd.f32 %v1665_v30, %v1664_v31  ;;  %1820 = vmatpush.msra.mxu1 %v1790_v27  ;;  %v2310_v27 = vld [vmem:[%s3158_s19] ss:$0 sm:$0xff] }
 0x3b2   : > { %v1655_v33 = vpop.f32.mrf.mxu3 }
 0x3b3   : > { %v1667_v36 = vsel %vm1661_vm1, %v1655_v33, 0.0 }
 0x3b4   : > { %v1668_v37 = vadd.f32 %v1667_v36, %v1666_v32  ;;  %v1629_v39 = vpop.f32.mrf.mxu2  ;;  %v2305_v32 = vld [vmem:[%s3111_s10] ss:$0 sm:$0xff] }
 0x3b5   : > { %v1672_v44 = vsel %vm1661_vm1, %v1629_v39, 0.0 }
 0x3b6   : > { %v1680_v42 = vadd.f32 %v2304_v34, %v1668_v37  ;;  %v1673_v48 = vadd.f32 %v1672_v44, %v1671_v46  ;;  %v2306_v37 = vld [vmem:[%s3112_s11] ss:$0 sm:$0xff] }
 0x3b8   : > { %v1684_v45 = vadd.f32 %v1682_v40, %v1680_v42 }
 0x3ba   : > { %v1688_v47 = vsel %vm1661_vm1, %v1684_v45, 0.0 }
 0x3bb   : > { %v1658_v49 = vpop.f32.mrf.mxu3  ;;  %1689 = vadd.xlane.f32.xlu1 %v1688_v47  ;;  %v1789_v47 = vld [vmem:[%s3115_s14 + $0x8] sm:$0xff] }
 0x3bc   : > { %v1674_v50 = vsel %vm1661_vm1, %v1658_v49, 0.0  ;;  %1821 = vmatpush.msra.mxu1 %v1789_v47  ;;  %v2307_v49 = vld [vmem:[%s3114_s13] ss:$0 sm:$0xff] }
 0x3bd   : > { %v1675_v51 = vadd.f32 %v1674_v50, %v1673_v48  ;;  %v1788_v48 = vld [vmem:[%s3115_s14] sm:$0xff] }
 0x3be   : > { %1822 = vmatpush.msra.mxu1 %v1788_v48 }
 0x3bf   : > { %v1681_v53 = vadd.f32 %v2304_v34, %v1675_v51 }
 0x3c1   : > { %v1685_v54 = vadd.f32 %v1683_v52, %v1681_v53 }
 0x3c3   : > { %v1691_v55 = vsel %vm1661_vm1, %v1685_v54, 0.0 }
 0x3c4   : > { %1692 = vadd.xlane.f32.xlu2 %v1691_v55 }
 0x42e   : > { %v1690_v63 = vpop.xlane.xlu1 %1689 }
 0x42f   : > { %v1701_v0 = vmul.f32 %v2993_v62, %v1690_v63 }
 0x431   : > { %v1703_v1 = vsub.f32 %v1684_v45, %v1701_v0 }
 0x433   : > { %v1705_v2 = vmul.f32 %v1703_v1, %v1703_v1 }
 0x435   : > { %v1707_v3 = vsel %vm1661_vm1, %v1705_v2, 0.0 }
 0x436   : > { %1708 = vadd.xlane.f32.xlu0 %v1707_v3 }
 0x437   : > { %v1693_v4 = vpop.xlane.xlu2 %1692 }
 0x438   : > { %v1702_v5 = vmul.f32 %v2993_v62, %v1693_v4 }
 0x43a   : > { %v1704_v6 = vsub.f32 %v1685_v54, %v1702_v5 }
 0x43c   : > { %v1706_v7 = vmul.f32 %v1704_v6, %v1704_v6 }
 0x43e   : > { %v1710_v8 = vsel %vm1661_vm1, %v1706_v7, 0.0 }
 0x43f   : > { %1711 = vadd.xlane.f32.xlu1 %v1710_v8 }
 0x4a9   : > { %v1709_v13 = vpop.xlane.xlu0 %1708 }
 0x4aa   : > { %v1713_v14 = vmul.f32 %v1709_v13, %v2993_v62 }
 0x4ac   : > { %v1715_v15 = vadd.f32 1e-05, %v1713_v14 }
 0x4ae   : > { %2345 = vrsqrt.f32 %v1715_v15  ;;  %vm1723_vm4 = vweird.f32 %v1715_v15 }
 0x4b2   : > { %v1712_v19 = vpop.xlane.xlu1 %1711 }
 0x4b3   : > { %v1714_v20 = vmul.f32 %v1712_v19, %v2993_v62 }
 0x4b4   : > { %v2346_v22 = vpop.eup %2345 }
 0x4b5   : > { %v1718_v23 = vmul.f32 %v2346_v22, %v1715_v15  ;;  %v1716_v24 = vadd.f32 1e-05, %v1714_v20  ;;  %vm1724_vm3 = vweird.f32 %v2346_v22 }
 0x4b6   : > { %vm1725_vm5 = vmor %vm1723_vm4, %vm1724_vm3 }
 0x4b7   : > { %v1719_v26 = vmul.f32 %v2346_v22, %v1718_v23  ;;  %2347 = vrsqrt.f32 %v1716_v24  ;;  %vm1733_vm7 = vweird.f32 %v1716_v24 }
 0x4b9   : > { %v1720_v28 = vmul.f32 0.5, %v1719_v26 }
 0x4bb   : > { %v1721_v29 = vsub.f32 1.5, %v1720_v28 }
 0x4bd   : > { %v2348_v30 = vpop.eup %2347  ;;  %v1722_v31 = vmul.f32 %v2346_v22, %v1721_v29 }
 0x4be   : > { %v1728_v33 = vmul.f32 %v2348_v30, %v1716_v24  ;;  %vm1734_vm6 = vweird.f32 %v2348_v30 }
 0x4bf   : > { %v1726_v34 = vsel %vm1725_vm5, %v2346_v22, %v1722_v31  ;;  %vm1735_vm8 = vmor %vm1733_vm7, %vm1734_vm6 }
 0x4c0   : > { %v1737_v35 = vmul.f32 %v1726_v34, %v1703_v1  ;;  %v1729_v36 = vmul.f32 %v2348_v30, %v1728_v33 }
 0x4c2   : > { %v1742_v38 = vmul.f32 %v2305_v32, %v1737_v35  ;;  %v1730_v39 = vmul.f32 0.5, %v1729_v36 }
 0x4c4   : > { %v1731_v40 = vsub.f32 1.5, %v1730_v39  ;;  %v1747_v41 = vadd.f32 %v2306_v37, %v1742_v38 }
 0x4c6   : > { %v1732_v42 = vmul.f32 %v2348_v30, %v1731_v40  ;;  %2161 = vmatmul.msk.f32.vlgmr.msra.gmra.mxu0 %vm1661_vm1, %v1747_v41 }
 0x4c8   : > { %v1736_v43 = vsel %vm1735_vm8, %v2348_v30, %v1732_v42 }
 0x4c9   : > { %v1738_v44 = vmul.f32 %v1736_v43, %v1704_v6 }
 0x4cb   : > { %v1743_v45 = vmul.f32 %v2305_v32, %v1738_v44 }
 0x4cd   : > { %v1748_v46 = vadd.f32 %v2306_v37, %v1743_v45 }
 0x4cf   : > { %2162 = vmatmul.msk.f32.gmra.mxu0 %vm1661_vm1, %v1748_v46 }
 0x543   : > { %v1780_v50 = vpop.f32.mrf.mxu0 }
 0x544   : > { %v1781_v51 = vadd.f32 %v2307_v49, %v1780_v50 }
 0x546   : > { %v1786_v52 = vmax.f32 %v1781_v51, 0.0 }
 0x548   : > { %2163 = vmatmul.msk.f32.vlgmr.msra.gmra.mxu1 %vm1800_vm9, %v1786_v52 }
 0x54c   : > { %v1783_v53 = vpop.f32.mrf.mxu0 }
 0x54d   : > { %v1784_v54 = vadd.f32 %v2307_v49, %v1783_v53 }
 0x54f   : > { %v1787_v55 = vmax.f32 %v1784_v54, 0.0 }
 0x551   : > { %2164 = vmatmul.msk.f32.gmra.mxu1 %vm1800_vm9, %v1787_v55 }
 0x5c5   : > { %v1824_v57 = vpop.f32.mrf.mxu1 }
 0x5c6   : > { %v1825_v58 = vadd.f32 %v2308_v56, %v1824_v57 }
 0x5c8   : > { %v1830_v59 = vadd.f32 %v1825_v58, %v1747_v41 }
 0x5ca   : > { %v1834_v60 = vsel %vm1661_vm1, %v1830_v59, 0.0 }
 0x5cb   : > { %1835 = vadd.xlane.f32.xlu2 %v1834_v60 }
 0x5ce   : > { %v1827_v61 = vpop.f32.mrf.mxu1 }
 0x5cf   : > { %v1828_v63 = vadd.f32 %v2308_v56, %v1827_v61 }
 0x5d1   : > { %v1831_v0 = vadd.f32 %v1828_v63, %v1748_v46 }
 0x5d3   : > { %v1837_v1 = vsel %vm1661_vm1, %v1831_v0, 0.0 }
 0x5d4   : > { %1838 = vadd.xlane.f32.xlu0 %v1837_v1 }
 0x63e   : > { %v1836_v2 = vpop.xlane.xlu2 %1835 }
 0x63f   : > { %v1840_v3 = vmul.f32 %v1836_v2, %v2993_v62 }
 0x641   : > { %v1842_v4 = vsub.f32 %v1830_v59, %v1840_v3 }
 0x643   : > { %v1844_v5 = vmul.f32 %v1842_v4, %v1842_v4 }
 0x645   : > { %v1846_v6 = vsel %vm1661_vm1, %v1844_v5, 0.0 }
 0x646   : > { %1847 = vadd.xlane.f32.xlu1 %v1846_v6 }
 0x647   : > { %v1839_v7 = vpop.xlane.xlu0 %1838 }
 0x648   : > { %v1841_v8 = vmul.f32 %v1839_v7, %v2993_v62 }
 0x64a   : > { %v1843_v9 = vsub.f32 %v1831_v0, %v1841_v8 }
 0x64c   : > { %v1845_v10 = vmul.f32 %v1843_v9, %v1843_v9 }
 0x64e   : > { %v1849_v11 = vsel %vm1661_vm1, %v1845_v10, 0.0 }
 0x64f   : > { %1850 = vadd.xlane.f32.xlu2 %v1849_v11 }
 0x6b9   : > { %v1848_v12 = vpop.xlane.xlu1 %1847 }
 0x6ba   : > { %v1852_v13 = vmul.f32 %v1848_v12, %v2993_v62 }
 0x6bc   : > { %v1854_v14 = vadd.f32 1e-05, %v1852_v13 }
 0x6be   : > { %2349 = vrsqrt.f32 %v1854_v14  ;;  %vm1862_vm11 = vweird.f32 %v1854_v14 }
 0x6c2   : > { %v1851_v15 = vpop.xlane.xlu2 %1850 }
 0x6c3   : > { %v1853_v16 = vmul.f32 %v1851_v15, %v2993_v62 }
 0x6c4   : > { %v2350_v17 = vpop.eup %2349 }
 0x6c5   : > { %v1857_v18 = vmul.f32 %v2350_v17, %v1854_v14  ;;  %v1855_v19 = vadd.f32 1e-05, %v1853_v16  ;;  %vm1863_vm10 = vweird.f32 %v2350_v17 }
 0x6c6   : > { %vm1864_vm12 = vmor %vm1862_vm11, %vm1863_vm10 }
 0x6c7   : > { %v1858_v20 = vmul.f32 %v2350_v17, %v1857_v18  ;;  %2351 = vrsqrt.f32 %v1855_v19  ;;  %vm1872_vm14 = vweird.f32 %v1855_v19 }
 0x6c9   : > { %v1859_v21 = vmul.f32 0.5, %v1858_v20 }
 0x6cb   : > { %v1860_v22 = vsub.f32 1.5, %v1859_v21 }
 0x6cd   : > { %v2352_v23 = vpop.eup %2351  ;;  %v1861_v24 = vmul.f32 %v2350_v17, %v1860_v22 }
 0x6ce   : > { %v1867_v26 = vmul.f32 %v2352_v23, %v1855_v19  ;;  %vm1873_vm13 = vweird.f32 %v2352_v23 }
 0x6cf   : > { %v1865_v62 = vsel %vm1864_vm12, %v2350_v17, %v1861_v24  ;;  %vm1874_vm15 = vmor %vm1872_vm14, %vm1873_vm13 }
 0x6d0   : > { %v1876_v28 = vmul.f32 %v1865_v62, %v1842_v4  ;;  %v1868_v29 = vmul.f32 %v2352_v23, %v1867_v26 }
 0x6d2   : > { %v1881_v30 = vmul.f32 %v2309_v25, %v1876_v28  ;;  %v1869_v31 = vmul.f32 0.5, %v1868_v29 }
 0x6d4   : > { %v1886_v32 = vadd.f32 %v2310_v27, %v1881_v30  ;;  %v1870_v33 = vsub.f32 1.5, %v1869_v31 }
 0x6d6   : > { %v1871_v34 = vmul.f32 %v2352_v23, %v1870_v33  ;;  %1888 = vst.msk [vmem:[%s825_s17] sm:$0xff] %vm1661_vm1, %v1886_v32 }
 0x6d8   : > { %v1875_v35 = vsel %vm1874_vm15, %v2352_v23, %v1871_v34 }
 0x6d9   : > { %v1877_v36 = vmul.f32 %v1875_v35, %v1843_v9 }
 0x6db   : > { %v1882_v37 = vmul.f32 %v2309_v25, %v1877_v36 }
 0x6dd   : > { %v1887_v38 = vadd.f32 %v2310_v27, %v1882_v37 }
 0x6df   : > { %1889 = vst.msk [vmem:[%s825_s17 + $0x8] sm:$0xff] %vm1661_vm1, %v1887_v38 }
 0x6e0   : > { %2500 = shalt.err (!%p2497_p10)
}
 0x6e1   : > { %s2576_s27 = smov 128   ;;  %s2577_s19 = smov 8  }
 0x6e2   : > { %2219 = dma.vmem_to_hbm [thread:$0]  (%p2725_p11), %s1904_s6, 256, %s1906_s25, %s1891_s0, %s2576_s27, %s2576_s27, %s2577_s19  }
 0x6e3 PF: > { %s3161_s23 = sld [smem:[#allocation29_spill]]  ;;  %p2235_p13 = pnand %p2078_p2, %p2729_p12 }
 0x6e5   : > { %p2236_p1 = pneg %p2235_p13 }
 0x6e9   : > { %s1920_s17 = sand.u32 1, %s3161_s23  }
 0x6ea   : > { %s1921_s7 = scalar_lea.sflag [#allocation4], %s1920_s17 }
 0x6eb   : > { %2534 = dma.done.wait (%p2236_p1), %s1921_s7, 256  }
 0x6ec   : > { %2536 = vsyncadd (%p2236_p1), %s1921_s7, 4294967040  ;;  %s3163_s30 = sld [smem:[#allocation30_spill]]  ;;  %s3165_s27 = smov %s2543_s28 }
 0x6ed   : > { %s3164_s4 = sld [smem:[#allocation31_spill]]  ;;  %s3166_s28 = smov %s2547_s29 }
 0x6f2   : > { %p36_p0 = scmp.ge.s32.totalorder %s3163_s30, 4  }
 0x6f3   : > { %s3167_s29 = smov %s3164_s4 }
 0x6f4   :  { %38 = sbr.rel (!%p36_p0) target bundleno = 21 (0x15), region = 195 }
 0x6f9   :  { %1927 = vsyncpa [#allocation3], 1 }
 0x6fa   :  { %1929 = vsyncpa [#allocation3 + $0x1], 1 }
 0x6fb   :  { %1930 = vsyncpa [#allocation6], 1 }
 0x6fc   :  { %1932 = vsyncpa [#allocation6 + $0x1], 1 }
 0x6fd   :  { %1933 = vsyncpa [#allocation9], 1 }
 0x6fe   :  { %1934 = vsyncpa [#allocation12], 1 }
 0x6ff   :  { %1935 = vsyncpa [#allocation4], 1 }
 0x700   :  { %1937 = vsyncpa [#allocation4 + $0x1], 1 }

// kernel: tpu_custom_call.1
= control target key start
LH: loop header
LB: loop body
LE: loop exit
PB: predicated region body
PF: predicated region fallthrough
CT: control target
= control target key end

     0   :  { %s3101_s0 = inlined_call_operand.hbm [shape: f32[4,4,8,8], index: 0, kind: input, shape index: {}]   ;;  %s3102_s1 = inlined_call_operand.hbm [shape: f32[4,4,8,8], index: 1, kind: input, shape index: {}]   ;;  %s3103_s2 = inlined_call_operand.hbm [shape: f32[4,4,8,8], index: 2, kind: input, shape index: {}]   ;;  %s3104_s3 = inlined_call_operand.vmem [shape: f32[4,8,32], index: 3, kind: input, shape index: {}]   ;;  %s3105_s4 = inlined_call_operand.hbm [shape: bf16[1,8,8], index: 4, kind: input, shape index: {}]   ;;  %s3106_s5 = inlined_call_operand.hbm [shape: f32[8,8], index: 5, kind: input, shape index: {}]   ;;  %s3107_s6 = inlined_call_operand.hbm [shape: f32[8,8], index: 6, kind: input, shape index: {}]   ;;  %s3108_s7 = inlined_call_operand.hbm [shape: f32[8,8], index: 7, kind: input, shape index: {}]   ;;  %s3109_s8 = inlined_call_operand.vmem [shape: f32[4,8,32], index: 8, kind: input, shape index: {}]   ;;  %s3110_s9 = inlined_call_operand.vmem [shape: f32[1,32], index: 9, kind: input, shape index: {}]   ;;  %s3111_s10 = inlined_call_operand.vmem [shape: f32[1,32], index: 10, kind: input, shape index: {}]   ;;  %s3112_s11 = inlined_call_operand.vmem [shape: f32[1,32], index: 11, kind: input, shape index: {}]   ;;  %s3113_s12 = inlined_call_operand.vmem [shape: f32[32,64], index: 12, kind: input, shape index: {}]   ;;  %s3114_s13 = inlined_call_operand.vmem [shape: f32[1,64], index: 13, kind: input, shape index: {}]   ;;  %s3115_s14 = inlined_call_operand.vmem [shape: f32[64,32], index: 14, kind: input, shape index: {}]   ;;  %s3116_s15 = inlined_call_operand.vmem [shape: f32[1,32], index: 15, kind: input, shape index: {}]   ;;  %s3117_s16 = inlined_call_operand.vmem [shape: f32[1,32], index: 16, kind: input, shape index: {}]   ;;  %s3118_s17 = inlined_call_operand.vmem [shape: f32[1,32], index: 17, kind: input, shape index: {}]   ;;  %s3119_s18 = inlined_call_operand.hbm [shape: f32[4,8,32], index: 18, kind: output, shape index: {}]  }
   0x1   :  { %3127 = sst [smem:[#allocation34_spill]] %s3101_s0 }
   0x2   :  { %3128 = sst [smem:[#allocation35_spill]] %s3102_s1 }
   0x3   :  { %3129 = sst [smem:[#allocation36_spill]] %s3103_s2 }
   0x4   :  { %3130 = sst [smem:[#allocation37_spill]] %s3105_s4 }
   0x5   :  { %3131 = sst [smem:[#allocation38_spill]] %s3106_s5 }
   0x6   :  { %3132 = sst [smem:[#allocation39_spill]] %s3107_s6 }
   0x7   :  { %3133 = sst [smem:[#allocation40_spill]] %s3108_s7 }
   0x8   :  { %3134 = sst [smem:[#allocation41_spill]] %s3116_s15 }
   0x9   :  { %3135 = sst [smem:[#allocation42_spill]] %s3117_s16 }
   0xa   :  { %3136 = sst [smem:[#allocation43_spill]] %s3118_s17 }
   0xb   :  { %3137 = sst [smem:[#allocation44_spill]] %s3119_s18 }
   0xc   :  { %23 = vsyncpa [#allocation3], 0 }
   0xd   :  { %25 = vsyncpa [#allocation3 + $0x1], 0 }
   0xe   :  { %26 = vsyncpa [#allocation6], 0 }
   0xf   :  { %28 = vsyncpa [#allocation6 + $0x1], 0 }
  0x10   :  { %29 = vsyncpa [#allocation9], 0 }
  0x11   :  { %30 = vsyncpa [#allocation12], 0 }
  0x12   :  { %31 = vsyncpa [#allocation4], 0 }
  0x13   :  { %33 = vsyncpa [#allocation4 + $0x1], 0  ;;  %s2673_s27 = smov 0   ;;  %s2675_s28 = smov 0  }
  0x14   :  { %s2677_s29 = smov 0   ;;  %s2679_s30 = smov 0  }
  0x15 LB: > { %3138 = sst [smem:[#allocation29_spill]] %s2539_s27  ;;  %s2694_s0 = sadd.s32 4294967295, %s2551_s30   ;;  %s2551_s30 = sphi %s2679_s30, %s3163_s30   ;;  %s2547_s29 = sphi %s2677_s29, %s3167_s29   ;;  %s2543_s28 = sphi %s2675_s28, %s3166_s28   ;;  %s2539_s27 = sphi %s2673_s27, %s3165_s27  }
  0x16   : > { %s2072_s19 = sadd.s32 4294967294, %s2551_s30   ;;  %s2698_s1 = sadd.s32 1, %s2551_s30  }
  0x17   : > { %3139 = sst [smem:[#allocation30_spill]] %s2698_s1  ;;  %s46_s20 = sadd.s32 1, %s2547_s29 }
  0x18   : > { %s43_s21 = ssub.s32 %s2551_s30, %s2698_s1  ;;  %p53_p0 = scmp.ne.s32.totalorder %s2547_s29, %s2543_s28 }
  0x19   : > { %p44_p1 = scmp.eq.s32.totalorder %s43_s21, 0  ;;  %p54_p2 = scmp.eq.s32.totalorder %s2551_s30, 0 }
  0x1a   : > { %p59_p3 = scmp.ne.s32.totalorder %s2543_s28, %s2539_s27  ;;  %p60_p4 = scmp.eq.s32.totalorder %s2694_s0, 0 }
  0x1b   : > { %s2710_s22 = scalar_select %p44_p1, %s2547_s29, %s46_s20  }
  0x1c   : > { %p2712_p5 = por %p54_p2, %p53_p0  ;;  %p2718_p6 = por %p60_p4, %p59_p3 }
  0x1d   : > { %3140 = sst [smem:[#allocation31_spill]] %s2710_s22  ;;  %p455_p7 = scmp.eq.s32.totalorder %s2694_s0, 1 }
  0x1e   : > { %p461_p8 = scmp.eq.s32.totalorder %s2072_s19, 1  ;;  %p2073_p9 = scmp.ge.s32.totalorder %s2551_s30, 1 }
  0x1f   : > { %p468_p10 = scmp.lt.s32.totalorder %s2551_s30, 3  ;;  %p2725_p11 = por %p455_p7, %p53_p0 }
  0x20   : > { %p2729_p12 = por %p461_p8, %p59_p3  ;;  %s3148_s4 = sld [smem:[#allocation37_spill]] }
  0x21   : > { %s3143_s24 = scalar_select %p2725_p11, 1, 0 }
  0x22   : > { %s3145_s25 = scalar_select %p2729_p12, 1, 0 }
  0x23   : > { %3144 = sst [smem:[#allocation32_spill]] %s3143_s24  ;;  %p2733_p13 = pnand %p2073_p9, %p468_p10 }
  0x24   : > { %3146 = sst [smem:[#allocation33_spill]] %s3145_s25  ;;  %s2553_s19 = smov [#allocation8]  }
  0x25   : > { %p2221_p1 = pneg %p2733_p13  ;;  %s482_s1 = sshll.u32 %s2553_s19, 4  ;;  %s483_s1 = int_to_ptr.vmem [resolvable:$true] %s482_s1 }
  0x26   : > { %s480_s22 = sshll.u32 %s3148_s4, 4  ;;  %s3149_s6 = sld [smem:[#allocation39_spill]]  ;;  %s481_s22 = int_to_ptr.hbm [resolvable:$true] %s480_s22 }
  0x27   : > { %p2747_p0 = pnand %p2221_p1, %p60_p4  ;;  %s2554_s20 = smov [#allocation11]  }
  0x28   : > { %s506_s21 = sshll.u32 %s2554_s20, 4  ;;  %s3151_s5 = sld [smem:[#allocation38_spill]]  ;;  %s507_s21 = int_to_ptr.vmem [resolvable:$true] %s506_s21 }
  0x29   : > { %2224 = dma.hbm_to_vmem [thread:$0]  (!%p2747_p0), %s481_s22, 64, %s483_s1, [#allocation9]  }
  0x2a   : > { %s2555_s24 = smov [#allocation10]   ;;  %s3152_s7 = sld [smem:[#allocation40_spill]] }
  0x2b   : > { %s2556_s20 = smov [#allocation13]   ;;  %p2078_p2 = scmp.ge.s32.totalorder %s2551_s30, 2 }
  0x2c   : > { %s504_s18 = sshll.u32 %s3149_s6, 4  ;;  %s494_s6 = sshll.u32 %s2555_s24, 4  ;;  %s505_s18 = int_to_ptr.hbm [resolvable:$true] %s504_s18  ;;  %s495_s6 = int_to_ptr.vmem [resolvable:$true] %s494_s6 }
  0x2d   : > { %2230 = dma.hbm_to_vmem [thread:$0]  (!%p2747_p0), %s505_s18, 128, %s507_s21, [#allocation12]  }
  0x2e   : > { %s492_s27 = sshll.u32 %s3151_s5, 4  ;;  %s518_s1 = sshll.u32 %s2556_s20, 4  ;;  %s493_s27 = int_to_ptr.hbm [resolvable:$true] %s492_s27  ;;  %s519_s1 = int_to_ptr.vmem [resolvable:$true] %s518_s1 }
  0x2f   : > { %2227 = dma.hbm_to_vmem [thread:$0]  (!%p2747_p0), %s493_s27, 128, %s495_s6, [#allocation9]  }
  0x30   : > { %s516_s15 = sshll.u32 %s3152_s7, 4  ;;  %555 = sbr.rel (%p2078_p2) target bundleno = 92 (0x5c), region = 72  ;;  %s517_s15 = int_to_ptr.hbm [resolvable:$true] %s516_s15 }
  0x31   : > { %2233 = dma.hbm_to_vmem [thread:$0]  (!%p2747_p0), %s517_s15, 128, %s519_s1, [#allocation12]  }
  0x35   : > { %s559_s4 = sand.u32 1, %s2547_s29   ;;  %s2770_s16 = sshll.u32 %s2551_s30, 4 }
  0x36   : > { %s2772_s6 = sshll.u32 %s559_s4, 6  ;;  %s3153_s15 = sld [smem:[#allocation34_spill]] }
  0x37   : > { %s2184_s25 = scalar_select %p2712_p5, [#allocation0], [#allocation21] }
  0x38   : > { %s563_s19 = scalar_lea.vmem [#allocation2], %s2772_s6  ;;  %s2557_s20 = smov 512  }
  0x39   : > { %s583_s27 = sshll.u32 %s563_s19, 4  ;;  %s573_s24 = sld [smem:[%s2184_s25]]   ;;  %s584_s27 = int_to_ptr.vmem [resolvable:$true] %s583_s27 }
  0x3a   : > { %2185 = sst [smem:[#allocation16]] (%p2712_p5), %s2557_s20  ;;  %s2558_s1 = smov 256  }
  0x3b   : > { %2186 = sst [smem:[#allocation16 + $0x1]] (%p2712_p5), %s2558_s1  ;;  %s2559_s17 = smov 2  }
  0x3c   : > { %s568_s22 = scalar_lea.hbm %s3153_s15, %s2770_s16  ;;  %2187 = sst [smem:[#allocation16 + $0x2]] (%p2712_p5), %s2559_s17 }
  0x3d   : > { %s581_s21 = sshll.u32 %s568_s22, 4  ;;  %s2560_s18 = smov 128   ;;  %s582_s21 = int_to_ptr.hbm [resolvable:$true] %s581_s21 }
  0x3e   : > { %2188 = sst [smem:[#allocation16 + $0x3]] (%p2712_p5), %s2560_s18  ;;  %s2561_s25 = smov 8  }
  0x3f   : > { %s2082_s15 = sshll.u32 %s573_s24, 26  ;;  %2189 = sst [smem:[#allocation16 + $0x4]] (%p2712_p5), %s2560_s18 }
  0x40   : > { %s2083_s22 = sadd.s32 134217728, %s2082_s15  ;;  %2190 = sst [smem:[#allocation16 + $0x5]] (%p2712_p5), %s2561_s25 }
  0x41   : > { %s560_s19 = scalar_lea.sflag [#allocation3], %s559_s4  ;;  %s2562_s5 = smov [#allocation15]  }
  0x42   : > { %2191 = dma.general (%p2712_p5), %s582_s21, 1024, %s584_s27, %s560_s19, %s2562_s5, [#allocation16], %s2083_s22, 0  }
  0x43   : > { %s606_s20 = sand.u32 1, %s2551_s30   ;;  %s3154_s17 = sld [smem:[#allocation35_spill]] }
  0x44   : > { %s2192_s15 = scalar_select %p2712_p5, [#allocation0], [#allocation22] }
  0x45   : > { %s610_s25 = scalar_lea.vmem [#allocation5], %s2772_s6  ;;  %s2563_s21 = smov 512  }
  0x46   : > { %s630_s7 = sshll.u32 %s610_s25, 4  ;;  %s620_s5 = sld [smem:[%s2192_s15]]   ;;  %s631_s7 = int_to_ptr.vmem [resolvable:$true] %s630_s7 }
  0x47   : > { %2193 = sst [smem:[#allocation18]] (%p2712_p5), %s2563_s21  ;;  %s2564_s27 = smov 256  }
  0x48   : > { %2194 = sst [smem:[#allocation18 + $0x1]] (%p2712_p5), %s2564_s27  ;;  %s2565_s22 = smov 2  }
  0x49   : > { %s615_s18 = scalar_lea.hbm %s3154_s17, %s2770_s16  ;;  %2195 = sst [smem:[#allocation18 + $0x2]] (%p2712_p5), %s2565_s22 }
  0x4a   : > { %s628_s4 = sshll.u32 %s615_s18, 4  ;;  %s2566_s19 = smov 128   ;;  %s629_s4 = int_to_ptr.hbm [resolvable:$true] %s628_s4 }
  0x4b   : > { %2196 = sst [smem:[#allocation18 + $0x3]] (%p2712_p5), %s2566_s19  ;;  %s2567_s17 = smov 8  }
  0x4c   : > { %s2087_s1 = sshll.u32 %s620_s5, 26  ;;  %2197 = sst [smem:[#allocation18 + $0x4]] (%p2712_p5), %s2566_s19 }
  0x4d   : > { %s2088_s24 = sadd.s32 134217728, %s2087_s1  ;;  %2198 = sst [smem:[#allocation18 + $0x5]] (%p2712_p5), %s2567_s17 }
  0x4e   : > { %s607_s18 = scalar_lea.sflag [#allocation6], %s606_s20  ;;  %s2568_s15 = smov [#allocation17]  }
  0x4f   : > { %2199 = dma.general (%p2712_p5), %s629_s4, 1024, %s631_s7, %s607_s18, %s2568_s15, [#allocation18], %s2088_s24, 0  }
  0x50   : > { %s3155_s27 = sld [smem:[#allocation36_spill]]  ;;  %s657_s1 = scalar_lea.vmem [#allocation7], %s2772_s6 }
  0x51   : > { %s2200_s22 = scalar_select %p2712_p5, [#allocation0], [#allocation23] }
  0x52   : > { %s677_s20 = sshll.u32 %s657_s1, 4  ;;  %s2569_s7 = smov 512   ;;  %s678_s20 = int_to_ptr.vmem [resolvable:$true] %s677_s20 }
  0x53   : > { %s667_s17 = sld [smem:[%s2200_s22]]   ;;  %s2570_s4 = smov 256  }
  0x54   : > { %2201 = sst [smem:[#allocation20]] (%p2712_p5), %s2569_s7  ;;  %s2571_s24 = smov 2  }
  0x55   : > { %2202 = sst [smem:[#allocation20 + $0x1]] (%p2712_p5), %s2570_s4  ;;  %s2573_s25 = smov 8  }
  0x56   : > { %s662_s5 = scalar_lea.hbm %s3155_s27, %s2770_s16  ;;  %2203 = sst [smem:[#allocation20 + $0x2]] (%p2712_p5), %s2571_s24 }
  0x57   : > { %s675_s19 = sshll.u32 %s662_s5, 4  ;;  %s2572_s16 = smov 128   ;;  %s676_s19 = int_to_ptr.hbm [resolvable:$true] %s675_s19 }
  0x58   : > { %2204 = sst [smem:[#allocation20 + $0x3]] (%p2712_p5), %s2572_s16  ;;  %s2574_s21 = smov [#allocation19]  }
  0x59   : > { %s2092_s15 = sshll.u32 %s667_s17, 26  ;;  %2205 = sst [smem:[#allocation20 + $0x4]] (%p2712_p5), %s2572_s16 }
  0x5a   : > { %s2093_s6 = sadd.s32 134217728, %s2092_s15  ;;  %2206 = sst [smem:[#allocation20 + $0x5]] (%p2712_p5), %s2573_s25 }
  0x5b   : > { %2207 = dma.general (%p2712_p5), %s676_s19, 1024, %s678_s20, %s607_s18, %s2574_s21, [#allocation20], %s2093_s6, 0  }
  0x5c PF: > { %711 = sbr.rel (%p2733_p13) target bundleno = 1763 (0x6e3), region = 92  ;;  %s2841_s27 = sand.u32 (!%p2733_p13), 1, %s2543_s28  }
  0x5d   : > { %s2095_s5 = sshll.u32 (!%p2733_p13), %s2841_s27, 6  ;;  %s714_s22 = scalar_lea.sflag (!%p2733_p13), [#allocation3], %s2841_s27 }
  0x5e   : > { %s2845_s1 = scalar_lea.vmem (!%p2733_p13), [#allocation2], %s2095_s5 }
  0x61   : > { %2518 = dma.done.wait (%p2718_p6), %s714_s22, 1024  }
  0x62   : > { %2520 = vsyncadd (%p2718_p6), %s714_s22, 4294966272  ;;  %s723_s2 = sand.u32 1, %s2694_s0   ;;  %s2852_s18 = scalar_lea.vmem [#allocation5], %s2095_s5 }
  0x63   : > { %s724_s26 = scalar_lea.sflag [#allocation6], %s723_s2 }
  0x64   : > { %2522 = dma.done.wait (%p2718_p6), %s724_s26, 2048  }
  0x65   : > { %2524 = vsyncadd (%p2718_p6), %s724_s26, 4294965248  ;;  %s2858_s19 = scalar_lea.vmem [#allocation7], %s2095_s5 }
  0x66   : > { %2526 = dma.done.wait (%p60_p4), [#allocation9], 192  }
  0x67   : > { %2528 = vsyncadd (%p60_p4), [#allocation9], 4294967104 }
  0x68   : > { %2530 = dma.done.wait (%p60_p4), [#allocation12], 256  }
  0x69   : > { %2532 = vsyncadd (%p60_p4), [#allocation12], 4294967040  ;;  %vm845_vm0 = vcmask 64512   ;;  %v844_v0 = vld [vmem:[#allocation10] sm:$0xff]  ;;  %v843_v1 = vld [vmem:[%s2845_s1 + $0x38] sm:$0xff]  ;;  %s2103_s6 = sshll.u32 %s2694_s0, 1 }
  0x6a   : > { %v993_v2 = vld [vmem:[#allocation13] sm:$0xff]  ;;  %2174 = vmatpush.msra.mxu2 %v844_v0  ;;  %v919_v3 = vld [vmem:[#allocation11] sm:$0xff]  ;;  %v911_v4 = vld [vmem:[%s2852_s18] sm:$0xff]  ;;  %885 = vmatpush.msra.mxu0 %v844_v0  ;;  %p830_p3 = scmp.lt.s32.totalorder %s2103_s6, 3  ;;  %vm1661_vm1 = vcmask 261120   ;;  %vm1800_vm9 = vcmask 523264  }
  0x6b   : > { %2112 = vmatmul.msk.f32.vlgmr.msra.gmra.mxu2 %vm845_vm0, %v843_v1  ;;  %959 = vmatpush.msra.mxu1 %v919_v3  ;;  %v985_v5 = vld [vmem:[%s2858_s19] sm:$0xff]  ;;  %v912_v6 = vld [vmem:[%s2852_s18 + $0x8] sm:$0xff]  ;;  %v913_v9 = vld [vmem:[%s2852_s18 + $0x10] sm:$0xff]  ;;  %s3156_s5 = sld [smem:[#allocation41_spill]]  ;;  %s2102_s23 = sshll.u32 %s2841_s27, 4 }
  0x6c   : > { %1033 = vmatpush.msrb.mxu2 %v993_v2  ;;  %2113 = vmatmul.msk.f32.vlgmr.msra.gmra.mxu1 %vm845_vm0, %v911_v4  ;;  %v836_v7 = vld [vmem:[%s2845_s1] sm:$0xff]  ;;  %v986_v8 = vld [vmem:[%s2858_s19 + $0x8] sm:$0xff]  ;;  %v918_v11 = vld [vmem:[%s2852_s18 + $0x38] sm:$0xff]  ;;  %s3169_s6 = smov (!%p830_p3, %s2103_s6), 3  ;;  %s2173_s20 = sshll.u32 %s2694_s0, 4 }
  0x6d   : > { %2175 = vmatpush.msra.mxu3 %v919_v3  ;;  %2105 = vmatmul.msk.f32.vlgmr.msra.gmra.mxu0 %vm845_vm0, %v836_v7  ;;  %v837_v10 = vld [vmem:[%s2845_s1 + $0x8] sm:$0xff]  ;;  %v987_v12 = vld [vmem:[%s2858_s19 + $0x10] sm:$0xff]  ;;  %v914_v13 = vld [vmem:[%s2852_s18 + $0x18] sm:$0xff]  ;;  %s2104_s25 = sshll.u32 %s3169_s6, 3  ;;  %s825_s17 = scalar_lea.vmem [#allocation14], %s2102_s23 }
  0x6e   : > { %2120 = vmatmul.msk.f32.vlgmr.msra.gmra.mxu3 %vm845_vm0, %v918_v11  ;;  %v838_v14 = vld [vmem:[%s2845_s1 + $0x10] sm:$0xff]  ;;  %v988_v15 = vld [vmem:[%s2858_s19 + $0x18] sm:$0xff]  ;;  %v915_v16 = vld [vmem:[%s2852_s18 + $0x20] sm:$0xff]  ;;  %s833_s2 = scalar_lea.vmem %s3104_s3, %s2104_s25  ;;  %s3159_s24 = sld [smem:[#allocation44_spill]] }
  0x6f   : > { %v839_v17 = vld [vmem:[%s2845_s1 + $0x18] sm:$0xff]  ;;  %v989_v18 = vld [vmem:[%s2858_s19 + $0x20] sm:$0xff]  ;;  %v916_v19 = vld [vmem:[%s2852_s18 + $0x28] sm:$0xff]  ;;  %s1903_s6 = sshll.u32 %s825_s17, 4  ;;  %s1891_s0 = scalar_lea.sflag [#allocation4], %s2841_s27  ;;  %s1904_s6 = int_to_ptr.vmem [resolvable:$true] %s1903_s6 }
  0x70   : > { %v990_v20 = vld [vmem:[%s2858_s19 + $0x28] sm:$0xff]  ;;  %v917_v21 = vld [vmem:[%s2852_s18 + $0x30] sm:$0xff]  ;;  %v992_v23 = vld [vmem:[%s2858_s19 + $0x38] sm:$0xff] }
  0x71   : > { %v991_v22 = vld [vmem:[%s2858_s19 + $0x30] sm:$0xff]  ;;  %v1059_v46 = vld [vmem:[#allocation8] sm:$0xf]  ;;  %s3158_s19 = sld [smem:[#allocation43_spill]] }
  0x72   : > { %v1060_v47 = vunpack.c.l.bf16 %v1059_v46  ;;  %v840_v7 = vld [vmem:[%s2845_s1 + $0x20] sm:$0xff] }
  0x73   : > { %2121 = vmatmul.msk.f32.vlgmr.msrb.gmra.mxu2 %vm845_vm0, %v985_v5 }
  0x74   : > { %2114 = vmatmul.msk.f32.gmra.mxu1 %vm845_vm0, %v912_v6  ;;  %s1902_s16 = scalar_lea.hbm %s3159_s24, %s2173_s20 }
  0x75   : > { %2106 = vmatmul.msk.f32.gmra.mxu0 %vm845_vm0, %v837_v10  ;;  %s1905_s25 = sshll.u32 %s1902_s16, 4  ;;  %s1906_s25 = int_to_ptr.hbm [resolvable:$true] %s1905_s25 }
  0x76   : > { %s2487_s21 = sshra.s32 %s1906_s25, 4  ;;  %s2488_s21 = int_to_ptr.hbm [resolvable:$true] %s2487_s21 }
  0x77   : > { %p2494_p7 = scmp.lt.s32.totalorder %s2488_s21, %s3159_s24 }
  0x7b   : > { %2122 = vmatmul.msk.f32.gmra.mxu2 %vm845_vm0, %v986_v8  ;;  %v841_v8 = vld [vmem:[%s2845_s1 + $0x28] sm:$0xff] }
  0x7c   : > { %2115 = vmatmul.msk.f32.gmra.mxu1 %vm845_vm0, %v913_v9 }
  0x7d   : > { %2107 = vmatmul.msk.f32.gmra.mxu0 %vm845_vm0, %v838_v14 }
  0x83   : > { %2123 = vmatmul.msk.f32.gmra.mxu2 %vm845_vm0, %v987_v12  ;;  %v842_v12 = vld [vmem:[%s2845_s1 + $0x30] sm:$0xff] }
  0x84   : > { %2116 = vmatmul.msk.f32.gmra.mxu1 %vm845_vm0, %v914_v13 }
  0x85   : > { %2108 = vmatmul.msk.f32.gmra.mxu0 %vm845_vm0, %v839_v17 }
  0x8b   : > { %2124 = vmatmul.msk.f32.gmra.mxu2 %vm845_vm0, %v988_v15 }
  0x8c   : > { %2117 = vmatmul.msk.f32.gmra.mxu1 %vm845_vm0, %v915_v16 }
  0x8d   : > { %2109 = vmatmul.msk.f32.gmra.mxu0 %vm845_vm0, %v840_v7 }
  0x93   : > { %2125 = vmatmul.msk.f32.gmra.mxu2 %vm845_vm0, %v989_v18 }
  0x94   : > { %2118 = vmatmul.msk.f32.gmra.mxu1 %vm845_vm0, %v916_v19 }
  0x95   : > { %2110 = vmatmul.msk.f32.gmra.mxu0 %vm845_vm0, %v841_v8 }
  0x9b   : > { %2126 = vmatmul.msk.f32.gmra.mxu2 %vm845_vm0, %v990_v20 }
  0x9c   : > { %2119 = vmatmul.msk.f32.gmra.mxu1 %vm845_vm0, %v917_v21 }
  0x9d   : > { %2111 = vmatmul.msk.f32.gmra.mxu0 %vm845_vm0, %v842_v12 }
  0xa3   : > { %2127 = vmatmul.msk.f32.gmra.mxu2 %vm845_vm0, %v991_v22 }
  0xab   : > { %2128 = vmatmul.msk.f32.gmra.mxu2 %vm845_vm0, %v992_v23 }
  0xe9   : > { %v961_v24 = vpop.f32.mrf.mxu1 }
  0xea   : > { %2129 = vmatpush.xpose.msk.msrb.mxu3 %vm845_vm0, %v961_v24  ;;  %v887_v27 = vpop.f32.mrf.mxu0 }
  0xeb   : > { %1375 = vmatpush.msrb.mxu0 %v887_v27 }
  0xee   : > { %v908_v25 = vpop.f32.mrf.mxu2 }
  0xf1   : > { %v964_v26 = vpop.f32.mrf.mxu1  ;;  %v982_v40 = vpop.f32.mrf.mxu3 }
  0xf2   : > { %2131 = vmatpush.xpose.msk.msra.mxu3 %vm845_vm0, %v964_v26  ;;  %v890_v30 = vpop.f32.mrf.mxu0 }
  0xf3   : > { %1398 = vmatpush.msrb.mxu1 %v890_v30 }
  0xf6   : > { %v1035_v28 = vpop.f32.mrf.mxu2 }
  0xf7   : > { %2130 = vmatmul.msk.f32.vlgmr.msrb.gmra.mxu3 %vm845_vm0, %v1035_v28 }
  0xf9   : > { %v967_v29 = vpop.f32.mrf.mxu1 }
  0xfa   : > { %2133 = vmatpush.xpose.msk.msrb.mxu3 %vm845_vm0, %v967_v29  ;;  %v893_v33 = vpop.f32.mrf.mxu0 }
  0xfb   : > { %1421 = vmatpush.msra.mxu2 %v893_v33 }
  0xfe   : > { %v1038_v31 = vpop.f32.mrf.mxu2 }
  0xff   : > { %2132 = vmatmul.msk.f32.vlgmr.msra.gmra.mxu3 %vm845_vm0, %v1038_v31 }
 0x101   : > { %v970_v32 = vpop.f32.mrf.mxu1 }
 0x102   : > { %2135 = vmatpush.xpose.msk.msra.mxu3 %vm845_vm0, %v970_v32  ;;  %v896_v42 = vpop.f32.mrf.mxu0 }
 0x106   : > { %v1041_v34 = vpop.f32.mrf.mxu2 }
 0x107   : > { %2134 = vmatmul.msk.f32.vlgmr.msrb.gmra.mxu3 %vm845_vm0, %v1041_v34 }
 0x109   : > { %v973_v35 = vpop.f32.mrf.mxu1 }
 0x10a   : > { %2137 = vmatpush.xpose.msk.msrb.mxu3 %vm845_vm0, %v973_v35 }
 0x10e   : > { %v1044_v36 = vpop.f32.mrf.mxu2 }
 0x10f   : > { %2136 = vmatmul.msk.f32.vlgmr.msra.gmra.mxu3 %vm845_vm0, %v1044_v36 }
 0x111   : > { %v976_v37 = vpop.f32.mrf.mxu1 }
 0x112   : > { %2139 = vmatpush.xpose.msk.msra.mxu3 %vm845_vm0, %v976_v37 }
 0x116   : > { %v1047_v38 = vpop.f32.mrf.mxu2 }
 0x117   : > { %2138 = vmatmul.msk.f32.vlgmr.msrb.gmra.mxu3 %vm845_vm0, %v1047_v38 }
 0x119   : > { %v979_v39 = vpop.f32.mrf.mxu1 }
 0x11a   : > { %2141 = vmatpush.xpose.msk.msrb.mxu3 %vm845_vm0, %v979_v39 }
 0x11e   : > { %v1050_v41 = vpop.f32.mrf.mxu2 }
 0x11f   : > { %2140 = vmatmul.msk.f32.vlgmr.msra.gmra.mxu3 %vm845_vm0, %v1050_v41 }
 0x120   : > { %2143 = vmatpush.xpose.msk.msra.mxu3 %vm845_vm0, %v982_v40 }
 0x126   : > { %v1053_v43 = vpop.f32.mrf.mxu2 }
 0x127   : > { %2142 = vmatmul.msk.f32.vlgmr.msrb.gmra.mxu3 %vm845_vm0, %v1053_v43 }
 0x128   : > { %1444 = vmatpush.msrb.mxu3 %v896_v42 }
 0x12e   : > { %v1056_v44 = vpop.f32.mrf.mxu2 }
 0x12f   : > { %2144 = vmatmul.msk.f32.vlgmr.msra.gmra.mxu3 %vm845_vm0, %v1056_v44 }
 0x130   : > { %1536 = vmatpush.msra.mxu3 %v908_v25 }
 0x17a   : > { %v1084_v45 = vpop.f32.mrf.mxu3 }
 0x17b   : > { %v1085_v54 = vadd.f32 %v1084_v45, %v1060_v47 }
 0x17d   : > { %v1269_v57 = vsel %vm845_vm0, %v1085_v54, -inf }
 0x182   : > { %v1110_v48 = vpop.f32.mrf.mxu3 }
 0x183   : > { %v1111_v49 = vadd.f32 %v1110_v48, %v1060_v47 }
 0x185   : > { %v1272_v50 = vsel %vm845_vm0, %v1111_v49, -inf }
 0x186   : > { %1273 = vmax.xlane.f32.xlu2 %v1272_v50  ;;  %v899_v50 = vpop.f32.mrf.mxu0 }
 0x187   : > { %1467 = vmatpush.msra.mxu0 %v899_v50 }
 0x18a   : > { %v1136_v51 = vpop.f32.mrf.mxu3 }
 0x18b   : > { %v1137_v52 = vadd.f32 %v1136_v51, %v1060_v47 }
 0x18d   : > { %v1275_v53 = vsel %vm845_vm0, %v1137_v52, -inf }
 0x18e   : > { %1276 = vmax.xlane.f32.xlu0 %v1275_v53 }
 0x192   : > { %v1162_v55 = vpop.f32.mrf.mxu3 }
 0x193   : > { %v1163_v56 = vadd.f32 %v1162_v55, %v1060_v47 }
 0x195   : > { %v1278_v58 = vsel %vm845_vm0, %v1163_v56, -inf }
 0x196   : > { %1270 = vmax.xlane.f32.xlu0 %v1269_v57  ;;  %1279 = vmax.xlane.f32.xlu1 %v1278_v58 }
 0x19a   : > { %v1188_v59 = vpop.f32.mrf.mxu3 }
 0x19b   : > { %v1189_v60 = vadd.f32 %v1188_v59, %v1060_v47 }
 0x19d   : > { %v1281_v61 = vsel %vm845_vm0, %v1189_v60, -inf }
 0x19e   : > { %1282 = vmax.xlane.f32.xlu2 %v1281_v61 }
 0x1a2   : > { %v1214_v62 = vpop.f32.mrf.mxu3 }
 0x1a3   : > { %v1215_v2 = vadd.f32 %v1214_v62, %v1060_v47 }
 0x1a5   : > { %v1284_v5 = vsel %vm845_vm0, %v1215_v2, -inf }
 0x1aa   : > { %v1240_v63 = vpop.f32.mrf.mxu3 }
 0x1ab   : > { %v1241_v0 = vadd.f32 %v1240_v63, %v1060_v47 }
 0x1ad   : > { %v1287_v1 = vsel %vm845_vm0, %v1241_v0, -inf }
 0x1ae   : > { %1288 = vmax.xlane.f32.xlu1 %v1287_v1 }
 0x1b2   : > { %v1266_v3 = vpop.f32.mrf.mxu3 }
 0x1b3   : > { %v1267_v4 = vadd.f32 %v1266_v3, %v1060_v47 }
 0x1b5   : > { %v1290_v6 = vsel %vm845_vm0, %v1267_v4, -inf }
 0x1b6   : > { %1285 = vmax.xlane.f32.xlu1 %v1284_v5  ;;  %1291 = vmax.xlane.f32.xlu0 %v1290_v6 }
 0x1f9   : > { %v1274_v13 = vpop.xlane.xlu2 %1273 }
 0x1fa   : > { %v1294_v19 = vsub.f32 %v1111_v49, %v1274_v13  ;;  %v1542_v13 = vld [vmem:[%s3109_s8 + $0x8] sm:$0xff] }
 0x1fc   : > { %v1303_v23 = vmul.f32 1.442695, %v1294_v19 }
 0x201   : > { %v1277_v9 = vpop.xlane.xlu0 %1276 }
 0x202   : > { %v1295_v10 = vsub.f32 %v1137_v52, %v1277_v9  ;;  %v902_v52 = vpop.f32.mrf.mxu0 }
 0x203   : > { %1490 = vmatpush.msra.mxu1 %v902_v52  ;;  %v1683_v52 = vld [vmem:[%s833_s2 + $0x8] sm:$0xff] }
 0x204   : > { %v1305_v11 = vmul.f32 1.442695, %v1295_v10 }
 0x206   : > { %2311 = vpow2.f32 %v1305_v11 }
 0x209   : > { %v1271_v14 = vpop.xlane.xlu0 %1270  ;;  %v1280_v15 = vpop.xlane.xlu1 %1279 }
 0x20a   : > { %v1293_v16 = vsub.f32 %v1085_v54, %v1271_v14  ;;  %v1296_v17 = vsub.f32 %v1163_v56, %v1280_v15  ;;  %v905_v57 = vpop.f32.mrf.mxu0  ;;  %v1541_v14 = vld [vmem:[%s3109_s8] sm:$0xff]  ;;  %v1543_v15 = vld [vmem:[%s3109_s8 + $0x10] sm:$0xff] }
 0x20b   : > { %1513 = vmatpush.msrb.mxu2 %v905_v57 }
 0x20c   : > { %v2312_v18 = vpop.eup %2311  ;;  %v1301_v20 = vmul.f32 1.442695, %v1293_v16  ;;  %v1307_v21 = vmul.f32 1.442695, %v1296_v17  ;;  %v1544_v16 = vld [vmem:[%s3109_s8 + $0x18] sm:$0xff] }
 0x20d   : > { %v1323_v22 = vsel %vm845_vm0, %v2312_v18, 0.0 }
 0x20e   : > { %2313 = vpow2.f32 %v1301_v20  ;;  %1324 = vadd.xlane.f32.xlu2 %v1323_v22 }
 0x20f   : > { %2315 = vpow2.f32 %v1307_v21 }
 0x210   : > { %2317 = vpow2.f32 %v1303_v23 }
 0x211   : > { %v1283_v24 = vpop.xlane.xlu2 %1282 }
 0x212   : > { %v1297_v25 = vsub.f32 %v1189_v60, %v1283_v24 }
 0x214   : > { %v2314_v26 = vpop.eup %2313  ;;  %v1309_v27 = vmul.f32 1.442695, %v1297_v25 }
 0x215   : > { %v2316_v28 = vpop.eup %2315  ;;  %v1317_v29 = vsel %vm845_vm0, %v2314_v26, 0.0 }
 0x216   : > { %2319 = vpow2.f32 %v1309_v27  ;;  %v1326_v30 = vsel %vm845_vm0, %v2316_v28, 0.0  ;;  %1318 = vadd.xlane.f32.xlu0 %v1317_v29  ;;  %v2318_v31 = vpop.eup %2317 }
 0x217   : > { %1327 = vadd.xlane.f32.xlu1 %v1326_v30  ;;  %v1320_v34 = vsel %vm845_vm0, %v2318_v31, 0.0 }
 0x21c   : > { %v2320_v32 = vpop.eup %2319 }
 0x21d   : > { %v1329_v33 = vsel %vm845_vm0, %v2320_v32, 0.0 }
 0x21e   : > { %1321 = vadd.xlane.f32.xlu0 %v1320_v34  ;;  %v2304_v34 = vld [vmem:[%s3110_s9] ss:$0 sm:$0xff] }
 0x21f   : > { %1330 = vadd.xlane.f32.xlu1 %v1329_v33 }
 0x221   : > { %v1289_v35 = vpop.xlane.xlu1 %1288 }
 0x222   : > { %v1299_v36 = vsub.f32 %v1241_v0, %v1289_v35 }
 0x224   : > { %v1313_v37 = vmul.f32 1.442695, %v1299_v36 }
 0x226   : > { %2321 = vpow2.f32 %v1313_v37 }
 0x229   : > { %v1286_v38 = vpop.xlane.xlu1 %1285  ;;  %v1292_v39 = vpop.xlane.xlu0 %1291 }
 0x22a   : > { %v1298_v40 = vsub.f32 %v1215_v2, %v1286_v38  ;;  %v1300_v41 = vsub.f32 %v1267_v4, %v1292_v39 }
 0x22c   : > { %v2322_v42 = vpop.eup %2321  ;;  %v1311_v43 = vmul.f32 1.442695, %v1298_v40  ;;  %v1315_v44 = vmul.f32 1.442695, %v1300_v41  ;;  %v1682_v40 = vld [vmem:[%s833_s2] sm:$0xff]  ;;  %s3157_s2 = sld [smem:[#allocation42_spill]] }
 0x22d   : > { %v1335_v45 = vsel %vm845_vm0, %v2322_v42, 0.0 }
 0x22e   : > { %2323 = vpow2.f32 %v1311_v43  ;;  %1336 = vadd.xlane.f32.xlu2 %v1335_v45 }
 0x22f   : > { %2325 = vpow2.f32 %v1315_v44 }
 0x234   : > { %v2324_v46 = vpop.eup %2323 }
 0x235   : > { %v2326_v47 = vpop.eup %2325  ;;  %v1332_v48 = vsel %vm845_vm0, %v2324_v46, 0.0 }
 0x236   : > { %1333 = vadd.xlane.f32.xlu0 %v1332_v48  ;;  %v1338_v49 = vsel %vm845_vm0, %v2326_v47, 0.0 }
 0x237   : > { %1339 = vadd.xlane.f32.xlu2 %v1338_v49 }
 0x281   : > { %v1325_v51 = vpop.xlane.xlu2 %1324 }
 0x282   : > { %2327 = vrcp.f32 %v1325_v51 }
 0x288   : > { %v2328_v53 = vpop.eup %2327 }
 0x289   : > { %v1351_v54 = vmul.f32 %v2328_v53, %v2312_v18  ;;  %v1319_v55 = vpop.xlane.xlu0 %1318 }
 0x28a   : > { %v1328_v56 = vpop.xlane.xlu1 %1327  ;;  %2329 = vrcp.f32 %v1319_v55 }
 0x28b   : > { %2331 = vrcp.f32 %v1328_v56  ;;  %2147 = vmatmul.msk.f32.vlgmr.msra.gmra.mxu2 %vm845_vm0, %v1351_v54  ;;  %v2575_v56 = vmov 32.0  }
 0x28c   : > { %1624 = vmatpush.msra.mxu2 %v1543_v15 }
 0x290   : > { %v2330_v58 = vpop.eup %2329 }
 0x291   : > { %v2332_v59 = vpop.eup %2331  ;;  %v1322_v60 = vpop.xlane.xlu0 %1321  ;;  %v1349_v61 = vmul.f32 %v2330_v58, %v2314_v26 }
 0x292   : > { %v1352_v62 = vmul.f32 %v2332_v59, %v2316_v28  ;;  %v1331_v63 = vpop.xlane.xlu1 %1330  ;;  %2333 = vrcp.f32 %v1322_v60 }
 0x293   : > { %2335 = vrcp.f32 %v1331_v63  ;;  %2145 = vmatmul.msk.f32.vlgmr.msrb.gmra.mxu0 %vm845_vm0, %v1349_v61 }
 0x294   : > { %2148 = vmatmul.msk.f32.vlgmr.msrb.gmra.mxu3 %vm845_vm0, %v1352_v62  ;;  %1566 = vmatpush.msrb.mxu0 %v1541_v14 }
 0x295   : > { %1653 = vmatpush.msrb.mxu3 %v1544_v16  ;;  %v1795_v16 = vld [vmem:[%s3115_s14 + $0x38] sm:$0xff] }
 0x298   : > { %v2334_v0 = vpop.eup %2333 }
 0x299   : > { %v2336_v1 = vpop.eup %2335  ;;  %v1350_v2 = vmul.f32 %v2334_v0, %v2318_v31 }
 0x29a   : > { %v1353_v3 = vmul.f32 %v2336_v1, %v2320_v32 }
 0x29b   : > { %2146 = vmatmul.msk.f32.vlgmr.msrb.gmra.mxu1 %vm845_vm0, %v1350_v2 }
 0x29c   : > { %2149 = vmatmul.msk.f32.vlgmr.msra.gmra.mxu0 %vm845_vm0, %v1353_v3  ;;  %1595 = vmatpush.msrb.mxu1 %v1542_v13 }
 0x2a1   : > { %v1337_v4 = vpop.xlane.xlu2 %1336 }
 0x2a2   : > { %2337 = vrcp.f32 %v1337_v4 }
 0x2a8   : > { %v2338_v5 = vpop.eup %2337 }
 0x2a9   : > { %v1355_v6 = vmul.f32 %v2338_v5, %v2322_v42  ;;  %v1334_v7 = vpop.xlane.xlu0 %1333 }
 0x2aa   : > { %v1340_v8 = vpop.xlane.xlu2 %1339  ;;  %2339 = vrcp.f32 %v1334_v7 }
 0x2ab   : > { %2341 = vrcp.f32 %v1340_v8  ;;  %2151 = vmatmul.msk.f32.vlgmr.msrb.gmra.mxu2 %vm845_vm0, %v1355_v6 }
 0x2ac   : > { %2343 = vrcp.f32 %v2575_v56  ;;  %v2308_v56 = vld [vmem:[%s3156_s5] ss:$0 sm:$0xff]  ;;  %s2489_s5 = scalar_lea.hbm %s2488_s21, 16 }
 0x2ad   : > { %p2490_p4 = scmp.ne.s32.totalorder %s2488_s21, %s2489_s5 }
 0x2af   : > { %p2491_p5 = pnand %p2490_p4, %p2725_p11 }
 0x2b0   : > { %v2340_v9 = vpop.eup %2339 }
 0x2b1   : > { %v2342_v10 = vpop.eup %2341  ;;  %v1354_v11 = vmul.f32 %v2340_v9, %v2324_v46  ;;  %v1752_v9 = vld [vmem:[%s3113_s12 + $0x18] sm:$0xff]  ;;  %p2492_p6 = pneg %p2491_p5 }
 0x2b2   : > { %v1356_v12 = vmul.f32 %v2342_v10, %v2326_v47  ;;  %v2344_v57 = vpop.eup %2343  ;;  %1775 = vmatpush.msra.mxu0 %v1752_v9  ;;  %v1751_v10 = vld [vmem:[%s3113_s12 + $0x10] sm:$0xff] }
 0x2b3   : > { %2150 = vmatmul.msk.f32.vlgmr.msra.gmra.mxu1 %vm845_vm0, %v1354_v11  ;;  %v1695_v58 = vmul.f32 32.0, %v2344_v57  ;;  %vm1699_vm2 = vweird.f32 %v2344_v57  ;;  %v1750_v11 = vld [vmem:[%s3113_s12 + $0x8] sm:$0xff] }
 0x2b4   : > { %2152 = vmatmul.msk.f32.vlgmr.msra.gmra.mxu3 %vm845_vm0, %v1356_v12  ;;  %1776 = vmatpush.msra.mxu0 %v1751_v10  ;;  %v1749_v12 = vld [vmem:[%s3113_s12] sm:$0xff] }
 0x2b5   : > { %v1696_v59 = vsub.f32 1.0, %v1695_v58  ;;  %1815 = vmatpush.msra.mxu1 %v1795_v16 }
 0x2b6   : > { %1777 = vmatpush.msra.mxu0 %v1750_v11 }
 0x2b7   : > { %v1697_v60 = vmul.f32 %v2344_v57, %v1696_v59 }
 0x2b8   : > { %1778 = vmatpush.msra.mxu0 %v1749_v12 }
 0x2b9   : > { %v1698_v61 = vadd.f32 %v2344_v57, %v1697_v60 }
 0x2bb   : > { %v2993_v62 = vsel %vm1699_vm2, %v2344_v57, %v1698_v61 }
 0x30e   : > { %v1423_v17 = vpop.f32.mrf.mxu2 }
 0x30f   : > { %2155 = vmatmul.msk.f32.vlgmr.msrb.gmra.mxu1 %vm845_vm0, %v1423_v17  ;;  %v1794_v17 = vld [vmem:[%s3115_s14 + $0x30] sm:$0xff] }
 0x310   : > { %v1377_v18 = vpop.f32.mrf.mxu0  ;;  %1816 = vmatpush.msra.mxu1 %v1794_v17 }
 0x311   : > { %2153 = vmatmul.msk.f32.vlgmr.msrb.gmra.mxu0 %vm845_vm0, %v1377_v18  ;;  %v1793_v18 = vld [vmem:[%s3115_s14 + $0x28] sm:$0xff] }
 0x312   : > { %1817 = vmatpush.msra.mxu1 %v1793_v18 }
 0x317   : > { %v1446_v19 = vpop.f32.mrf.mxu3 }
 0x318   : > { %2156 = vmatmul.msk.f32.gmra.mxu1 %vm845_vm0, %v1446_v19  ;;  %v1400_v20 = vpop.f32.mrf.mxu1 }
 0x319   : > { %v1469_v21 = vpop.f32.mrf.mxu0  ;;  %2154 = vmatmul.msk.f32.gmra.mxu0 %vm845_vm0, %v1400_v20 }
 0x31a   : > { %2157 = vmatmul.msk.f32.vlgmr.msra.gmra.mxu2 %vm845_vm0, %v1469_v21  ;;  %v1792_v21 = vld [vmem:[%s3115_s14 + $0x20] sm:$0xff] }
 0x31b   : > { %1818 = vmatpush.msra.mxu1 %v1792_v21 }
 0x32e   : > { %v1515_v22 = vpop.f32.mrf.mxu2 }
 0x32f   : > { %2159 = vmatmul.msk.f32.vlgmr.msrb.gmra.mxu3 %vm845_vm0, %v1515_v22 }
 0x330   : > { %v1492_v23 = vpop.f32.mrf.mxu1 }
 0x331   : > { %2158 = vmatmul.msk.f32.gmra.mxu2 %vm845_vm0, %v1492_v23 }
 0x337   : > { %v1538_v24 = vpop.f32.mrf.mxu3 }
 0x338   : > { %2160 = vmatmul.msk.f32.gmra.mxu3 %vm845_vm0, %v1538_v24 }
 0x38c   : > { %v1597_v26 = vpop.f32.mrf.mxu1 }
 0x38d   : > { %v1663_v29 = vsel %vm1661_vm1, %v1597_v26, 0.0 }
 0x38e   : > { %v1568_v25 = vpop.f32.mrf.mxu0 }
 0x38f   : > { %v1662_v28 = vsel %vm1661_vm1, %v1568_v25, 0.0  ;;  %v1791_v25 = vld [vmem:[%s3115_s14 + $0x18] sm:$0xff] }
 0x390   : > { %v1664_v31 = vadd.f32 %v1663_v29, %v1662_v28  ;;  %1819 = vmatpush.msra.mxu1 %v1791_v25  ;;  %v2309_v25 = vld [vmem:[%s3157_s2] ss:$0 sm:$0xff]  ;;  %s2493_s2 = scalar_lea.hbm %s3159_s24, 32 }
 0x391   : > { %p2495_p8 = scmp.lt.s32.totalorder %s2493_s2, %s2489_s5 }
 0x393   : > { %p2496_p9 = por %p2495_p8, %p2494_p7 }
 0x395   : > { %v1600_v38 = vpop.f32.mrf.mxu1  ;;  %p2497_p10 = pnand %p2496_p9, %p2492_p6 }
 0x396   : > { %v1571_v35 = vpop.f32.mrf.mxu0  ;;  %v1670_v43 = vsel %vm1661_vm1, %v1600_v38, 0.0 }
 0x397   : > { %v1669_v41 = vsel %vm1661_vm1, %v1571_v35, 0.0 }
 0x398   : > { %v1671_v46 = vadd.f32 %v1670_v43, %v1669_v41 }
 0x39d   : > { %v1626_v27 = vpop.f32.mrf.mxu2 }
 0x39e   : > { %v1665_v30 = vsel %vm1661_vm1, %v1626_v27, 0.0  ;;  %v1790_v27 = vld [vmem:[%s3115_s14 + $0x10] sm:$0xff] }
 0x39f   : > { %v1666_v32 = vadd.f32 %v1665_v30, %v1664_v31  ;;  %1820 = vmatpush.msra.mxu1 %v1790_v27  ;;  %v2310_v27 = vld [vmem:[%s3158_s19] ss:$0 sm:$0xff] }
 0x3b2   : > { %v1655_v33 = vpop.f32.mrf.mxu3 }
 0x3b3   : > { %v1667_v36 = vsel %vm1661_vm1, %v1655_v33, 0.0 }
 0x3b4   : > { %v1668_v37 = vadd.f32 %v1667_v36, %v1666_v32  ;;  %v1629_v39 = vpop.f32.mrf.mxu2  ;;  %v2305_v32 = vld [vmem:[%s3111_s10] ss:$0 sm:$0xff] }
 0x3b5   : > { %v1672_v44 = vsel %vm1661_vm1, %v1629_v39, 0.0 }
 0x3b6   : > { %v1680_v42 = vadd.f32 %v2304_v34, %v1668_v37  ;;  %v1673_v48 = vadd.f32 %v1672_v44, %v1671_v46  ;;  %v2306_v37 = vld [vmem:[%s3112_s11] ss:$0 sm:$0xff] }
 0x3b8   : > { %v1684_v45 = vadd.f32 %v1682_v40, %v1680_v42 }
 0x3ba   : > { %v1688_v47 = vsel %vm1661_vm1, %v1684_v45, 0.0 }
 0x3bb   : > { %v1658_v49 = vpop.f32.mrf.mxu3  ;;  %1689 = vadd.xlane.f32.xlu1 %v1688_v47  ;;  %v1789_v47 = vld [vmem:[%s3115_s14 + $0x8] sm:$0xff] }
 0x3bc   : > { %v1674_v50 = vsel %vm1661_vm1, %v1658_v49, 0.0  ;;  %1821 = vmatpush.msra.mxu1 %v1789_v47  ;;  %v2307_v49 = vld [vmem:[%s3114_s13] ss:$0 sm:$0xff] }
 0x3bd   : > { %v1675_v51 = vadd.f32 %v1674_v50, %v1673_v48  ;;  %v1788_v48 = vld [vmem:[%s3115_s14] sm:$0xff] }
 0x3be   : > { %1822 = vmatpush.msra.mxu1 %v1788_v48 }
 0x3bf   : > { %v1681_v53 = vadd.f32 %v2304_v34, %v1675_v51 }
 0x3c1   : > { %v1685_v54 = vadd.f32 %v1683_v52, %v1681_v53 }
 0x3c3   : > { %v1691_v55 = vsel %vm1661_vm1, %v1685_v54, 0.0 }
 0x3c4   : > { %1692 = vadd.xlane.f32.xlu2 %v1691_v55 }
 0x42e   : > { %v1690_v63 = vpop.xlane.xlu1 %1689 }
 0x42f   : > { %v1701_v0 = vmul.f32 %v2993_v62, %v1690_v63 }
 0x431   : > { %v1703_v1 = vsub.f32 %v1684_v45, %v1701_v0 }
 0x433   : > { %v1705_v2 = vmul.f32 %v1703_v1, %v1703_v1 }
 0x435   : > { %v1707_v3 = vsel %vm1661_vm1, %v1705_v2, 0.0 }
 0x436   : > { %1708 = vadd.xlane.f32.xlu0 %v1707_v3 }
 0x437   : > { %v1693_v4 = vpop.xlane.xlu2 %1692 }
 0x438   : > { %v1702_v5 = vmul.f32 %v2993_v62, %v1693_v4 }
 0x43a   : > { %v1704_v6 = vsub.f32 %v1685_v54, %v1702_v5 }
 0x43c   : > { %v1706_v7 = vmul.f32 %v1704_v6, %v1704_v6 }
 0x43e   : > { %v1710_v8 = vsel %vm1661_vm1, %v1706_v7, 0.0 }
 0x43f   : > { %1711 = vadd.xlane.f32.xlu1 %v1710_v8 }
 0x4a9   : > { %v1709_v13 = vpop.xlane.xlu0 %1708 }
 0x4aa   : > { %v1713_v14 = vmul.f32 %v1709_v13, %v2993_v62 }
 0x4ac   : > { %v1715_v15 = vadd.f32 1e-05, %v1713_v14 }
 0x4ae   : > { %2345 = vrsqrt.f32 %v1715_v15  ;;  %vm1723_vm4 = vweird.f32 %v1715_v15 }
 0x4b2   : > { %v1712_v19 = vpop.xlane.xlu1 %1711 }
 0x4b3   : > { %v1714_v20 = vmul.f32 %v1712_v19, %v2993_v62 }
 0x4b4   : > { %v2346_v22 = vpop.eup %2345 }
 0x4b5   : > { %v1718_v23 = vmul.f32 %v2346_v22, %v1715_v15  ;;  %v1716_v24 = vadd.f32 1e-05, %v1714_v20  ;;  %vm1724_vm3 = vweird.f32 %v2346_v22 }
 0x4b6   : > { %vm1725_vm5 = vmor %vm1723_vm4, %vm1724_vm3 }
 0x4b7   : > { %v1719_v26 = vmul.f32 %v2346_v22, %v1718_v23  ;;  %2347 = vrsqrt.f32 %v1716_v24  ;;  %vm1733_vm7 = vweird.f32 %v1716_v24 }
 0x4b9   : > { %v1720_v28 = vmul.f32 0.5, %v1719_v26 }
 0x4bb   : > { %v1721_v29 = vsub.f32 1.5, %v1720_v28 }
 0x4bd   : > { %v2348_v30 = vpop.eup %2347  ;;  %v1722_v31 = vmul.f32 %v2346_v22, %v1721_v29 }
 0x4be   : > { %v1728_v33 = vmul.f32 %v2348_v30, %v1716_v24  ;;  %vm1734_vm6 = vweird.f32 %v2348_v30 }
 0x4bf   : > { %v1726_v34 = vsel %vm1725_vm5, %v2346_v22, %v1722_v31  ;;  %vm1735_vm8 = vmor %vm1733_vm7, %vm1734_vm6 }
 0x4c0   : > { %v1737_v35 = vmul.f32 %v1726_v34, %v1703_v1  ;;  %v1729_v36 = vmul.f32 %v2348_v30, %v1728_v33 }
 0x4c2   : > { %v1742_v38 = vmul.f32 %v2305_v32, %v1737_v35  ;;  %v1730_v39 = vmul.f32 0.5, %v1729_v36 }
 0x4c4   : > { %v1731_v40 = vsub.f32 1.5, %v1730_v39  ;;  %v1747_v41 = vadd.f32 %v2306_v37, %v1742_v38 }
 0x4c6   : > { %v1732_v42 = vmul.f32 %v2348_v30, %v1731_v40  ;;  %2161 = vmatmul.msk.f32.vlgmr.msra.gmra.mxu0 %vm1661_vm1, %v1747_v41 }
 0x4c8   : > { %v1736_v43 = vsel %vm1735_vm8, %v2348_v30, %v1732_v42 }
 0x4c9   : > { %v1738_v44 = vmul.f32 %v1736_v43, %v1704_v6 }
 0x4cb   : > { %v1743_v45 = vmul.f32 %v2305_v32, %v1738_v44 }
 0x4cd   : > { %v1748_v46 = vadd.f32 %v2306_v37, %v1743_v45 }
 0x4cf   : > { %2162 = vmatmul.msk.f32.gmra.mxu0 %vm1661_vm1, %v1748_v46 }
 0x543   : > { %v1780_v50 = vpop.f32.mrf.mxu0 }
 0x544   : > { %v1781_v51 = vadd.f32 %v2307_v49, %v1780_v50 }
 0x546   : > { %v1786_v52 = vmax.f32 %v1781_v51, 0.0 }
 0x548   : > { %2163 = vmatmul.msk.f32.vlgmr.msra.gmra.mxu1 %vm1800_vm9, %v1786_v52 }
 0x54c   : > { %v1783_v53 = vpop.f32.mrf.mxu0 }
 0x54d   : > { %v1784_v54 = vadd.f32 %v2307_v49, %v1783_v53 }
 0x54f   : > { %v1787_v55 = vmax.f32 %v1784_v54, 0.0 }
 0x551   : > { %2164 = vmatmul.msk.f32.gmra.mxu1 %vm1800_vm9, %v1787_v55 }
 0x5c5   : > { %v1824_v57 = vpop.f32.mrf.mxu1 }
 0x5c6   : > { %v1825_v58 = vadd.f32 %v2308_v56, %v1824_v57 }
 0x5c8   : > { %v1830_v59 = vadd.f32 %v1825_v58, %v1747_v41 }
 0x5ca   : > { %v1834_v60 = vsel %vm1661_vm1, %v1830_v59, 0.0 }
 0x5cb   : > { %1835 = vadd.xlane.f32.xlu2 %v1834_v60 }
 0x5ce   : > { %v1827_v61 = vpop.f32.mrf.mxu1 }
 0x5cf   : > { %v1828_v63 = vadd.f32 %v2308_v56, %v1827_v61 }
 0x5d1   : > { %v1831_v0 = vadd.f32 %v1828_v63, %v1748_v46 }
 0x5d3   : > { %v1837_v1 = vsel %vm1661_vm1, %v1831_v0, 0.0 }
 0x5d4   : > { %1838 = vadd.xlane.f32.xlu0 %v1837_v1 }
 0x63e   : > { %v1836_v2 = vpop.xlane.xlu2 %1835 }
 0x63f   : > { %v1840_v3 = vmul.f32 %v1836_v2, %v2993_v62 }
 0x641   : > { %v1842_v4 = vsub.f32 %v1830_v59, %v1840_v3 }
 0x643   : > { %v1844_v5 = vmul.f32 %v1842_v4, %v1842_v4 }
 0x645   : > { %v1846_v6 = vsel %vm1661_vm1, %v1844_v5, 0.0 }
 0x646   : > { %1847 = vadd.xlane.f32.xlu1 %v1846_v6 }
 0x647   : > { %v1839_v7 = vpop.xlane.xlu0 %1838 }
 0x648   : > { %v1841_v8 = vmul.f32 %v1839_v7, %v2993_v62 }
 0x64a   : > { %v1843_v9 = vsub.f32 %v1831_v0, %v1841_v8 }
 0x64c   : > { %v1845_v10 = vmul.f32 %v1843_v9, %v1843_v9 }
 0x64e   : > { %v1849_v11 = vsel %vm1661_vm1, %v1845_v10, 0.0 }
 0x64f   : > { %1850 = vadd.xlane.f32.xlu2 %v1849_v11 }
 0x6b9   : > { %v1848_v12 = vpop.xlane.xlu1 %1847 }
 0x6ba   : > { %v1852_v13 = vmul.f32 %v1848_v12, %v2993_v62 }
 0x6bc   : > { %v1854_v14 = vadd.f32 1e-05, %v1852_v13 }
 0x6be   : > { %2349 = vrsqrt.f32 %v1854_v14  ;;  %vm1862_vm11 = vweird.f32 %v1854_v14 }
 0x6c2   : > { %v1851_v15 = vpop.xlane.xlu2 %1850 }
 0x6c3   : > { %v1853_v16 = vmul.f32 %v1851_v15, %v2993_v62 }
 0x6c4   : > { %v2350_v17 = vpop.eup %2349 }
 0x6c5   : > { %v1857_v18 = vmul.f32 %v2350_v17, %v1854_v14  ;;  %v1855_v19 = vadd.f32 1e-05, %v1853_v16  ;;  %vm1863_vm10 = vweird.f32 %v2350_v17 }
 0x6c6   : > { %vm1864_vm12 = vmor %vm1862_vm11, %vm1863_vm10 }
 0x6c7   : > { %v1858_v20 = vmul.f32 %v2350_v17, %v1857_v18  ;;  %2351 = vrsqrt.f32 %v1855_v19  ;;  %vm1872_vm14 = vweird.f32 %v1855_v19 }
 0x6c9   : > { %v1859_v21 = vmul.f32 0.5, %v1858_v20 }
 0x6cb   : > { %v1860_v22 = vsub.f32 1.5, %v1859_v21 }
 0x6cd   : > { %v2352_v23 = vpop.eup %2351  ;;  %v1861_v24 = vmul.f32 %v2350_v17, %v1860_v22 }
 0x6ce   : > { %v1867_v26 = vmul.f32 %v2352_v23, %v1855_v19  ;;  %vm1873_vm13 = vweird.f32 %v2352_v23 }
 0x6cf   : > { %v1865_v62 = vsel %vm1864_vm12, %v2350_v17, %v1861_v24  ;;  %vm1874_vm15 = vmor %vm1872_vm14, %vm1873_vm13 }
 0x6d0   : > { %v1876_v28 = vmul.f32 %v1865_v62, %v1842_v4  ;;  %v1868_v29 = vmul.f32 %v2352_v23, %v1867_v26 }
 0x6d2   : > { %v1881_v30 = vmul.f32 %v2309_v25, %v1876_v28  ;;  %v1869_v31 = vmul.f32 0.5, %v1868_v29 }
 0x6d4   : > { %v1886_v32 = vadd.f32 %v2310_v27, %v1881_v30  ;;  %v1870_v33 = vsub.f32 1.5, %v1869_v31 }
 0x6d6   : > { %v1871_v34 = vmul.f32 %v2352_v23, %v1870_v33  ;;  %1888 = vst.msk [vmem:[%s825_s17] sm:$0xff] %vm1661_vm1, %v1886_v32 }
 0x6d8   : > { %v1875_v35 = vsel %vm1874_vm15, %v2352_v23, %v1871_v34 }
 0x6d9   : > { %v1877_v36 = vmul.f32 %v1875_v35, %v1843_v9 }
 0x6db   : > { %v1882_v37 = vmul.f32 %v2309_v25, %v1877_v36 }
 0x6dd   : > { %v1887_v38 = vadd.f32 %v2310_v27, %v1882_v37 }
 0x6df   : > { %1889 = vst.msk [vmem:[%s825_s17 + $0x8] sm:$0xff] %vm1661_vm1, %v1887_v38 }
 0x6e0   : > { %2500 = shalt.err (!%p2497_p10)
}
 0x6e1   : > { %s2576_s27 = smov 128   ;;  %s2577_s19 = smov 8  }
 0x6e2   : > { %2219 = dma.vmem_to_hbm [thread:$0]  (%p2725_p11), %s1904_s6, 256, %s1906_s25, %s1891_s0, %s2576_s27, %s2576_s27, %s2577_s19  }
 0x6e3 PF: > { %s3161_s23 = sld [smem:[#allocation29_spill]]  ;;  %p2235_p13 = pnand %p2078_p2, %p2729_p12 }
 0x6e5   : > { %p2236_p1 = pneg %p2235_p13 }
 0x6e9   : > { %s1920_s17 = sand.u32 1, %s3161_s23  }
 0x6ea   : > { %s1921_s7 = scalar_lea.sflag [#allocation4], %s1920_s17 }
 0x6eb   : > { %2534 = dma.done.wait (%p2236_p1), %s1921_s7, 256  }
 0x6ec   : > { %2536 = vsyncadd (%p2236_p1), %s1921_s7, 4294967040  ;;  %s3163_s30 = sld [smem:[#allocation30_spill]]  ;;  %s3165_s27 = smov %s2543_s28 }
 0x6ed   : > { %s3164_s4 = sld [smem:[#allocation31_spill]]  ;;  %s3166_s28 = smov %s2547_s29 }
 0x6f2   : > { %p36_p0 = scmp.ge.s32.totalorder %s3163_s30, 4  }
 0x6f3   : > { %s3167_s29 = smov %s3164_s4 }
 0x6f4   :  { %38 = sbr.rel (!%p36_p0) target bundleno = 21 (0x15), region = 195 }
 0x6f9   :  { %1927 = vsyncpa [#allocation3], 1 }
 0x6fa   :  { %1929 = vsyncpa [#allocation3 + $0x1], 1 }
 0x6fb   :  { %1930 = vsyncpa [#allocation6], 1 }
 0x6fc   :  { %1932 = vsyncpa [#allocation6 + $0x1], 1 }
 0x6fd   :  { %1933 = vsyncpa [#allocation9], 1 }
 0x6fe   :  { %1934 = vsyncpa [#allocation12], 1 }
 0x6ff   :  { %1935 = vsyncpa [#allocation4], 1 }
 0x700   :  { %1937 = vsyncpa [#allocation4 + $0x1], 1 }

</bundles_post_ra>
